<compile_context>
chip_gen: v7x
topology: tpu7x:2x2x1
jax: 0.10.0
libtpu: 0.0.40
codegen_flags: <defaults>
</compile_context>

<pallas_src>
import math
from functools import partial

import jax
import jax.numpy as jnp
from jax.experimental import pallas as pl
from jax.experimental.pallas import tpu as pltpu


def _vmem():
    return pl.BlockSpec(memory_space=pltpu.MemorySpace.VMEM)


# --------------------------- fused whole-model kernel ------------------------

def _model_kernel(src_ids, tgt_ids, emb,
                  e_qkv_w, e_wo, e_w1, e_w2, e_vec,
                  d_qkv_w, d_sa_wo, d_q_w, d_kv_w, d_ca_wo, d_w1, d_w2, d_vec,
                  out_w, out_b, o_ref,
                  *, B, Ts, Tt, D, F, H, L, V):
    hd = D // H
    scale = 1.0 / math.sqrt(hd)
    f32 = jnp.float32

    def dense(x, w, b):
        return jnp.dot(x, w, preferred_element_type=f32) + b

    def layer_norm(x, g, b):
        # single-pass biased variance (torch default, eps=1e-5)
        mu = jnp.mean(x, axis=-1, keepdims=True)
        var = jnp.mean(x * x, axis=-1, keepdims=True) - mu * mu
        return (x - mu) * jax.lax.rsqrt(var + 1e-5) * g + b

    def embed(ids_ref, T):
        # one-hot matmul gather (MXU-friendly, avoids a separate XLA gather)
        ids = ids_ref[...]                                          # (B*T, 1) i32
        iota = jax.lax.broadcasted_iota(jnp.int32, (B * T, V), 1)
        onehot = (iota == ids).astype(f32)
        return jnp.dot(onehot, emb[...], preferred_element_type=f32)

    def split_heads(x2d, off, T):
        # (B*T, >=off+D) -> (H*B, T, hd); per-head lane slices, outer-dim stack
        heads = [x2d[:, off + h * hd: off + (h + 1) * hd].reshape(B, T, hd)
                 for h in range(H)]
        return jnp.concatenate(heads, axis=0)                       # (H*B, T, hd)

    def merge_heads(o, Tq):
        # (H*B, Tq, hd) -> (B*Tq, D)  (heads back into lanes)
        parts = [o[h * B:(h + 1) * B].reshape(B * Tq, hd) for h in range(H)]
        return jnp.concatenate(parts, axis=-1)

    def attention(q_src, q_off, Tq, kv_src, k_off, v_off, Tkv, wo, bo):
        qh = split_heads(q_src, q_off, Tq)
        kh = split_heads(kv_src, k_off, Tkv)
        vh = split_heads(kv_src, v_off, Tkv)
        # one batched score matmul over all (head, batch) pairs
        s = jnp.einsum("nqd,nkd->nqk", qh, kh,
                       preferred_element_type=f32) * scale
        m = jnp.max(s, axis=-1, keepdims=True)
        p = jnp.exp(s - m)
        denom = jnp.sum(p, axis=-1, keepdims=True)
        p = p * pl.reciprocal(denom, approx=True)
        o = jnp.einsum("nqk,nkd->nqd", p, vh, preferred_element_type=f32)
        # single (B*Tq, D) @ (D, D) output projection
        return jnp.dot(merge_heads(o, Tq), wo, preferred_element_type=f32) + bo

    def ffn(x, w1, b1, w2, b2):
        h = jnp.maximum(dense(x, w1, b1), 0.0)
        return dense(h, w2, b2)

    # ---------------- encoder ----------------
    x = embed(src_ids, Ts)           # PositionalEncoding: no-op (faithful)
    for l in range(L):
        ev = e_vec[l]                                          # (8, 128)
        qkv_b = ev[0:1, :3 * D]
        bo = ev[1:2, :D]
        ln1_g = ev[2:3, :D]; ln1_b = ev[3:4, :D]
        b1 = ev[4:5, :F];    b2 = ev[5:6, :D]
        ln2_g = ev[6:7, :D]; ln2_b = ev[7:8, :D]

        qkv = dense(x, e_qkv_w[l], qkv_b)                      # (B*Ts, 3D)
        sa = attention(qkv, 0, Ts, qkv, D, 2 * D, Ts, e_wo[l], bo)
        x = layer_norm(x + sa, ln1_g, ln1_b)
        x = layer_norm(x + ffn(x, e_w1[l], b1, e_w2[l], b2), ln2_g, ln2_b)
    memory = x                                                 # (B*Ts, D)

    # ---------------- decoder ----------------
    # NOTE: no causal mask — reference forward passes tgt_mask=None.
    y = embed(tgt_ids, Tt)
    for l in range(L):
        dv = d_vec[l]                                          # (13, 128)
        qkv_b = dv[0:1, :3 * D]
        sa_bo = dv[1:2, :D]
        ln1_g = dv[2:3, :D]; ln1_b = dv[3:4, :D]
        q_b = dv[4:5, :D];   kv_b = dv[5:6, :2 * D]
        ca_bo = dv[6:7, :D]
        ln2_g = dv[7:8, :D]; ln2_b = dv[8:9, :D]
        b1 = dv[9:10, :F];   b2 = dv[10:11, :D]
        ln3_g = dv[11:12, :D]; ln3_b = dv[12:13, :D]

        qkv = dense(y, d_qkv_w[l], qkv_b)
        sa = attention(qkv, 0, Tt, qkv, D, 2 * D, Tt, d_sa_wo[l], sa_bo)
        y = layer_norm(y + sa, ln1_g, ln1_b)

        q = dense(y, d_q_w[l], q_b)                            # (B*Tt, D)
        kv = dense(memory, d_kv_w[l], kv_b)                    # (B*Ts, 2D)
        ca = attention(q, 0, Tt, kv, 0, D, Ts, d_ca_wo[l], ca_bo)
        y = layer_norm(y + ca, ln2_g, ln2_b)
        y = layer_norm(y + ffn(y, d_w1[l], b1, d_w2[l], b2), ln3_g, ln3_b)

    # lane-dense (padded-to-128) logits
    o_ref[...] = dense(y, out_w[...], out_b[...])


# --------------------------- jitted wrapper ----------------------------------

@partial(jax.jit, static_argnames=("nhead",))
def transformer_autoencoder(params, src, tgt, nhead):
    emb = params["emb"]
    V, D = emb.shape
    B, Ts = src.shape
    _, Tt = tgt.shape
    L = params["enc"]["qkv_w"].shape[0]
    F = params["enc"]["w1"].shape[2]
    Vpad = params["out_w"].shape[1]          # padded once at init

    src_ids = src.reshape(B * Ts, 1).astype(jnp.int32)
    tgt_ids = tgt.reshape(B * Tt, 1).astype(jnp.int32)

    args = [src_ids, tgt_ids, emb,
            params["enc"]["qkv_w"], params["enc"]["wo"], params["enc"]["w1"],
            params["enc"]["w2"], params["enc"]["vec"],
            params["dec"]["qkv_w"], params["dec"]["sa_wo"], params["dec"]["q_w"],
            params["dec"]["kv_w"], params["dec"]["ca_wo"], params["dec"]["w1"],
            params["dec"]["w2"], params["dec"]["vec"],
            params["out_w"], params["out_b"]]

    # rough cost hint for the XLA scheduler
    def mm(m, k, n):
        return 2 * m * k * n
    flops = mm(B * Ts, V, D) + mm(B * Tt, V, D)
    for _ in range(L):
        flops += (mm(B * Ts, D, 3 * D) + 2 * mm(B * Ts, Ts, D) + mm(B * Ts, D, D)
                  + mm(B * Ts, D, F) + mm(B * Ts, F, D))
        flops += (mm(B * Tt, D, 3 * D) + 2 * mm(B * Tt, Tt, D) + mm(B * Tt, D, D)
                  + mm(B * Tt, D, D) + mm(B * Ts, D, 2 * D)
                  + 2 * mm(B * Tt, Ts, D) + mm(B * Tt, D, D)
                  + mm(B * Tt, D, F) + mm(B * Tt, F, D))
    flops += mm(B * Tt, D, Vpad)
    transcendentals = L * B * nhead * (Ts * Ts + Tt * Tt + Tt * Ts)
    bytes_accessed = int(sum(a.size * a.dtype.itemsize for a in args)
                         + B * Tt * Vpad * 4)

    kernel = partial(_model_kernel, B=B, Ts=Ts, Tt=Tt, D=D, F=F,
                     H=nhead, L=L, V=V)
    logits = pl.pallas_call(
        kernel,
        out_shape=jax.ShapeDtypeStruct((B * Tt, Vpad), jnp.float32),
        in_specs=[_vmem()] * len(args),
        out_specs=_vmem(),
        cost_estimate=pl.CostEstimate(flops=int(flops),
                                      transcendentals=int(transcendentals),
                                      bytes_accessed=bytes_accessed),
    )(*args)
    return logits[:, :V].reshape(B, Tt, V)


# --------------------------- deterministic init ------------------------------

def _normal(key, shape, scale=0.02):
    return scale * jax.random.normal(key, shape, jnp.float32)


def _pack_rows(vectors, width=128):
    rows = []
    for v in vectors:
        v = jnp.asarray(v, jnp.float32).reshape(1, -1)
        rows.append(jnp.pad(v, ((0, 0), (0, width - v.shape[1]))))
    return jnp.concatenate(rows, axis=0)


def _init_enc_layer(key, D, F):
    k1, k2, k3, k4 = jax.random.split(key, 4)
    ones_D = jnp.ones((D,), jnp.float32)
    zeros_D = jnp.zeros((D,), jnp.float32)
    vec = _pack_rows([
        jnp.zeros((3 * D,), jnp.float32),   # 0 qkv_b
        zeros_D,                            # 1 attn out bias
        ones_D, zeros_D,                    # 2,3 ln1 gamma/beta
        jnp.zeros((F,), jnp.float32),       # 4 ffn b1
        zeros_D,                            # 5 ffn b2
        ones_D, zeros_D,                    # 6,7 ln2 gamma/beta
    ])
    return dict(qkv_w=_normal(k1, (D, 3 * D)), wo=_normal(k2, (D, D)),
                w1=_normal(k3, (D, F)), w2=_normal(k4, (F, D)), vec=vec)


def _init_dec_layer(key, D, F):
    k1, k2, k3, k4, k5, k6, k7 = jax.random.split(key, 7)
    ones_D = jnp.ones((D,), jnp.float32)
    zeros_D = jnp.zeros((D,), jnp.float32)
    vec = _pack_rows([
        jnp.zeros((3 * D,), jnp.float32),   # 0 qkv_b
        zeros_D,                            # 1 self-attn out bias
        ones_D, zeros_D,                    # 2,3 ln1
        zeros_D,                            # 4 cross q bias
        jnp.zeros((2 * D,), jnp.float32),   # 5 cross kv bias
        zeros_D,                            # 6 cross-attn out bias
        ones_D, zeros_D,                    # 7,8 ln2
        jnp.zeros((F,), jnp.float32),       # 9 ffn b1
        zeros_D,                            # 10 ffn b2
        ones_D, zeros_D,                    # 11,12 ln3
    ])
    return dict(qkv_w=_normal(k1, (D, 3 * D)), sa_wo=_normal(k2, (D, D)),
                q_w=_normal(k3, (D, D)), kv_w=_normal(k4, (D, 2 * D)),
                ca_wo=_normal(k5, (D, D)),
                w1=_normal(k6, (D, F)), w2=_normal(k7, (F, D)), vec=vec)


def _stack(layers):
    return {k: jnp.stack([lyr[k] for lyr in layers]) for k in layers[0]}


def init_params(key, vocab_size, d_model, num_layers, dim_ff):
    keys = jax.random.split(key, 2 * num_layers + 2)
    emb = _normal(keys[0], (vocab_size, d_model))
    enc = _stack([_init_enc_layer(keys[1 + i], d_model, dim_ff)
                  for i in range(num_layers)])
    dec = _stack([_init_dec_layer(keys[1 + num_layers + i], d_model, dim_ff)
                  for i in range(num_layers)])
    # lane-dense output projection, padded ONCE here (not per forward call)
    Vpad = max(128, ((vocab_size + 127) // 128) * 128)
    out_w = jnp.pad(_normal(keys[-1], (d_model, vocab_size)),
                    ((0, 0), (0, Vpad - vocab_size)))
    out_b = jnp.zeros((1, Vpad), jnp.float32)
    return dict(emb=emb, enc=enc, dec=dec, out_w=out_w, out_b=out_b)


# --------------------------- main --------------------------------------------

if __name__ == "__main__":
    vocab_size = 16
    d_model = 32
    nhead = 4
    num_layers = 2
    dim_ff = 64
    B, S_src, S_tgt = 2, 8, 8

    key = jax.random.PRNGKey(0)
    k_param, k_src, k_tgt = jax.random.split(key, 3)
    params = init_params(k_param, vocab_size, d_model, num_layers, dim_ff)
    src = jax.random.randint(k_src, (B, S_src), 0, vocab_size, dtype=jnp.int32)
    tgt = jax.random.randint(k_tgt, (B, S_tgt), 0, vocab_size, dtype=jnp.int32)

    out = transformer_autoencoder(params, src, tgt, nhead=nhead)
    out = jax.block_until_ready(out)
    assert out.shape == (B, S_tgt, vocab_size), out.shape
    assert jnp.all(jnp.isfinite(out))
    print("KERNEL_OK")
</pallas_src>

<mosaic_0001>
module attributes {stable_mosaic.version = 11 : i64} {
  func.func @_model_kernel(%arg0: memref<16x1xi32, #tpu.memory_space<vmem>>, %arg1: memref<16x1xi32, #tpu.memory_space<vmem>>, %arg2: memref<16x32xf32, #tpu.memory_space<vmem>>, %arg3: memref<2x32x96xf32, #tpu.memory_space<vmem>>, %arg4: memref<2x32x32xf32, #tpu.memory_space<vmem>>, %arg5: memref<2x32x64xf32, #tpu.memory_space<vmem>>, %arg6: memref<2x64x32xf32, #tpu.memory_space<vmem>>, %arg7: memref<2x8x128xf32, #tpu.memory_space<vmem>>, %arg8: memref<2x32x96xf32, #tpu.memory_space<vmem>>, %arg9: memref<2x32x32xf32, #tpu.memory_space<vmem>>, %arg10: memref<2x32x32xf32, #tpu.memory_space<vmem>>, %arg11: memref<2x32x64xf32, #tpu.memory_space<vmem>>, %arg12: memref<2x32x32xf32, #tpu.memory_space<vmem>>, %arg13: memref<2x32x64xf32, #tpu.memory_space<vmem>>, %arg14: memref<2x64x32xf32, #tpu.memory_space<vmem>>, %arg15: memref<2x13x128xf32, #tpu.memory_space<vmem>>, %arg16: memref<32x128xf32, #tpu.memory_space<vmem>>, %arg17: memref<1x128xf32, #tpu.memory_space<vmem>>, %arg18: memref<16x128xf32, #tpu.memory_space<vmem>>) attributes {dimension_semantics = [], scalar_prefetch = 0 : i64, scratch_operands = 0 : i64, tpu.core_type = #tpu.core_type<tc>} {
    %c0 = arith.constant 0 : index
    %c0_0 = arith.constant 0 : index
    %0 = vector.load %arg0[%c0, %c0_0] : memref<16x1xi32, #tpu.memory_space<vmem>>, vector<16x1xi32>
    %1 = tpu.iota {dimensions = array<i32: 1>} : vector<16x16xi32>
    %2 = vector.broadcast %0 : vector<16x1xi32> to vector<16x16xi32>
    %3 = arith.cmpi eq, %1, %2 : vector<16x16xi32>
    %4 = arith.extui %3 : vector<16x16xi1> to vector<16x16xi32>
    %5 = arith.sitofp %4 : vector<16x16xi32> to vector<16x16xf32>
    %c0_1 = arith.constant 0 : index
    %c0_2 = arith.constant 0 : index
    %6 = vector.load %arg2[%c0_1, %c0_2] : memref<16x32xf32, #tpu.memory_space<vmem>>, vector<16x32xf32>
    %cst = arith.constant dense<0.000000e+00> : vector<16x32xf32>
    %7 = tpu.matmul %5, %6, %cst {dimension_numbers = #tpu.dot_dimension_numbers<[1], [0], [0], [1], [0, 0, 1, 1], [], []>} : vector<16x16xf32>, vector<16x32xf32>, vector<16x32xf32> -> vector<16x32xf32>
    %c0_3 = arith.constant 0 : index
    %c0_4 = arith.constant 0 : index
    %c0_5 = arith.constant 0 : index
    %8 = vector.load %arg7[%c0_3, %c0_4, %c0_5] : memref<2x8x128xf32, #tpu.memory_space<vmem>>, vector<1x8x128xf32>
    %9 = vector.shape_cast %8 : vector<1x8x128xf32> to vector<8x128xf32>
    %10 = vector.extract_strided_slice %9 {offsets = [0, 0], sizes = [1, 96], strides = [1, 1]} : vector<8x128xf32> to vector<1x96xf32>
    %11 = vector.extract_strided_slice %9 {offsets = [1, 0], sizes = [1, 32], strides = [1, 1]} : vector<8x128xf32> to vector<1x32xf32>
    %12 = vector.extract_strided_slice %9 {offsets = [2, 0], sizes = [1, 32], strides = [1, 1]} : vector<8x128xf32> to vector<1x32xf32>
    %13 = vector.extract_strided_slice %9 {offsets = [3, 0], sizes = [1, 32], strides = [1, 1]} : vector<8x128xf32> to vector<1x32xf32>
    %14 = vector.extract_strided_slice %9 {offsets = [4, 0], sizes = [1, 64], strides = [1, 1]} : vector<8x128xf32> to vector<1x64xf32>
    %15 = vector.extract_strided_slice %9 {offsets = [5, 0], sizes = [1, 32], strides = [1, 1]} : vector<8x128xf32> to vector<1x32xf32>
    %16 = vector.extract_strided_slice %9 {offsets = [6, 0], sizes = [1, 32], strides = [1, 1]} : vector<8x128xf32> to vector<1x32xf32>
    %17 = vector.extract_strided_slice %9 {offsets = [7, 0], sizes = [1, 32], strides = [1, 1]} : vector<8x128xf32> to vector<1x32xf32>
    %c0_6 = arith.constant 0 : index
    %c0_7 = arith.constant 0 : index
    %c0_8 = arith.constant 0 : index
    %18 = vector.load %arg3[%c0_6, %c0_7, %c0_8] : memref<2x32x96xf32, #tpu.memory_space<vmem>>, vector<1x32x96xf32>
    %19 = vector.shape_cast %18 : vector<1x32x96xf32> to vector<32x96xf32>
    %cst_9 = arith.constant dense<0.000000e+00> : vector<16x96xf32>
    %20 = tpu.matmul %7, %19, %cst_9 {dimension_numbers = #tpu.dot_dimension_numbers<[1], [0], [0], [1], [0, 0, 1, 1], [], []>} : vector<16x32xf32>, vector<32x96xf32>, vector<16x96xf32> -> vector<16x96xf32>
    %21 = vector.broadcast %10 : vector<1x96xf32> to vector<16x96xf32>
    %22 = arith.addf %20, %21 : vector<16x96xf32>
    %c0_10 = arith.constant 0 : index
    %c0_11 = arith.constant 0 : index
    %c0_12 = arith.constant 0 : index
    %23 = vector.load %arg4[%c0_10, %c0_11, %c0_12] : memref<2x32x32xf32, #tpu.memory_space<vmem>>, vector<1x32x32xf32>
    %24 = vector.shape_cast %23 : vector<1x32x32xf32> to vector<32x32xf32>
    %25 = vector.extract_strided_slice %22 {offsets = [0, 0], sizes = [16, 8], strides = [1, 1]} : vector<16x96xf32> to vector<16x8xf32>
    %26 = vector.shape_cast %25 : vector<16x8xf32> to vector<2x8x8xf32>
    %27 = vector.extract_strided_slice %22 {offsets = [0, 8], sizes = [16, 8], strides = [1, 1]} : vector<16x96xf32> to vector<16x8xf32>
    %28 = vector.shape_cast %27 : vector<16x8xf32> to vector<2x8x8xf32>
    %29 = vector.extract_strided_slice %22 {offsets = [0, 16], sizes = [16, 8], strides = [1, 1]} : vector<16x96xf32> to vector<16x8xf32>
    %30 = vector.shape_cast %29 : vector<16x8xf32> to vector<2x8x8xf32>
    %31 = vector.extract_strided_slice %22 {offsets = [0, 24], sizes = [16, 8], strides = [1, 1]} : vector<16x96xf32> to vector<16x8xf32>
    %32 = vector.shape_cast %31 : vector<16x8xf32> to vector<2x8x8xf32>
    %33 = tpu.concatenate %26, %28, %30, %32 in 0 : vector<2x8x8xf32>, vector<2x8x8xf32>, vector<2x8x8xf32>, vector<2x8x8xf32> -> vector<8x8x8xf32>
    %34 = vector.extract_strided_slice %22 {offsets = [0, 32], sizes = [16, 8], strides = [1, 1]} : vector<16x96xf32> to vector<16x8xf32>
    %35 = vector.shape_cast %34 : vector<16x8xf32> to vector<2x8x8xf32>
    %36 = vector.extract_strided_slice %22 {offsets = [0, 40], sizes = [16, 8], strides = [1, 1]} : vector<16x96xf32> to vector<16x8xf32>
    %37 = vector.shape_cast %36 : vector<16x8xf32> to vector<2x8x8xf32>
    %38 = vector.extract_strided_slice %22 {offsets = [0, 48], sizes = [16, 8], strides = [1, 1]} : vector<16x96xf32> to vector<16x8xf32>
    %39 = vector.shape_cast %38 : vector<16x8xf32> to vector<2x8x8xf32>
    %40 = vector.extract_strided_slice %22 {offsets = [0, 56], sizes = [16, 8], strides = [1, 1]} : vector<16x96xf32> to vector<16x8xf32>
    %41 = vector.shape_cast %40 : vector<16x8xf32> to vector<2x8x8xf32>
    %42 = tpu.concatenate %35, %37, %39, %41 in 0 : vector<2x8x8xf32>, vector<2x8x8xf32>, vector<2x8x8xf32>, vector<2x8x8xf32> -> vector<8x8x8xf32>
    %43 = vector.extract_strided_slice %22 {offsets = [0, 64], sizes = [16, 8], strides = [1, 1]} : vector<16x96xf32> to vector<16x8xf32>
    %44 = vector.shape_cast %43 : vector<16x8xf32> to vector<2x8x8xf32>
    %45 = vector.extract_strided_slice %22 {offsets = [0, 72], sizes = [16, 8], strides = [1, 1]} : vector<16x96xf32> to vector<16x8xf32>
    %46 = vector.shape_cast %45 : vector<16x8xf32> to vector<2x8x8xf32>
    %47 = vector.extract_strided_slice %22 {offsets = [0, 80], sizes = [16, 8], strides = [1, 1]} : vector<16x96xf32> to vector<16x8xf32>
    %48 = vector.shape_cast %47 : vector<16x8xf32> to vector<2x8x8xf32>
    %49 = vector.extract_strided_slice %22 {offsets = [0, 88], sizes = [16, 8], strides = [1, 1]} : vector<16x96xf32> to vector<16x8xf32>
    %50 = vector.shape_cast %49 : vector<16x8xf32> to vector<2x8x8xf32>
    %51 = tpu.concatenate %44, %46, %48, %50 in 0 : vector<2x8x8xf32>, vector<2x8x8xf32>, vector<2x8x8xf32>, vector<2x8x8xf32> -> vector<8x8x8xf32>
    "tpu.trace_start"() <{level = 10 : i32, message = "nqd,nkd->nqk"}> : () -> ()
    %cst_13 = arith.constant dense<0.000000e+00> : vector<8x8x8xf32>
    %52 = tpu.matmul %33, %42, %cst_13 {dimension_numbers = #tpu.dot_dimension_numbers<[2], [2], [1], [1], [0, 0, 0, 1, 1, 1], [0], [0]>} : vector<8x8x8xf32>, vector<8x8x8xf32>, vector<8x8x8xf32> -> vector<8x8x8xf32>
    "tpu.trace_stop"() : () -> ()
    %cst_14 = arith.constant 0.353553385 : f32
    %53 = vector.broadcast %cst_14 : f32 to vector<8x8x8xf32>
    %54 = arith.mulf %52, %53 : vector<8x8x8xf32>
    %cst_15 = arith.constant dense<0xFF800000> : vector<8x8xf32>
    %55 = vector.multi_reduction <maximumf>, %54, %cst_15 [2] : vector<8x8x8xf32> to vector<8x8xf32>
    %56 = vector.shape_cast %55 : vector<8x8xf32> to vector<8x8x1xf32>
    %57 = vector.broadcast %56 : vector<8x8x1xf32> to vector<8x8x8xf32>
    %58 = arith.subf %54, %57 : vector<8x8x8xf32>
    %59 = math.exp %58 : vector<8x8x8xf32>
    %cst_16 = arith.constant dense<0.000000e+00> : vector<8x8xf32>
    %60 = vector.multi_reduction <add>, %59, %cst_16 [2] : vector<8x8x8xf32> to vector<8x8xf32>
    %61 = vector.shape_cast %60 : vector<8x8xf32> to vector<8x8x1xf32>
    %62 = tpu.reciprocal %61 {approx = true} : vector<8x8x1xf32> -> vector<8x8x1xf32>
    %63 = vector.broadcast %62 : vector<8x8x1xf32> to vector<8x8x8xf32>
    %64 = arith.mulf %59, %63 : vector<8x8x8xf32>
    "tpu.trace_start"() <{level = 10 : i32, message = "nqk,nkd->nqd"}> : () -> ()
    %cst_17 = arith.constant dense<0.000000e+00> : vector<8x8x8xf32>
    %65 = tpu.matmul %64, %51, %cst_17 {dimension_numbers = #tpu.dot_dimension_numbers<[2], [1], [1], [2], [0, 0, 0, 1, 1, 2], [0], [0]>} : vector<8x8x8xf32>, vector<8x8x8xf32>, vector<8x8x8xf32> -> vector<8x8x8xf32>
    "tpu.trace_stop"() : () -> ()
    %66 = vector.extract_strided_slice %65 {offsets = [0, 0, 0], sizes = [2, 8, 8], strides = [1, 1, 1]} : vector<8x8x8xf32> to vector<2x8x8xf32>
    %67 = vector.shape_cast %66 : vector<2x8x8xf32> to vector<16x8xf32>
    %68 = vector.extract_strided_slice %65 {offsets = [2, 0, 0], sizes = [2, 8, 8], strides = [1, 1, 1]} : vector<8x8x8xf32> to vector<2x8x8xf32>
    %69 = vector.shape_cast %68 : vector<2x8x8xf32> to vector<16x8xf32>
    %70 = vector.extract_strided_slice %65 {offsets = [4, 0, 0], sizes = [2, 8, 8], strides = [1, 1, 1]} : vector<8x8x8xf32> to vector<2x8x8xf32>
    %71 = vector.shape_cast %70 : vector<2x8x8xf32> to vector<16x8xf32>
    %72 = vector.extract_strided_slice %65 {offsets = [6, 0, 0], sizes = [2, 8, 8], strides = [1, 1, 1]} : vector<8x8x8xf32> to vector<2x8x8xf32>
    %73 = vector.shape_cast %72 : vector<2x8x8xf32> to vector<16x8xf32>
    %74 = tpu.concatenate %67, %69, %71, %73 in 1 : vector<16x8xf32>, vector<16x8xf32>, vector<16x8xf32>, vector<16x8xf32> -> vector<16x32xf32>
    %cst_18 = arith.constant dense<0.000000e+00> : vector<16x32xf32>
    %75 = tpu.matmul %74, %24, %cst_18 {dimension_numbers = #tpu.dot_dimension_numbers<[1], [0], [0], [1], [0, 0, 1, 1], [], []>} : vector<16x32xf32>, vector<32x32xf32>, vector<16x32xf32> -> vector<16x32xf32>
    %76 = vector.broadcast %11 : vector<1x32xf32> to vector<16x32xf32>
    %77 = arith.addf %75, %76 : vector<16x32xf32>
    %78 = arith.addf %7, %77 : vector<16x32xf32>
    %cst_19 = arith.constant dense<0.000000e+00> : vector<16xf32>
    %79 = vector.multi_reduction <add>, %78, %cst_19 [1] : vector<16x32xf32> to vector<16xf32>
    %80 = vector.shape_cast %79 : vector<16xf32> to vector<16x1xf32>
    %cst_20 = arith.constant 3.200000e+01 : f32
    %81 = vector.broadcast %cst_20 : f32 to vector<16x1xf32>
    %82 = arith.divf %80, %81 : vector<16x1xf32>
    %83 = arith.mulf %78, %78 : vector<16x32xf32>
    %cst_21 = arith.constant dense<0.000000e+00> : vector<16xf32>
    %84 = vector.multi_reduction <add>, %83, %cst_21 [1] : vector<16x32xf32> to vector<16xf32>
    %85 = vector.shape_cast %84 : vector<16xf32> to vector<16x1xf32>
    %cst_22 = arith.constant 3.200000e+01 : f32
    %86 = vector.broadcast %cst_22 : f32 to vector<16x1xf32>
    %87 = arith.divf %85, %86 : vector<16x1xf32>
    %88 = arith.mulf %82, %82 : vector<16x1xf32>
    %89 = arith.subf %87, %88 : vector<16x1xf32>
    %90 = vector.broadcast %82 : vector<16x1xf32> to vector<16x32xf32>
    %91 = arith.subf %78, %90 : vector<16x32xf32>
    %cst_23 = arith.constant 9.99999974E-6 : f32
    %92 = vector.broadcast %cst_23 : f32 to vector<16x1xf32>
    %93 = arith.addf %89, %92 : vector<16x1xf32>
    %94 = math.rsqrt %93 : vector<16x1xf32>
    %95 = vector.broadcast %94 : vector<16x1xf32> to vector<16x32xf32>
    %96 = arith.mulf %91, %95 : vector<16x32xf32>
    %97 = vector.broadcast %12 : vector<1x32xf32> to vector<16x32xf32>
    %98 = arith.mulf %96, %97 : vector<16x32xf32>
    %99 = vector.broadcast %13 : vector<1x32xf32> to vector<16x32xf32>
    %100 = arith.addf %98, %99 : vector<16x32xf32>
    %c0_24 = arith.constant 0 : index
    %c0_25 = arith.constant 0 : index
    %c0_26 = arith.constant 0 : index
    %101 = vector.load %arg5[%c0_24, %c0_25, %c0_26] : memref<2x32x64xf32, #tpu.memory_space<vmem>>, vector<1x32x64xf32>
    %102 = vector.shape_cast %101 : vector<1x32x64xf32> to vector<32x64xf32>
    %c0_27 = arith.constant 0 : index
    %c0_28 = arith.constant 0 : index
    %c0_29 = arith.constant 0 : index
    %103 = vector.load %arg6[%c0_27, %c0_28, %c0_29] : memref<2x64x32xf32, #tpu.memory_space<vmem>>, vector<1x64x32xf32>
    %104 = vector.shape_cast %103 : vector<1x64x32xf32> to vector<64x32xf32>
    %cst_30 = arith.constant dense<0.000000e+00> : vector<16x64xf32>
    %105 = tpu.matmul %100, %102, %cst_30 {dimension_numbers = #tpu.dot_dimension_numbers<[1], [0], [0], [1], [0, 0, 1, 1], [], []>} : vector<16x32xf32>, vector<32x64xf32>, vector<16x64xf32> -> vector<16x64xf32>
    %106 = vector.broadcast %14 : vector<1x64xf32> to vector<16x64xf32>
    %107 = arith.addf %105, %106 : vector<16x64xf32>
    %cst_31 = arith.constant 0.000000e+00 : f32
    %108 = vector.broadcast %cst_31 : f32 to vector<16x64xf32>
    %109 = arith.maximumf %107, %108 : vector<16x64xf32>
    %cst_32 = arith.constant dense<0.000000e+00> : vector<16x32xf32>
    %110 = tpu.matmul %109, %104, %cst_32 {dimension_numbers = #tpu.dot_dimension_numbers<[1], [0], [0], [1], [0, 0, 1, 1], [], []>} : vector<16x64xf32>, vector<64x32xf32>, vector<16x32xf32> -> vector<16x32xf32>
    %111 = vector.broadcast %15 : vector<1x32xf32> to vector<16x32xf32>
    %112 = arith.addf %110, %111 : vector<16x32xf32>
    %113 = arith.addf %100, %112 : vector<16x32xf32>
    %cst_33 = arith.constant dense<0.000000e+00> : vector<16xf32>
    %114 = vector.multi_reduction <add>, %113, %cst_33 [1] : vector<16x32xf32> to vector<16xf32>
    %115 = vector.shape_cast %114 : vector<16xf32> to vector<16x1xf32>
    %cst_34 = arith.constant 3.200000e+01 : f32
    %116 = vector.broadcast %cst_34 : f32 to vector<16x1xf32>
    %117 = arith.divf %115, %116 : vector<16x1xf32>
    %118 = arith.mulf %113, %113 : vector<16x32xf32>
    %cst_35 = arith.constant dense<0.000000e+00> : vector<16xf32>
    %119 = vector.multi_reduction <add>, %118, %cst_35 [1] : vector<16x32xf32> to vector<16xf32>
    %120 = vector.shape_cast %119 : vector<16xf32> to vector<16x1xf32>
    %cst_36 = arith.constant 3.200000e+01 : f32
    %121 = vector.broadcast %cst_36 : f32 to vector<16x1xf32>
    %122 = arith.divf %120, %121 : vector<16x1xf32>
    %123 = arith.mulf %117, %117 : vector<16x1xf32>
    %124 = arith.subf %122, %123 : vector<16x1xf32>
    %125 = vector.broadcast %117 : vector<16x1xf32> to vector<16x32xf32>
    %126 = arith.subf %113, %125 : vector<16x32xf32>
    %cst_37 = arith.constant 9.99999974E-6 : f32
    %127 = vector.broadcast %cst_37 : f32 to vector<16x1xf32>
    %128 = arith.addf %124, %127 : vector<16x1xf32>
    %129 = math.rsqrt %128 : vector<16x1xf32>
    %130 = vector.broadcast %129 : vector<16x1xf32> to vector<16x32xf32>
    %131 = arith.mulf %126, %130 : vector<16x32xf32>
    %132 = vector.broadcast %16 : vector<1x32xf32> to vector<16x32xf32>
    %133 = arith.mulf %131, %132 : vector<16x32xf32>
    %134 = vector.broadcast %17 : vector<1x32xf32> to vector<16x32xf32>
    %135 = arith.addf %133, %134 : vector<16x32xf32>
    %c1 = arith.constant 1 : index
    %c0_38 = arith.constant 0 : index
    %c0_39 = arith.constant 0 : index
    %136 = vector.load %arg7[%c1, %c0_38, %c0_39] : memref<2x8x128xf32, #tpu.memory_space<vmem>>, vector<1x8x128xf32>
    %137 = vector.shape_cast %136 : vector<1x8x128xf32> to vector<8x128xf32>
    %138 = vector.extract_strided_slice %137 {offsets = [0, 0], sizes = [1, 96], strides = [1, 1]} : vector<8x128xf32> to vector<1x96xf32>
    %139 = vector.extract_strided_slice %137 {offsets = [1, 0], sizes = [1, 32], strides = [1, 1]} : vector<8x128xf32> to vector<1x32xf32>
    %140 = vector.extract_strided_slice %137 {offsets = [2, 0], sizes = [1, 32], strides = [1, 1]} : vector<8x128xf32> to vector<1x32xf32>
    %141 = vector.extract_strided_slice %137 {offsets = [3, 0], sizes = [1, 32], strides = [1, 1]} : vector<8x128xf32> to vector<1x32xf32>
    %142 = vector.extract_strided_slice %137 {offsets = [4, 0], sizes = [1, 64], strides = [1, 1]} : vector<8x128xf32> to vector<1x64xf32>
    %143 = vector.extract_strided_slice %137 {offsets = [5, 0], sizes = [1, 32], strides = [1, 1]} : vector<8x128xf32> to vector<1x32xf32>
    %144 = vector.extract_strided_slice %137 {offsets = [6, 0], sizes = [1, 32], strides = [1, 1]} : vector<8x128xf32> to vector<1x32xf32>
    %145 = vector.extract_strided_slice %137 {offsets = [7, 0], sizes = [1, 32], strides = [1, 1]} : vector<8x128xf32> to vector<1x32xf32>
    %c1_40 = arith.constant 1 : index
    %c0_41 = arith.constant 0 : index
    %c0_42 = arith.constant 0 : index
    %146 = vector.load %arg3[%c1_40, %c0_41, %c0_42] : memref<2x32x96xf32, #tpu.memory_space<vmem>>, vector<1x32x96xf32>
    %147 = vector.shape_cast %146 : vector<1x32x96xf32> to vector<32x96xf32>
    %cst_43 = arith.constant dense<0.000000e+00> : vector<16x96xf32>
    %148 = tpu.matmul %135, %147, %cst_43 {dimension_numbers = #tpu.dot_dimension_numbers<[1], [0], [0], [1], [0, 0, 1, 1], [], []>} : vector<16x32xf32>, vector<32x96xf32>, vector<16x96xf32> -> vector<16x96xf32>
    %149 = vector.broadcast %138 : vector<1x96xf32> to vector<16x96xf32>
    %150 = arith.addf %148, %149 : vector<16x96xf32>
    %c1_44 = arith.constant 1 : index
    %c0_45 = arith.constant 0 : index
    %c0_46 = arith.constant 0 : index
    %151 = vector.load %arg4[%c1_44, %c0_45, %c0_46] : memref<2x32x32xf32, #tpu.memory_space<vmem>>, vector<1x32x32xf32>
    %152 = vector.shape_cast %151 : vector<1x32x32xf32> to vector<32x32xf32>
    %153 = vector.extract_strided_slice %150 {offsets = [0, 0], sizes = [16, 8], strides = [1, 1]} : vector<16x96xf32> to vector<16x8xf32>
    %154 = vector.shape_cast %153 : vector<16x8xf32> to vector<2x8x8xf32>
    %155 = vector.extract_strided_slice %150 {offsets = [0, 8], sizes = [16, 8], strides = [1, 1]} : vector<16x96xf32> to vector<16x8xf32>
    %156 = vector.shape_cast %155 : vector<16x8xf32> to vector<2x8x8xf32>
    %157 = vector.extract_strided_slice %150 {offsets = [0, 16], sizes = [16, 8], strides = [1, 1]} : vector<16x96xf32> to vector<16x8xf32>
    %158 = vector.shape_cast %157 : vector<16x8xf32> to vector<2x8x8xf32>
    %159 = vector.extract_strided_slice %150 {offsets = [0, 24], sizes = [16, 8], strides = [1, 1]} : vector<16x96xf32> to vector<16x8xf32>
    %160 = vector.shape_cast %159 : vector<16x8xf32> to vector<2x8x8xf32>
    %161 = tpu.concatenate %154, %156, %158, %160 in 0 : vector<2x8x8xf32>, vector<2x8x8xf32>, vector<2x8x8xf32>, vector<2x8x8xf32> -> vector<8x8x8xf32>
    %162 = vector.extract_strided_slice %150 {offsets = [0, 32], sizes = [16, 8], strides = [1, 1]} : vector<16x96xf32> to vector<16x8xf32>
    %163 = vector.shape_cast %162 : vector<16x8xf32> to vector<2x8x8xf32>
    %164 = vector.extract_strided_slice %150 {offsets = [0, 40], sizes = [16, 8], strides = [1, 1]} : vector<16x96xf32> to vector<16x8xf32>
    %165 = vector.shape_cast %164 : vector<16x8xf32> to vector<2x8x8xf32>
    %166 = vector.extract_strided_slice %150 {offsets = [0, 48], sizes = [16, 8], strides = [1, 1]} : vector<16x96xf32> to vector<16x8xf32>
    %167 = vector.shape_cast %166 : vector<16x8xf32> to vector<2x8x8xf32>
    %168 = vector.extract_strided_slice %150 {offsets = [0, 56], sizes = [16, 8], strides = [1, 1]} : vector<16x96xf32> to vector<16x8xf32>
    %169 = vector.shape_cast %168 : vector<16x8xf32> to vector<2x8x8xf32>
    %170 = tpu.concatenate %163, %165, %167, %169 in 0 : vector<2x8x8xf32>, vector<2x8x8xf32>, vector<2x8x8xf32>, vector<2x8x8xf32> -> vector<8x8x8xf32>
    %171 = vector.extract_strided_slice %150 {offsets = [0, 64], sizes = [16, 8], strides = [1, 1]} : vector<16x96xf32> to vector<16x8xf32>
    %172 = vector.shape_cast %171 : vector<16x8xf32> to vector<2x8x8xf32>
    %173 = vector.extract_strided_slice %150 {offsets = [0, 72], sizes = [16, 8], strides = [1, 1]} : vector<16x96xf32> to vector<16x8xf32>
    %174 = vector.shape_cast %173 : vector<16x8xf32> to vector<2x8x8xf32>
    %175 = vector.extract_strided_slice %150 {offsets = [0, 80], sizes = [16, 8], strides = [1, 1]} : vector<16x96xf32> to vector<16x8xf32>
    %176 = vector.shape_cast %175 : vector<16x8xf32> to vector<2x8x8xf32>
    %177 = vector.extract_strided_slice %150 {offsets = [0, 88], sizes = [16, 8], strides = [1, 1]} : vector<16x96xf32> to vector<16x8xf32>
    %178 = vector.shape_cast %177 : vector<16x8xf32> to vector<2x8x8xf32>
    %179 = tpu.concatenate %172, %174, %176, %178 in 0 : vector<2x8x8xf32>, vector<2x8x8xf32>, vector<2x8x8xf32>, vector<2x8x8xf32> -> vector<8x8x8xf32>
    "tpu.trace_start"() <{level = 10 : i32, message = "nqd,nkd->nqk"}> : () -> ()
    %cst_47 = arith.constant dense<0.000000e+00> : vector<8x8x8xf32>
    %180 = tpu.matmul %161, %170, %cst_47 {dimension_numbers = #tpu.dot_dimension_numbers<[2], [2], [1], [1], [0, 0, 0, 1, 1, 1], [0], [0]>} : vector<8x8x8xf32>, vector<8x8x8xf32>, vector<8x8x8xf32> -> vector<8x8x8xf32>
    "tpu.trace_stop"() : () -> ()
    %cst_48 = arith.constant 0.353553385 : f32
    %181 = vector.broadcast %cst_48 : f32 to vector<8x8x8xf32>
    %182 = arith.mulf %180, %181 : vector<8x8x8xf32>
    %cst_49 = arith.constant dense<0xFF800000> : vector<8x8xf32>
    %183 = vector.multi_reduction <maximumf>, %182, %cst_49 [2] : vector<8x8x8xf32> to vector<8x8xf32>
    %184 = vector.shape_cast %183 : vector<8x8xf32> to vector<8x8x1xf32>
    %185 = vector.broadcast %184 : vector<8x8x1xf32> to vector<8x8x8xf32>
    %186 = arith.subf %182, %185 : vector<8x8x8xf32>
    %187 = math.exp %186 : vector<8x8x8xf32>
    %cst_50 = arith.constant dense<0.000000e+00> : vector<8x8xf32>
    %188 = vector.multi_reduction <add>, %187, %cst_50 [2] : vector<8x8x8xf32> to vector<8x8xf32>
    %189 = vector.shape_cast %188 : vector<8x8xf32> to vector<8x8x1xf32>
    %190 = tpu.reciprocal %189 {approx = true} : vector<8x8x1xf32> -> vector<8x8x1xf32>
    %191 = vector.broadcast %190 : vector<8x8x1xf32> to vector<8x8x8xf32>
    %192 = arith.mulf %187, %191 : vector<8x8x8xf32>
    "tpu.trace_start"() <{level = 10 : i32, message = "nqk,nkd->nqd"}> : () -> ()
    %cst_51 = arith.constant dense<0.000000e+00> : vector<8x8x8xf32>
    %193 = tpu.matmul %192, %179, %cst_51 {dimension_numbers = #tpu.dot_dimension_numbers<[2], [1], [1], [2], [0, 0, 0, 1, 1, 2], [0], [0]>} : vector<8x8x8xf32>, vector<8x8x8xf32>, vector<8x8x8xf32> -> vector<8x8x8xf32>
    "tpu.trace_stop"() : () -> ()
    %194 = vector.extract_strided_slice %193 {offsets = [0, 0, 0], sizes = [2, 8, 8], strides = [1, 1, 1]} : vector<8x8x8xf32> to vector<2x8x8xf32>
    %195 = vector.shape_cast %194 : vector<2x8x8xf32> to vector<16x8xf32>
    %196 = vector.extract_strided_slice %193 {offsets = [2, 0, 0], sizes = [2, 8, 8], strides = [1, 1, 1]} : vector<8x8x8xf32> to vector<2x8x8xf32>
    %197 = vector.shape_cast %196 : vector<2x8x8xf32> to vector<16x8xf32>
    %198 = vector.extract_strided_slice %193 {offsets = [4, 0, 0], sizes = [2, 8, 8], strides = [1, 1, 1]} : vector<8x8x8xf32> to vector<2x8x8xf32>
    %199 = vector.shape_cast %198 : vector<2x8x8xf32> to vector<16x8xf32>
    %200 = vector.extract_strided_slice %193 {offsets = [6, 0, 0], sizes = [2, 8, 8], strides = [1, 1, 1]} : vector<8x8x8xf32> to vector<2x8x8xf32>
    %201 = vector.shape_cast %200 : vector<2x8x8xf32> to vector<16x8xf32>
    %202 = tpu.concatenate %195, %197, %199, %201 in 1 : vector<16x8xf32>, vector<16x8xf32>, vector<16x8xf32>, vector<16x8xf32> -> vector<16x32xf32>
    %cst_52 = arith.constant dense<0.000000e+00> : vector<16x32xf32>
    %203 = tpu.matmul %202, %152, %cst_52 {dimension_numbers = #tpu.dot_dimension_numbers<[1], [0], [0], [1], [0, 0, 1, 1], [], []>} : vector<16x32xf32>, vector<32x32xf32>, vector<16x32xf32> -> vector<16x32xf32>
    %204 = vector.broadcast %139 : vector<1x32xf32> to vector<16x32xf32>
    %205 = arith.addf %203, %204 : vector<16x32xf32>
    %206 = arith.addf %135, %205 : vector<16x32xf32>
    %cst_53 = arith.constant dense<0.000000e+00> : vector<16xf32>
    %207 = vector.multi_reduction <add>, %206, %cst_53 [1] : vector<16x32xf32> to vector<16xf32>
    %208 = vector.shape_cast %207 : vector<16xf32> to vector<16x1xf32>
    %cst_54 = arith.constant 3.200000e+01 : f32
    %209 = vector.broadcast %cst_54 : f32 to vector<16x1xf32>
    %210 = arith.divf %208, %209 : vector<16x1xf32>
    %211 = arith.mulf %206, %206 : vector<16x32xf32>
    %cst_55 = arith.constant dense<0.000000e+00> : vector<16xf32>
    %212 = vector.multi_reduction <add>, %211, %cst_55 [1] : vector<16x32xf32> to vector<16xf32>
    %213 = vector.shape_cast %212 : vector<16xf32> to vector<16x1xf32>
    %cst_56 = arith.constant 3.200000e+01 : f32
    %214 = vector.broadcast %cst_56 : f32 to vector<16x1xf32>
    %215 = arith.divf %213, %214 : vector<16x1xf32>
    %216 = arith.mulf %210, %210 : vector<16x1xf32>
    %217 = arith.subf %215, %216 : vector<16x1xf32>
    %218 = vector.broadcast %210 : vector<16x1xf32> to vector<16x32xf32>
    %219 = arith.subf %206, %218 : vector<16x32xf32>
    %cst_57 = arith.constant 9.99999974E-6 : f32
    %220 = vector.broadcast %cst_57 : f32 to vector<16x1xf32>
    %221 = arith.addf %217, %220 : vector<16x1xf32>
    %222 = math.rsqrt %221 : vector<16x1xf32>
    %223 = vector.broadcast %222 : vector<16x1xf32> to vector<16x32xf32>
    %224 = arith.mulf %219, %223 : vector<16x32xf32>
    %225 = vector.broadcast %140 : vector<1x32xf32> to vector<16x32xf32>
    %226 = arith.mulf %224, %225 : vector<16x32xf32>
    %227 = vector.broadcast %141 : vector<1x32xf32> to vector<16x32xf32>
    %228 = arith.addf %226, %227 : vector<16x32xf32>
    %c1_58 = arith.constant 1 : index
    %c0_59 = arith.constant 0 : index
    %c0_60 = arith.constant 0 : index
    %229 = vector.load %arg5[%c1_58, %c0_59, %c0_60] : memref<2x32x64xf32, #tpu.memory_space<vmem>>, vector<1x32x64xf32>
    %230 = vector.shape_cast %229 : vector<1x32x64xf32> to vector<32x64xf32>
    %c1_61 = arith.constant 1 : index
    %c0_62 = arith.constant 0 : index
    %c0_63 = arith.constant 0 : index
    %231 = vector.load %arg6[%c1_61, %c0_62, %c0_63] : memref<2x64x32xf32, #tpu.memory_space<vmem>>, vector<1x64x32xf32>
    %232 = vector.shape_cast %231 : vector<1x64x32xf32> to vector<64x32xf32>
    %cst_64 = arith.constant dense<0.000000e+00> : vector<16x64xf32>
    %233 = tpu.matmul %228, %230, %cst_64 {dimension_numbers = #tpu.dot_dimension_numbers<[1], [0], [0], [1], [0, 0, 1, 1], [], []>} : vector<16x32xf32>, vector<32x64xf32>, vector<16x64xf32> -> vector<16x64xf32>
    %234 = vector.broadcast %142 : vector<1x64xf32> to vector<16x64xf32>
    %235 = arith.addf %233, %234 : vector<16x64xf32>
    %cst_65 = arith.constant 0.000000e+00 : f32
    %236 = vector.broadcast %cst_65 : f32 to vector<16x64xf32>
    %237 = arith.maximumf %235, %236 : vector<16x64xf32>
    %cst_66 = arith.constant dense<0.000000e+00> : vector<16x32xf32>
    %238 = tpu.matmul %237, %232, %cst_66 {dimension_numbers = #tpu.dot_dimension_numbers<[1], [0], [0], [1], [0, 0, 1, 1], [], []>} : vector<16x64xf32>, vector<64x32xf32>, vector<16x32xf32> -> vector<16x32xf32>
    %239 = vector.broadcast %143 : vector<1x32xf32> to vector<16x32xf32>
    %240 = arith.addf %238, %239 : vector<16x32xf32>
    %241 = arith.addf %228, %240 : vector<16x32xf32>
    %cst_67 = arith.constant dense<0.000000e+00> : vector<16xf32>
    %242 = vector.multi_reduction <add>, %241, %cst_67 [1] : vector<16x32xf32> to vector<16xf32>
    %243 = vector.shape_cast %242 : vector<16xf32> to vector<16x1xf32>
    %cst_68 = arith.constant 3.200000e+01 : f32
    %244 = vector.broadcast %cst_68 : f32 to vector<16x1xf32>
    %245 = arith.divf %243, %244 : vector<16x1xf32>
    %246 = arith.mulf %241, %241 : vector<16x32xf32>
    %cst_69 = arith.constant dense<0.000000e+00> : vector<16xf32>
    %247 = vector.multi_reduction <add>, %246, %cst_69 [1] : vector<16x32xf32> to vector<16xf32>
    %248 = vector.shape_cast %247 : vector<16xf32> to vector<16x1xf32>
    %cst_70 = arith.constant 3.200000e+01 : f32
    %249 = vector.broadcast %cst_70 : f32 to vector<16x1xf32>
    %250 = arith.divf %248, %249 : vector<16x1xf32>
    %251 = arith.mulf %245, %245 : vector<16x1xf32>
    %252 = arith.subf %250, %251 : vector<16x1xf32>
    %253 = vector.broadcast %245 : vector<16x1xf32> to vector<16x32xf32>
    %254 = arith.subf %241, %253 : vector<16x32xf32>
    %cst_71 = arith.constant 9.99999974E-6 : f32
    %255 = vector.broadcast %cst_71 : f32 to vector<16x1xf32>
    %256 = arith.addf %252, %255 : vector<16x1xf32>
    %257 = math.rsqrt %256 : vector<16x1xf32>
    %258 = vector.broadcast %257 : vector<16x1xf32> to vector<16x32xf32>
    %259 = arith.mulf %254, %258 : vector<16x32xf32>
    %260 = vector.broadcast %144 : vector<1x32xf32> to vector<16x32xf32>
    %261 = arith.mulf %259, %260 : vector<16x32xf32>
    %262 = vector.broadcast %145 : vector<1x32xf32> to vector<16x32xf32>
    %263 = arith.addf %261, %262 : vector<16x32xf32>
    %c0_72 = arith.constant 0 : index
    %c0_73 = arith.constant 0 : index
    %264 = vector.load %arg1[%c0_72, %c0_73] : memref<16x1xi32, #tpu.memory_space<vmem>>, vector<16x1xi32>
    %265 = tpu.iota {dimensions = array<i32: 1>} : vector<16x16xi32>
    %266 = vector.broadcast %264 : vector<16x1xi32> to vector<16x16xi32>
    %267 = arith.cmpi eq, %265, %266 : vector<16x16xi32>
    %268 = arith.extui %267 : vector<16x16xi1> to vector<16x16xi32>
    %269 = arith.sitofp %268 : vector<16x16xi32> to vector<16x16xf32>
    %c0_74 = arith.constant 0 : index
    %c0_75 = arith.constant 0 : index
    %270 = vector.load %arg2[%c0_74, %c0_75] : memref<16x32xf32, #tpu.memory_space<vmem>>, vector<16x32xf32>
    %cst_76 = arith.constant dense<0.000000e+00> : vector<16x32xf32>
    %271 = tpu.matmul %269, %270, %cst_76 {dimension_numbers = #tpu.dot_dimension_numbers<[1], [0], [0], [1], [0, 0, 1, 1], [], []>} : vector<16x16xf32>, vector<16x32xf32>, vector<16x32xf32> -> vector<16x32xf32>
    %c0_77 = arith.constant 0 : index
    %c0_78 = arith.constant 0 : index
    %c0_79 = arith.constant 0 : index
    %272 = vector.load %arg15[%c0_77, %c0_78, %c0_79] : memref<2x13x128xf32, #tpu.memory_space<vmem>>, vector<1x13x128xf32>
    %273 = vector.shape_cast %272 : vector<1x13x128xf32> to vector<13x128xf32>
    %274 = vector.extract_strided_slice %273 {offsets = [0, 0], sizes = [1, 96], strides = [1, 1]} : vector<13x128xf32> to vector<1x96xf32>
    %275 = vector.extract_strided_slice %273 {offsets = [1, 0], sizes = [1, 32], strides = [1, 1]} : vector<13x128xf32> to vector<1x32xf32>
    %276 = vector.extract_strided_slice %273 {offsets = [2, 0], sizes = [1, 32], strides = [1, 1]} : vector<13x128xf32> to vector<1x32xf32>
    %277 = vector.extract_strided_slice %273 {offsets = [3, 0], sizes = [1, 32], strides = [1, 1]} : vector<13x128xf32> to vector<1x32xf32>
    %278 = vector.extract_strided_slice %273 {offsets = [4, 0], sizes = [1, 32], strides = [1, 1]} : vector<13x128xf32> to vector<1x32xf32>
    %279 = vector.extract_strided_slice %273 {offsets = [5, 0], sizes = [1, 64], strides = [1, 1]} : vector<13x128xf32> to vector<1x64xf32>
    %280 = vector.extract_strided_slice %273 {offsets = [6, 0], sizes = [1, 32], strides = [1, 1]} : vector<13x128xf32> to vector<1x32xf32>
    %281 = vector.extract_strided_slice %273 {offsets = [7, 0], sizes = [1, 32], strides = [1, 1]} : vector<13x128xf32> to vector<1x32xf32>
    %282 = vector.extract_strided_slice %273 {offsets = [8, 0], sizes = [1, 32], strides = [1, 1]} : vector<13x128xf32> to vector<1x32xf32>
    %283 = vector.extract_strided_slice %273 {offsets = [9, 0], sizes = [1, 64], strides = [1, 1]} : vector<13x128xf32> to vector<1x64xf32>
    %284 = vector.extract_strided_slice %273 {offsets = [10, 0], sizes = [1, 32], strides = [1, 1]} : vector<13x128xf32> to vector<1x32xf32>
    %285 = vector.extract_strided_slice %273 {offsets = [11, 0], sizes = [1, 32], strides = [1, 1]} : vector<13x128xf32> to vector<1x32xf32>
    %286 = vector.extract_strided_slice %273 {offsets = [12, 0], sizes = [1, 32], strides = [1, 1]} : vector<13x128xf32> to vector<1x32xf32>
    %c0_80 = arith.constant 0 : index
    %c0_81 = arith.constant 0 : index
    %c0_82 = arith.constant 0 : index
    %287 = vector.load %arg8[%c0_80, %c0_81, %c0_82] : memref<2x32x96xf32, #tpu.memory_space<vmem>>, vector<1x32x96xf32>
    %288 = vector.shape_cast %287 : vector<1x32x96xf32> to vector<32x96xf32>
    %cst_83 = arith.constant dense<0.000000e+00> : vector<16x96xf32>
    %289 = tpu.matmul %271, %288, %cst_83 {dimension_numbers = #tpu.dot_dimension_numbers<[1], [0], [0], [1], [0, 0, 1, 1], [], []>} : vector<16x32xf32>, vector<32x96xf32>, vector<16x96xf32> -> vector<16x96xf32>
    %290 = vector.broadcast %274 : vector<1x96xf32> to vector<16x96xf32>
    %291 = arith.addf %289, %290 : vector<16x96xf32>
    %c0_84 = arith.constant 0 : index
    %c0_85 = arith.constant 0 : index
    %c0_86 = arith.constant 0 : index
    %292 = vector.load %arg9[%c0_84, %c0_85, %c0_86] : memref<2x32x32xf32, #tpu.memory_space<vmem>>, vector<1x32x32xf32>
    %293 = vector.shape_cast %292 : vector<1x32x32xf32> to vector<32x32xf32>
    %294 = vector.extract_strided_slice %291 {offsets = [0, 0], sizes = [16, 8], strides = [1, 1]} : vector<16x96xf32> to vector<16x8xf32>
    %295 = vector.shape_cast %294 : vector<16x8xf32> to vector<2x8x8xf32>
    %296 = vector.extract_strided_slice %291 {offsets = [0, 8], sizes = [16, 8], strides = [1, 1]} : vector<16x96xf32> to vector<16x8xf32>
    %297 = vector.shape_cast %296 : vector<16x8xf32> to vector<2x8x8xf32>
    %298 = vector.extract_strided_slice %291 {offsets = [0, 16], sizes = [16, 8], strides = [1, 1]} : vector<16x96xf32> to vector<16x8xf32>
    %299 = vector.shape_cast %298 : vector<16x8xf32> to vector<2x8x8xf32>
    %300 = vector.extract_strided_slice %291 {offsets = [0, 24], sizes = [16, 8], strides = [1, 1]} : vector<16x96xf32> to vector<16x8xf32>
    %301 = vector.shape_cast %300 : vector<16x8xf32> to vector<2x8x8xf32>
    %302 = tpu.concatenate %295, %297, %299, %301 in 0 : vector<2x8x8xf32>, vector<2x8x8xf32>, vector<2x8x8xf32>, vector<2x8x8xf32> -> vector<8x8x8xf32>
    %303 = vector.extract_strided_slice %291 {offsets = [0, 32], sizes = [16, 8], strides = [1, 1]} : vector<16x96xf32> to vector<16x8xf32>
    %304 = vector.shape_cast %303 : vector<16x8xf32> to vector<2x8x8xf32>
    %305 = vector.extract_strided_slice %291 {offsets = [0, 40], sizes = [16, 8], strides = [1, 1]} : vector<16x96xf32> to vector<16x8xf32>
    %306 = vector.shape_cast %305 : vector<16x8xf32> to vector<2x8x8xf32>
    %307 = vector.extract_strided_slice %291 {offsets = [0, 48], sizes = [16, 8], strides = [1, 1]} : vector<16x96xf32> to vector<16x8xf32>
    %308 = vector.shape_cast %307 : vector<16x8xf32> to vector<2x8x8xf32>
    %309 = vector.extract_strided_slice %291 {offsets = [0, 56], sizes = [16, 8], strides = [1, 1]} : vector<16x96xf32> to vector<16x8xf32>
    %310 = vector.shape_cast %309 : vector<16x8xf32> to vector<2x8x8xf32>
    %311 = tpu.concatenate %304, %306, %308, %310 in 0 : vector<2x8x8xf32>, vector<2x8x8xf32>, vector<2x8x8xf32>, vector<2x8x8xf32> -> vector<8x8x8xf32>
    %312 = vector.extract_strided_slice %291 {offsets = [0, 64], sizes = [16, 8], strides = [1, 1]} : vector<16x96xf32> to vector<16x8xf32>
    %313 = vector.shape_cast %312 : vector<16x8xf32> to vector<2x8x8xf32>
    %314 = vector.extract_strided_slice %291 {offsets = [0, 72], sizes = [16, 8], strides = [1, 1]} : vector<16x96xf32> to vector<16x8xf32>
    %315 = vector.shape_cast %314 : vector<16x8xf32> to vector<2x8x8xf32>
    %316 = vector.extract_strided_slice %291 {offsets = [0, 80], sizes = [16, 8], strides = [1, 1]} : vector<16x96xf32> to vector<16x8xf32>
    %317 = vector.shape_cast %316 : vector<16x8xf32> to vector<2x8x8xf32>
    %318 = vector.extract_strided_slice %291 {offsets = [0, 88], sizes = [16, 8], strides = [1, 1]} : vector<16x96xf32> to vector<16x8xf32>
    %319 = vector.shape_cast %318 : vector<16x8xf32> to vector<2x8x8xf32>
    %320 = tpu.concatenate %313, %315, %317, %319 in 0 : vector<2x8x8xf32>, vector<2x8x8xf32>, vector<2x8x8xf32>, vector<2x8x8xf32> -> vector<8x8x8xf32>
    "tpu.trace_start"() <{level = 10 : i32, message = "nqd,nkd->nqk"}> : () -> ()
    %cst_87 = arith.constant dense<0.000000e+00> : vector<8x8x8xf32>
    %321 = tpu.matmul %302, %311, %cst_87 {dimension_numbers = #tpu.dot_dimension_numbers<[2], [2], [1], [1], [0, 0, 0, 1, 1, 1], [0], [0]>} : vector<8x8x8xf32>, vector<8x8x8xf32>, vector<8x8x8xf32> -> vector<8x8x8xf32>
    "tpu.trace_stop"() : () -> ()
    %cst_88 = arith.constant 0.353553385 : f32
    %322 = vector.broadcast %cst_88 : f32 to vector<8x8x8xf32>
    %323 = arith.mulf %321, %322 : vector<8x8x8xf32>
    %cst_89 = arith.constant dense<0xFF800000> : vector<8x8xf32>
    %324 = vector.multi_reduction <maximumf>, %323, %cst_89 [2] : vector<8x8x8xf32> to vector<8x8xf32>
    %325 = vector.shape_cast %324 : vector<8x8xf32> to vector<8x8x1xf32>
    %326 = vector.broadcast %325 : vector<8x8x1xf32> to vector<8x8x8xf32>
    %327 = arith.subf %323, %326 : vector<8x8x8xf32>
    %328 = math.exp %327 : vector<8x8x8xf32>
    %cst_90 = arith.constant dense<0.000000e+00> : vector<8x8xf32>
    %329 = vector.multi_reduction <add>, %328, %cst_90 [2] : vector<8x8x8xf32> to vector<8x8xf32>
    %330 = vector.shape_cast %329 : vector<8x8xf32> to vector<8x8x1xf32>
    %331 = tpu.reciprocal %330 {approx = true} : vector<8x8x1xf32> -> vector<8x8x1xf32>
    %332 = vector.broadcast %331 : vector<8x8x1xf32> to vector<8x8x8xf32>
    %333 = arith.mulf %328, %332 : vector<8x8x8xf32>
    "tpu.trace_start"() <{level = 10 : i32, message = "nqk,nkd->nqd"}> : () -> ()
    %cst_91 = arith.constant dense<0.000000e+00> : vector<8x8x8xf32>
    %334 = tpu.matmul %333, %320, %cst_91 {dimension_numbers = #tpu.dot_dimension_numbers<[2], [1], [1], [2], [0, 0, 0, 1, 1, 2], [0], [0]>} : vector<8x8x8xf32>, vector<8x8x8xf32>, vector<8x8x8xf32> -> vector<8x8x8xf32>
    "tpu.trace_stop"() : () -> ()
    %335 = vector.extract_strided_slice %334 {offsets = [0, 0, 0], sizes = [2, 8, 8], strides = [1, 1, 1]} : vector<8x8x8xf32> to vector<2x8x8xf32>
    %336 = vector.shape_cast %335 : vector<2x8x8xf32> to vector<16x8xf32>
    %337 = vector.extract_strided_slice %334 {offsets = [2, 0, 0], sizes = [2, 8, 8], strides = [1, 1, 1]} : vector<8x8x8xf32> to vector<2x8x8xf32>
    %338 = vector.shape_cast %337 : vector<2x8x8xf32> to vector<16x8xf32>
    %339 = vector.extract_strided_slice %334 {offsets = [4, 0, 0], sizes = [2, 8, 8], strides = [1, 1, 1]} : vector<8x8x8xf32> to vector<2x8x8xf32>
    %340 = vector.shape_cast %339 : vector<2x8x8xf32> to vector<16x8xf32>
    %341 = vector.extract_strided_slice %334 {offsets = [6, 0, 0], sizes = [2, 8, 8], strides = [1, 1, 1]} : vector<8x8x8xf32> to vector<2x8x8xf32>
    %342 = vector.shape_cast %341 : vector<2x8x8xf32> to vector<16x8xf32>
    %343 = tpu.concatenate %336, %338, %340, %342 in 1 : vector<16x8xf32>, vector<16x8xf32>, vector<16x8xf32>, vector<16x8xf32> -> vector<16x32xf32>
    %cst_92 = arith.constant dense<0.000000e+00> : vector<16x32xf32>
    %344 = tpu.matmul %343, %293, %cst_92 {dimension_numbers = #tpu.dot_dimension_numbers<[1], [0], [0], [1], [0, 0, 1, 1], [], []>} : vector<16x32xf32>, vector<32x32xf32>, vector<16x32xf32> -> vector<16x32xf32>
    %345 = vector.broadcast %275 : vector<1x32xf32> to vector<16x32xf32>
    %346 = arith.addf %344, %345 : vector<16x32xf32>
    %347 = arith.addf %271, %346 : vector<16x32xf32>
    %cst_93 = arith.constant dense<0.000000e+00> : vector<16xf32>
    %348 = vector.multi_reduction <add>, %347, %cst_93 [1] : vector<16x32xf32> to vector<16xf32>
    %349 = vector.shape_cast %348 : vector<16xf32> to vector<16x1xf32>
    %cst_94 = arith.constant 3.200000e+01 : f32
    %350 = vector.broadcast %cst_94 : f32 to vector<16x1xf32>
    %351 = arith.divf %349, %350 : vector<16x1xf32>
    %352 = arith.mulf %347, %347 : vector<16x32xf32>
    %cst_95 = arith.constant dense<0.000000e+00> : vector<16xf32>
    %353 = vector.multi_reduction <add>, %352, %cst_95 [1] : vector<16x32xf32> to vector<16xf32>
    %354 = vector.shape_cast %353 : vector<16xf32> to vector<16x1xf32>
    %cst_96 = arith.constant 3.200000e+01 : f32
    %355 = vector.broadcast %cst_96 : f32 to vector<16x1xf32>
    %356 = arith.divf %354, %355 : vector<16x1xf32>
    %357 = arith.mulf %351, %351 : vector<16x1xf32>
    %358 = arith.subf %356, %357 : vector<16x1xf32>
    %359 = vector.broadcast %351 : vector<16x1xf32> to vector<16x32xf32>
    %360 = arith.subf %347, %359 : vector<16x32xf32>
    %cst_97 = arith.constant 9.99999974E-6 : f32
    %361 = vector.broadcast %cst_97 : f32 to vector<16x1xf32>
    %362 = arith.addf %358, %361 : vector<16x1xf32>
    %363 = math.rsqrt %362 : vector<16x1xf32>
    %364 = vector.broadcast %363 : vector<16x1xf32> to vector<16x32xf32>
    %365 = arith.mulf %360, %364 : vector<16x32xf32>
    %366 = vector.broadcast %276 : vector<1x32xf32> to vector<16x32xf32>
    %367 = arith.mulf %365, %366 : vector<16x32xf32>
    %368 = vector.broadcast %277 : vector<1x32xf32> to vector<16x32xf32>
    %369 = arith.addf %367, %368 : vector<16x32xf32>
    %c0_98 = arith.constant 0 : index
    %c0_99 = arith.constant 0 : index
    %c0_100 = arith.constant 0 : index
    %370 = vector.load %arg10[%c0_98, %c0_99, %c0_100] : memref<2x32x32xf32, #tpu.memory_space<vmem>>, vector<1x32x32xf32>
    %371 = vector.shape_cast %370 : vector<1x32x32xf32> to vector<32x32xf32>
    %cst_101 = arith.constant dense<0.000000e+00> : vector<16x32xf32>
    %372 = tpu.matmul %369, %371, %cst_101 {dimension_numbers = #tpu.dot_dimension_numbers<[1], [0], [0], [1], [0, 0, 1, 1], [], []>} : vector<16x32xf32>, vector<32x32xf32>, vector<16x32xf32> -> vector<16x32xf32>
    %373 = vector.broadcast %278 : vector<1x32xf32> to vector<16x32xf32>
    %374 = arith.addf %372, %373 : vector<16x32xf32>
    %c0_102 = arith.constant 0 : index
    %c0_103 = arith.constant 0 : index
    %c0_104 = arith.constant 0 : index
    %375 = vector.load %arg11[%c0_102, %c0_103, %c0_104] : memref<2x32x64xf32, #tpu.memory_space<vmem>>, vector<1x32x64xf32>
    %376 = vector.shape_cast %375 : vector<1x32x64xf32> to vector<32x64xf32>
    %cst_105 = arith.constant dense<0.000000e+00> : vector<16x64xf32>
    %377 = tpu.matmul %263, %376, %cst_105 {dimension_numbers = #tpu.dot_dimension_numbers<[1], [0], [0], [1], [0, 0, 1, 1], [], []>} : vector<16x32xf32>, vector<32x64xf32>, vector<16x64xf32> -> vector<16x64xf32>
    %378 = vector.broadcast %279 : vector<1x64xf32> to vector<16x64xf32>
    %379 = arith.addf %377, %378 : vector<16x64xf32>
    %c0_106 = arith.constant 0 : index
    %c0_107 = arith.constant 0 : index
    %c0_108 = arith.constant 0 : index
    %380 = vector.load %arg12[%c0_106, %c0_107, %c0_108] : memref<2x32x32xf32, #tpu.memory_space<vmem>>, vector<1x32x32xf32>
    %381 = vector.shape_cast %380 : vector<1x32x32xf32> to vector<32x32xf32>
    %382 = vector.extract_strided_slice %374 {offsets = [0, 0], sizes = [16, 8], strides = [1, 1]} : vector<16x32xf32> to vector<16x8xf32>
    %383 = vector.shape_cast %382 : vector<16x8xf32> to vector<2x8x8xf32>
    %384 = vector.extract_strided_slice %374 {offsets = [0, 8], sizes = [16, 8], strides = [1, 1]} : vector<16x32xf32> to vector<16x8xf32>
    %385 = vector.shape_cast %384 : vector<16x8xf32> to vector<2x8x8xf32>
    %386 = vector.extract_strided_slice %374 {offsets = [0, 16], sizes = [16, 8], strides = [1, 1]} : vector<16x32xf32> to vector<16x8xf32>
    %387 = vector.shape_cast %386 : vector<16x8xf32> to vector<2x8x8xf32>
    %388 = vector.extract_strided_slice %374 {offsets = [0, 24], sizes = [16, 8], strides = [1, 1]} : vector<16x32xf32> to vector<16x8xf32>
    %389 = vector.shape_cast %388 : vector<16x8xf32> to vector<2x8x8xf32>
    %390 = tpu.concatenate %383, %385, %387, %389 in 0 : vector<2x8x8xf32>, vector<2x8x8xf32>, vector<2x8x8xf32>, vector<2x8x8xf32> -> vector<8x8x8xf32>
    %391 = vector.extract_strided_slice %379 {offsets = [0, 0], sizes = [16, 8], strides = [1, 1]} : vector<16x64xf32> to vector<16x8xf32>
    %392 = vector.shape_cast %391 : vector<16x8xf32> to vector<2x8x8xf32>
    %393 = vector.extract_strided_slice %379 {offsets = [0, 8], sizes = [16, 8], strides = [1, 1]} : vector<16x64xf32> to vector<16x8xf32>
    %394 = vector.shape_cast %393 : vector<16x8xf32> to vector<2x8x8xf32>
    %395 = vector.extract_strided_slice %379 {offsets = [0, 16], sizes = [16, 8], strides = [1, 1]} : vector<16x64xf32> to vector<16x8xf32>
    %396 = vector.shape_cast %395 : vector<16x8xf32> to vector<2x8x8xf32>
    %397 = vector.extract_strided_slice %379 {offsets = [0, 24], sizes = [16, 8], strides = [1, 1]} : vector<16x64xf32> to vector<16x8xf32>
    %398 = vector.shape_cast %397 : vector<16x8xf32> to vector<2x8x8xf32>
    %399 = tpu.concatenate %392, %394, %396, %398 in 0 : vector<2x8x8xf32>, vector<2x8x8xf32>, vector<2x8x8xf32>, vector<2x8x8xf32> -> vector<8x8x8xf32>
    %400 = vector.extract_strided_slice %379 {offsets = [0, 32], sizes = [16, 8], strides = [1, 1]} : vector<16x64xf32> to vector<16x8xf32>
    %401 = vector.shape_cast %400 : vector<16x8xf32> to vector<2x8x8xf32>
    %402 = vector.extract_strided_slice %379 {offsets = [0, 40], sizes = [16, 8], strides = [1, 1]} : vector<16x64xf32> to vector<16x8xf32>
    %403 = vector.shape_cast %402 : vector<16x8xf32> to vector<2x8x8xf32>
    %404 = vector.extract_strided_slice %379 {offsets = [0, 48], sizes = [16, 8], strides = [1, 1]} : vector<16x64xf32> to vector<16x8xf32>
    %405 = vector.shape_cast %404 : vector<16x8xf32> to vector<2x8x8xf32>
    %406 = vector.extract_strided_slice %379 {offsets = [0, 56], sizes = [16, 8], strides = [1, 1]} : vector<16x64xf32> to vector<16x8xf32>
    %407 = vector.shape_cast %406 : vector<16x8xf32> to vector<2x8x8xf32>
    %408 = tpu.concatenate %401, %403, %405, %407 in 0 : vector<2x8x8xf32>, vector<2x8x8xf32>, vector<2x8x8xf32>, vector<2x8x8xf32> -> vector<8x8x8xf32>
    "tpu.trace_start"() <{level = 10 : i32, message = "nqd,nkd->nqk"}> : () -> ()
    %cst_109 = arith.constant dense<0.000000e+00> : vector<8x8x8xf32>
    %409 = tpu.matmul %390, %399, %cst_109 {dimension_numbers = #tpu.dot_dimension_numbers<[2], [2], [1], [1], [0, 0, 0, 1, 1, 1], [0], [0]>} : vector<8x8x8xf32>, vector<8x8x8xf32>, vector<8x8x8xf32> -> vector<8x8x8xf32>
    "tpu.trace_stop"() : () -> ()
    %cst_110 = arith.constant 0.353553385 : f32
    %410 = vector.broadcast %cst_110 : f32 to vector<8x8x8xf32>
    %411 = arith.mulf %409, %410 : vector<8x8x8xf32>
    %cst_111 = arith.constant dense<0xFF800000> : vector<8x8xf32>
    %412 = vector.multi_reduction <maximumf>, %411, %cst_111 [2] : vector<8x8x8xf32> to vector<8x8xf32>
    %413 = vector.shape_cast %412 : vector<8x8xf32> to vector<8x8x1xf32>
    %414 = vector.broadcast %413 : vector<8x8x1xf32> to vector<8x8x8xf32>
    %415 = arith.subf %411, %414 : vector<8x8x8xf32>
    %416 = math.exp %415 : vector<8x8x8xf32>
    %cst_112 = arith.constant dense<0.000000e+00> : vector<8x8xf32>
    %417 = vector.multi_reduction <add>, %416, %cst_112 [2] : vector<8x8x8xf32> to vector<8x8xf32>
    %418 = vector.shape_cast %417 : vector<8x8xf32> to vector<8x8x1xf32>
    %419 = tpu.reciprocal %418 {approx = true} : vector<8x8x1xf32> -> vector<8x8x1xf32>
    %420 = vector.broadcast %419 : vector<8x8x1xf32> to vector<8x8x8xf32>
    %421 = arith.mulf %416, %420 : vector<8x8x8xf32>
    "tpu.trace_start"() <{level = 10 : i32, message = "nqk,nkd->nqd"}> : () -> ()
    %cst_113 = arith.constant dense<0.000000e+00> : vector<8x8x8xf32>
    %422 = tpu.matmul %421, %408, %cst_113 {dimension_numbers = #tpu.dot_dimension_numbers<[2], [1], [1], [2], [0, 0, 0, 1, 1, 2], [0], [0]>} : vector<8x8x8xf32>, vector<8x8x8xf32>, vector<8x8x8xf32> -> vector<8x8x8xf32>
    "tpu.trace_stop"() : () -> ()
    %423 = vector.extract_strided_slice %422 {offsets = [0, 0, 0], sizes = [2, 8, 8], strides = [1, 1, 1]} : vector<8x8x8xf32> to vector<2x8x8xf32>
    %424 = vector.shape_cast %423 : vector<2x8x8xf32> to vector<16x8xf32>
    %425 = vector.extract_strided_slice %422 {offsets = [2, 0, 0], sizes = [2, 8, 8], strides = [1, 1, 1]} : vector<8x8x8xf32> to vector<2x8x8xf32>
    %426 = vector.shape_cast %425 : vector<2x8x8xf32> to vector<16x8xf32>
    %427 = vector.extract_strided_slice %422 {offsets = [4, 0, 0], sizes = [2, 8, 8], strides = [1, 1, 1]} : vector<8x8x8xf32> to vector<2x8x8xf32>
    %428 = vector.shape_cast %427 : vector<2x8x8xf32> to vector<16x8xf32>
    %429 = vector.extract_strided_slice %422 {offsets = [6, 0, 0], sizes = [2, 8, 8], strides = [1, 1, 1]} : vector<8x8x8xf32> to vector<2x8x8xf32>
    %430 = vector.shape_cast %429 : vector<2x8x8xf32> to vector<16x8xf32>
    %431 = tpu.concatenate %424, %426, %428, %430 in 1 : vector<16x8xf32>, vector<16x8xf32>, vector<16x8xf32>, vector<16x8xf32> -> vector<16x32xf32>
    %cst_114 = arith.constant dense<0.000000e+00> : vector<16x32xf32>
    %432 = tpu.matmul %431, %381, %cst_114 {dimension_numbers = #tpu.dot_dimension_numbers<[1], [0], [0], [1], [0, 0, 1, 1], [], []>} : vector<16x32xf32>, vector<32x32xf32>, vector<16x32xf32> -> vector<16x32xf32>
    %433 = vector.broadcast %280 : vector<1x32xf32> to vector<16x32xf32>
    %434 = arith.addf %432, %433 : vector<16x32xf32>
    %435 = arith.addf %369, %434 : vector<16x32xf32>
    %cst_115 = arith.constant dense<0.000000e+00> : vector<16xf32>
    %436 = vector.multi_reduction <add>, %435, %cst_115 [1] : vector<16x32xf32> to vector<16xf32>
    %437 = vector.shape_cast %436 : vector<16xf32> to vector<16x1xf32>
    %cst_116 = arith.constant 3.200000e+01 : f32
    %438 = vector.broadcast %cst_116 : f32 to vector<16x1xf32>
    %439 = arith.divf %437, %438 : vector<16x1xf32>
    %440 = arith.mulf %435, %435 : vector<16x32xf32>
    %cst_117 = arith.constant dense<0.000000e+00> : vector<16xf32>
    %441 = vector.multi_reduction <add>, %440, %cst_117 [1] : vector<16x32xf32> to vector<16xf32>
    %442 = vector.shape_cast %441 : vector<16xf32> to vector<16x1xf32>
    %cst_118 = arith.constant 3.200000e+01 : f32
    %443 = vector.broadcast %cst_118 : f32 to vector<16x1xf32>
    %444 = arith.divf %442, %443 : vector<16x1xf32>
    %445 = arith.mulf %439, %439 : vector<16x1xf32>
    %446 = arith.subf %444, %445 : vector<16x1xf32>
    %447 = vector.broadcast %439 : vector<16x1xf32> to vector<16x32xf32>
    %448 = arith.subf %435, %447 : vector<16x32xf32>
    %cst_119 = arith.constant 9.99999974E-6 : f32
    %449 = vector.broadcast %cst_119 : f32 to vector<16x1xf32>
    %450 = arith.addf %446, %449 : vector<16x1xf32>
    %451 = math.rsqrt %450 : vector<16x1xf32>
    %452 = vector.broadcast %451 : vector<16x1xf32> to vector<16x32xf32>
    %453 = arith.mulf %448, %452 : vector<16x32xf32>
    %454 = vector.broadcast %281 : vector<1x32xf32> to vector<16x32xf32>
    %455 = arith.mulf %453, %454 : vector<16x32xf32>
    %456 = vector.broadcast %282 : vector<1x32xf32> to vector<16x32xf32>
    %457 = arith.addf %455, %456 : vector<16x32xf32>
    %c0_120 = arith.constant 0 : index
    %c0_121 = arith.constant 0 : index
    %c0_122 = arith.constant 0 : index
    %458 = vector.load %arg13[%c0_120, %c0_121, %c0_122] : memref<2x32x64xf32, #tpu.memory_space<vmem>>, vector<1x32x64xf32>
    %459 = vector.shape_cast %458 : vector<1x32x64xf32> to vector<32x64xf32>
    %c0_123 = arith.constant 0 : index
    %c0_124 = arith.constant 0 : index
    %c0_125 = arith.constant 0 : index
    %460 = vector.load %arg14[%c0_123, %c0_124, %c0_125] : memref<2x64x32xf32, #tpu.memory_space<vmem>>, vector<1x64x32xf32>
    %461 = vector.shape_cast %460 : vector<1x64x32xf32> to vector<64x32xf32>
    %cst_126 = arith.constant dense<0.000000e+00> : vector<16x64xf32>
    %462 = tpu.matmul %457, %459, %cst_126 {dimension_numbers = #tpu.dot_dimension_numbers<[1], [0], [0], [1], [0, 0, 1, 1], [], []>} : vector<16x32xf32>, vector<32x64xf32>, vector<16x64xf32> -> vector<16x64xf32>
    %463 = vector.broadcast %283 : vector<1x64xf32> to vector<16x64xf32>
    %464 = arith.addf %462, %463 : vector<16x64xf32>
    %cst_127 = arith.constant 0.000000e+00 : f32
    %465 = vector.broadcast %cst_127 : f32 to vector<16x64xf32>
    %466 = arith.maximumf %464, %465 : vector<16x64xf32>
    %cst_128 = arith.constant dense<0.000000e+00> : vector<16x32xf32>
    %467 = tpu.matmul %466, %461, %cst_128 {dimension_numbers = #tpu.dot_dimension_numbers<[1], [0], [0], [1], [0, 0, 1, 1], [], []>} : vector<16x64xf32>, vector<64x32xf32>, vector<16x32xf32> -> vector<16x32xf32>
    %468 = vector.broadcast %284 : vector<1x32xf32> to vector<16x32xf32>
    %469 = arith.addf %467, %468 : vector<16x32xf32>
    %470 = arith.addf %457, %469 : vector<16x32xf32>
    %cst_129 = arith.constant dense<0.000000e+00> : vector<16xf32>
    %471 = vector.multi_reduction <add>, %470, %cst_129 [1] : vector<16x32xf32> to vector<16xf32>
    %472 = vector.shape_cast %471 : vector<16xf32> to vector<16x1xf32>
    %cst_130 = arith.constant 3.200000e+01 : f32
    %473 = vector.broadcast %cst_130 : f32 to vector<16x1xf32>
    %474 = arith.divf %472, %473 : vector<16x1xf32>
    %475 = arith.mulf %470, %470 : vector<16x32xf32>
    %cst_131 = arith.constant dense<0.000000e+00> : vector<16xf32>
    %476 = vector.multi_reduction <add>, %475, %cst_131 [1] : vector<16x32xf32> to vector<16xf32>
    %477 = vector.shape_cast %476 : vector<16xf32> to vector<16x1xf32>
    %cst_132 = arith.constant 3.200000e+01 : f32
    %478 = vector.broadcast %cst_132 : f32 to vector<16x1xf32>
    %479 = arith.divf %477, %478 : vector<16x1xf32>
    %480 = arith.mulf %474, %474 : vector<16x1xf32>
    %481 = arith.subf %479, %480 : vector<16x1xf32>
    %482 = vector.broadcast %474 : vector<16x1xf32> to vector<16x32xf32>
    %483 = arith.subf %470, %482 : vector<16x32xf32>
    %cst_133 = arith.constant 9.99999974E-6 : f32
    %484 = vector.broadcast %cst_133 : f32 to vector<16x1xf32>
    %485 = arith.addf %481, %484 : vector<16x1xf32>
    %486 = math.rsqrt %485 : vector<16x1xf32>
    %487 = vector.broadcast %486 : vector<16x1xf32> to vector<16x32xf32>
    %488 = arith.mulf %483, %487 : vector<16x32xf32>
    %489 = vector.broadcast %285 : vector<1x32xf32> to vector<16x32xf32>
    %490 = arith.mulf %488, %489 : vector<16x32xf32>
    %491 = vector.broadcast %286 : vector<1x32xf32> to vector<16x32xf32>
    %492 = arith.addf %490, %491 : vector<16x32xf32>
    %c1_134 = arith.constant 1 : index
    %c0_135 = arith.constant 0 : index
    %c0_136 = arith.constant 0 : index
    %493 = vector.load %arg15[%c1_134, %c0_135, %c0_136] : memref<2x13x128xf32, #tpu.memory_space<vmem>>, vector<1x13x128xf32>
    %494 = vector.shape_cast %493 : vector<1x13x128xf32> to vector<13x128xf32>
    %495 = vector.extract_strided_slice %494 {offsets = [0, 0], sizes = [1, 96], strides = [1, 1]} : vector<13x128xf32> to vector<1x96xf32>
    %496 = vector.extract_strided_slice %494 {offsets = [1, 0], sizes = [1, 32], strides = [1, 1]} : vector<13x128xf32> to vector<1x32xf32>
    %497 = vector.extract_strided_slice %494 {offsets = [2, 0], sizes = [1, 32], strides = [1, 1]} : vector<13x128xf32> to vector<1x32xf32>
    %498 = vector.extract_strided_slice %494 {offsets = [3, 0], sizes = [1, 32], strides = [1, 1]} : vector<13x128xf32> to vector<1x32xf32>
    %499 = vector.extract_strided_slice %494 {offsets = [4, 0], sizes = [1, 32], strides = [1, 1]} : vector<13x128xf32> to vector<1x32xf32>
    %500 = vector.extract_strided_slice %494 {offsets = [5, 0], sizes = [1, 64], strides = [1, 1]} : vector<13x128xf32> to vector<1x64xf32>
    %501 = vector.extract_strided_slice %494 {offsets = [6, 0], sizes = [1, 32], strides = [1, 1]} : vector<13x128xf32> to vector<1x32xf32>
    %502 = vector.extract_strided_slice %494 {offsets = [7, 0], sizes = [1, 32], strides = [1, 1]} : vector<13x128xf32> to vector<1x32xf32>
    %503 = vector.extract_strided_slice %494 {offsets = [8, 0], sizes = [1, 32], strides = [1, 1]} : vector<13x128xf32> to vector<1x32xf32>
    %504 = vector.extract_strided_slice %494 {offsets = [9, 0], sizes = [1, 64], strides = [1, 1]} : vector<13x128xf32> to vector<1x64xf32>
    %505 = vector.extract_strided_slice %494 {offsets = [10, 0], sizes = [1, 32], strides = [1, 1]} : vector<13x128xf32> to vector<1x32xf32>
    %506 = vector.extract_strided_slice %494 {offsets = [11, 0], sizes = [1, 32], strides = [1, 1]} : vector<13x128xf32> to vector<1x32xf32>
    %507 = vector.extract_strided_slice %494 {offsets = [12, 0], sizes = [1, 32], strides = [1, 1]} : vector<13x128xf32> to vector<1x32xf32>
    %c1_137 = arith.constant 1 : index
    %c0_138 = arith.constant 0 : index
    %c0_139 = arith.constant 0 : index
    %508 = vector.load %arg8[%c1_137, %c0_138, %c0_139] : memref<2x32x96xf32, #tpu.memory_space<vmem>>, vector<1x32x96xf32>
    %509 = vector.shape_cast %508 : vector<1x32x96xf32> to vector<32x96xf32>
    %cst_140 = arith.constant dense<0.000000e+00> : vector<16x96xf32>
    %510 = tpu.matmul %492, %509, %cst_140 {dimension_numbers = #tpu.dot_dimension_numbers<[1], [0], [0], [1], [0, 0, 1, 1], [], []>} : vector<16x32xf32>, vector<32x96xf32>, vector<16x96xf32> -> vector<16x96xf32>
    %511 = vector.broadcast %495 : vector<1x96xf32> to vector<16x96xf32>
    %512 = arith.addf %510, %511 : vector<16x96xf32>
    %c1_141 = arith.constant 1 : index
    %c0_142 = arith.constant 0 : index
    %c0_143 = arith.constant 0 : index
    %513 = vector.load %arg9[%c1_141, %c0_142, %c0_143] : memref<2x32x32xf32, #tpu.memory_space<vmem>>, vector<1x32x32xf32>
    %514 = vector.shape_cast %513 : vector<1x32x32xf32> to vector<32x32xf32>
    %515 = vector.extract_strided_slice %512 {offsets = [0, 0], sizes = [16, 8], strides = [1, 1]} : vector<16x96xf32> to vector<16x8xf32>
    %516 = vector.shape_cast %515 : vector<16x8xf32> to vector<2x8x8xf32>
    %517 = vector.extract_strided_slice %512 {offsets = [0, 8], sizes = [16, 8], strides = [1, 1]} : vector<16x96xf32> to vector<16x8xf32>
    %518 = vector.shape_cast %517 : vector<16x8xf32> to vector<2x8x8xf32>
    %519 = vector.extract_strided_slice %512 {offsets = [0, 16], sizes = [16, 8], strides = [1, 1]} : vector<16x96xf32> to vector<16x8xf32>
    %520 = vector.shape_cast %519 : vector<16x8xf32> to vector<2x8x8xf32>
    %521 = vector.extract_strided_slice %512 {offsets = [0, 24], sizes = [16, 8], strides = [1, 1]} : vector<16x96xf32> to vector<16x8xf32>
    %522 = vector.shape_cast %521 : vector<16x8xf32> to vector<2x8x8xf32>
    %523 = tpu.concatenate %516, %518, %520, %522 in 0 : vector<2x8x8xf32>, vector<2x8x8xf32>, vector<2x8x8xf32>, vector<2x8x8xf32> -> vector<8x8x8xf32>
    %524 = vector.extract_strided_slice %512 {offsets = [0, 32], sizes = [16, 8], strides = [1, 1]} : vector<16x96xf32> to vector<16x8xf32>
    %525 = vector.shape_cast %524 : vector<16x8xf32> to vector<2x8x8xf32>
    %526 = vector.extract_strided_slice %512 {offsets = [0, 40], sizes = [16, 8], strides = [1, 1]} : vector<16x96xf32> to vector<16x8xf32>
    %527 = vector.shape_cast %526 : vector<16x8xf32> to vector<2x8x8xf32>
    %528 = vector.extract_strided_slice %512 {offsets = [0, 48], sizes = [16, 8], strides = [1, 1]} : vector<16x96xf32> to vector<16x8xf32>
    %529 = vector.shape_cast %528 : vector<16x8xf32> to vector<2x8x8xf32>
    %530 = vector.extract_strided_slice %512 {offsets = [0, 56], sizes = [16, 8], strides = [1, 1]} : vector<16x96xf32> to vector<16x8xf32>
    %531 = vector.shape_cast %530 : vector<16x8xf32> to vector<2x8x8xf32>
    %532 = tpu.concatenate %525, %527, %529, %531 in 0 : vector<2x8x8xf32>, vector<2x8x8xf32>, vector<2x8x8xf32>, vector<2x8x8xf32> -> vector<8x8x8xf32>
    %533 = vector.extract_strided_slice %512 {offsets = [0, 64], sizes = [16, 8], strides = [1, 1]} : vector<16x96xf32> to vector<16x8xf32>
    %534 = vector.shape_cast %533 : vector<16x8xf32> to vector<2x8x8xf32>
    %535 = vector.extract_strided_slice %512 {offsets = [0, 72], sizes = [16, 8], strides = [1, 1]} : vector<16x96xf32> to vector<16x8xf32>
    %536 = vector.shape_cast %535 : vector<16x8xf32> to vector<2x8x8xf32>
    %537 = vector.extract_strided_slice %512 {offsets = [0, 80], sizes = [16, 8], strides = [1, 1]} : vector<16x96xf32> to vector<16x8xf32>
    %538 = vector.shape_cast %537 : vector<16x8xf32> to vector<2x8x8xf32>
    %539 = vector.extract_strided_slice %512 {offsets = [0, 88], sizes = [16, 8], strides = [1, 1]} : vector<16x96xf32> to vector<16x8xf32>
    %540 = vector.shape_cast %539 : vector<16x8xf32> to vector<2x8x8xf32>
    %541 = tpu.concatenate %534, %536, %538, %540 in 0 : vector<2x8x8xf32>, vector<2x8x8xf32>, vector<2x8x8xf32>, vector<2x8x8xf32> -> vector<8x8x8xf32>
    "tpu.trace_start"() <{level = 10 : i32, message = "nqd,nkd->nqk"}> : () -> ()
    %cst_144 = arith.constant dense<0.000000e+00> : vector<8x8x8xf32>
    %542 = tpu.matmul %523, %532, %cst_144 {dimension_numbers = #tpu.dot_dimension_numbers<[2], [2], [1], [1], [0, 0, 0, 1, 1, 1], [0], [0]>} : vector<8x8x8xf32>, vector<8x8x8xf32>, vector<8x8x8xf32> -> vector<8x8x8xf32>
    "tpu.trace_stop"() : () -> ()
    %cst_145 = arith.constant 0.353553385 : f32
    %543 = vector.broadcast %cst_145 : f32 to vector<8x8x8xf32>
    %544 = arith.mulf %542, %543 : vector<8x8x8xf32>
    %cst_146 = arith.constant dense<0xFF800000> : vector<8x8xf32>
    %545 = vector.multi_reduction <maximumf>, %544, %cst_146 [2] : vector<8x8x8xf32> to vector<8x8xf32>
    %546 = vector.shape_cast %545 : vector<8x8xf32> to vector<8x8x1xf32>
    %547 = vector.broadcast %546 : vector<8x8x1xf32> to vector<8x8x8xf32>
    %548 = arith.subf %544, %547 : vector<8x8x8xf32>
    %549 = math.exp %548 : vector<8x8x8xf32>
    %cst_147 = arith.constant dense<0.000000e+00> : vector<8x8xf32>
    %550 = vector.multi_reduction <add>, %549, %cst_147 [2] : vector<8x8x8xf32> to vector<8x8xf32>
    %551 = vector.shape_cast %550 : vector<8x8xf32> to vector<8x8x1xf32>
    %552 = tpu.reciprocal %551 {approx = true} : vector<8x8x1xf32> -> vector<8x8x1xf32>
    %553 = vector.broadcast %552 : vector<8x8x1xf32> to vector<8x8x8xf32>
    %554 = arith.mulf %549, %553 : vector<8x8x8xf32>
    "tpu.trace_start"() <{level = 10 : i32, message = "nqk,nkd->nqd"}> : () -> ()
    %cst_148 = arith.constant dense<0.000000e+00> : vector<8x8x8xf32>
    %555 = tpu.matmul %554, %541, %cst_148 {dimension_numbers = #tpu.dot_dimension_numbers<[2], [1], [1], [2], [0, 0, 0, 1, 1, 2], [0], [0]>} : vector<8x8x8xf32>, vector<8x8x8xf32>, vector<8x8x8xf32> -> vector<8x8x8xf32>
    "tpu.trace_stop"() : () -> ()
    %556 = vector.extract_strided_slice %555 {offsets = [0, 0, 0], sizes = [2, 8, 8], strides = [1, 1, 1]} : vector<8x8x8xf32> to vector<2x8x8xf32>
    %557 = vector.shape_cast %556 : vector<2x8x8xf32> to vector<16x8xf32>
    %558 = vector.extract_strided_slice %555 {offsets = [2, 0, 0], sizes = [2, 8, 8], strides = [1, 1, 1]} : vector<8x8x8xf32> to vector<2x8x8xf32>
    %559 = vector.shape_cast %558 : vector<2x8x8xf32> to vector<16x8xf32>
    %560 = vector.extract_strided_slice %555 {offsets = [4, 0, 0], sizes = [2, 8, 8], strides = [1, 1, 1]} : vector<8x8x8xf32> to vector<2x8x8xf32>
    %561 = vector.shape_cast %560 : vector<2x8x8xf32> to vector<16x8xf32>
    %562 = vector.extract_strided_slice %555 {offsets = [6, 0, 0], sizes = [2, 8, 8], strides = [1, 1, 1]} : vector<8x8x8xf32> to vector<2x8x8xf32>
    %563 = vector.shape_cast %562 : vector<2x8x8xf32> to vector<16x8xf32>
    %564 = tpu.concatenate %557, %559, %561, %563 in 1 : vector<16x8xf32>, vector<16x8xf32>, vector<16x8xf32>, vector<16x8xf32> -> vector<16x32xf32>
    %cst_149 = arith.constant dense<0.000000e+00> : vector<16x32xf32>
    %565 = tpu.matmul %564, %514, %cst_149 {dimension_numbers = #tpu.dot_dimension_numbers<[1], [0], [0], [1], [0, 0, 1, 1], [], []>} : vector<16x32xf32>, vector<32x32xf32>, vector<16x32xf32> -> vector<16x32xf32>
    %566 = vector.broadcast %496 : vector<1x32xf32> to vector<16x32xf32>
    %567 = arith.addf %565, %566 : vector<16x32xf32>
    %568 = arith.addf %492, %567 : vector<16x32xf32>
    %cst_150 = arith.constant dense<0.000000e+00> : vector<16xf32>
    %569 = vector.multi_reduction <add>, %568, %cst_150 [1] : vector<16x32xf32> to vector<16xf32>
    %570 = vector.shape_cast %569 : vector<16xf32> to vector<16x1xf32>
    %cst_151 = arith.constant 3.200000e+01 : f32
    %571 = vector.broadcast %cst_151 : f32 to vector<16x1xf32>
    %572 = arith.divf %570, %571 : vector<16x1xf32>
    %573 = arith.mulf %568, %568 : vector<16x32xf32>
    %cst_152 = arith.constant dense<0.000000e+00> : vector<16xf32>
    %574 = vector.multi_reduction <add>, %573, %cst_152 [1] : vector<16x32xf32> to vector<16xf32>
    %575 = vector.shape_cast %574 : vector<16xf32> to vector<16x1xf32>
    %cst_153 = arith.constant 3.200000e+01 : f32
    %576 = vector.broadcast %cst_153 : f32 to vector<16x1xf32>
    %577 = arith.divf %575, %576 : vector<16x1xf32>
    %578 = arith.mulf %572, %572 : vector<16x1xf32>
    %579 = arith.subf %577, %578 : vector<16x1xf32>
    %580 = vector.broadcast %572 : vector<16x1xf32> to vector<16x32xf32>
    %581 = arith.subf %568, %580 : vector<16x32xf32>
    %cst_154 = arith.constant 9.99999974E-6 : f32
    %582 = vector.broadcast %cst_154 : f32 to vector<16x1xf32>
    %583 = arith.addf %579, %582 : vector<16x1xf32>
    %584 = math.rsqrt %583 : vector<16x1xf32>
    %585 = vector.broadcast %584 : vector<16x1xf32> to vector<16x32xf32>
    %586 = arith.mulf %581, %585 : vector<16x32xf32>
    %587 = vector.broadcast %497 : vector<1x32xf32> to vector<16x32xf32>
    %588 = arith.mulf %586, %587 : vector<16x32xf32>
    %589 = vector.broadcast %498 : vector<1x32xf32> to vector<16x32xf32>
    %590 = arith.addf %588, %589 : vector<16x32xf32>
    %c1_155 = arith.constant 1 : index
    %c0_156 = arith.constant 0 : index
    %c0_157 = arith.constant 0 : index
    %591 = vector.load %arg10[%c1_155, %c0_156, %c0_157] : memref<2x32x32xf32, #tpu.memory_space<vmem>>, vector<1x32x32xf32>
    %592 = vector.shape_cast %591 : vector<1x32x32xf32> to vector<32x32xf32>
    %cst_158 = arith.constant dense<0.000000e+00> : vector<16x32xf32>
    %593 = tpu.matmul %590, %592, %cst_158 {dimension_numbers = #tpu.dot_dimension_numbers<[1], [0], [0], [1], [0, 0, 1, 1], [], []>} : vector<16x32xf32>, vector<32x32xf32>, vector<16x32xf32> -> vector<16x32xf32>
    %594 = vector.broadcast %499 : vector<1x32xf32> to vector<16x32xf32>
    %595 = arith.addf %593, %594 : vector<16x32xf32>
    %c1_159 = arith.constant 1 : index
    %c0_160 = arith.constant 0 : index
    %c0_161 = arith.constant 0 : index
    %596 = vector.load %arg11[%c1_159, %c0_160, %c0_161] : memref<2x32x64xf32, #tpu.memory_space<vmem>>, vector<1x32x64xf32>
    %597 = vector.shape_cast %596 : vector<1x32x64xf32> to vector<32x64xf32>
    %cst_162 = arith.constant dense<0.000000e+00> : vector<16x64xf32>
    %598 = tpu.matmul %263, %597, %cst_162 {dimension_numbers = #tpu.dot_dimension_numbers<[1], [0], [0], [1], [0, 0, 1, 1], [], []>} : vector<16x32xf32>, vector<32x64xf32>, vector<16x64xf32> -> vector<16x64xf32>
    %599 = vector.broadcast %500 : vector<1x64xf32> to vector<16x64xf32>
    %600 = arith.addf %598, %599 : vector<16x64xf32>
    %c1_163 = arith.constant 1 : index
    %c0_164 = arith.constant 0 : index
    %c0_165 = arith.constant 0 : index
    %601 = vector.load %arg12[%c1_163, %c0_164, %c0_165] : memref<2x32x32xf32, #tpu.memory_space<vmem>>, vector<1x32x32xf32>
    %602 = vector.shape_cast %601 : vector<1x32x32xf32> to vector<32x32xf32>
    %603 = vector.extract_strided_slice %595 {offsets = [0, 0], sizes = [16, 8], strides = [1, 1]} : vector<16x32xf32> to vector<16x8xf32>
    %604 = vector.shape_cast %603 : vector<16x8xf32> to vector<2x8x8xf32>
    %605 = vector.extract_strided_slice %595 {offsets = [0, 8], sizes = [16, 8], strides = [1, 1]} : vector<16x32xf32> to vector<16x8xf32>
    %606 = vector.shape_cast %605 : vector<16x8xf32> to vector<2x8x8xf32>
    %607 = vector.extract_strided_slice %595 {offsets = [0, 16], sizes = [16, 8], strides = [1, 1]} : vector<16x32xf32> to vector<16x8xf32>
    %608 = vector.shape_cast %607 : vector<16x8xf32> to vector<2x8x8xf32>
    %609 = vector.extract_strided_slice %595 {offsets = [0, 24], sizes = [16, 8], strides = [1, 1]} : vector<16x32xf32> to vector<16x8xf32>
    %610 = vector.shape_cast %609 : vector<16x8xf32> to vector<2x8x8xf32>
    %611 = tpu.concatenate %604, %606, %608, %610 in 0 : vector<2x8x8xf32>, vector<2x8x8xf32>, vector<2x8x8xf32>, vector<2x8x8xf32> -> vector<8x8x8xf32>
    %612 = vector.extract_strided_slice %600 {offsets = [0, 0], sizes = [16, 8], strides = [1, 1]} : vector<16x64xf32> to vector<16x8xf32>
    %613 = vector.shape_cast %612 : vector<16x8xf32> to vector<2x8x8xf32>
    %614 = vector.extract_strided_slice %600 {offsets = [0, 8], sizes = [16, 8], strides = [1, 1]} : vector<16x64xf32> to vector<16x8xf32>
    %615 = vector.shape_cast %614 : vector<16x8xf32> to vector<2x8x8xf32>
    %616 = vector.extract_strided_slice %600 {offsets = [0, 16], sizes = [16, 8], strides = [1, 1]} : vector<16x64xf32> to vector<16x8xf32>
    %617 = vector.shape_cast %616 : vector<16x8xf32> to vector<2x8x8xf32>
    %618 = vector.extract_strided_slice %600 {offsets = [0, 24], sizes = [16, 8], strides = [1, 1]} : vector<16x64xf32> to vector<16x8xf32>
    %619 = vector.shape_cast %618 : vector<16x8xf32> to vector<2x8x8xf32>
    %620 = tpu.concatenate %613, %615, %617, %619 in 0 : vector<2x8x8xf32>, vector<2x8x8xf32>, vector<2x8x8xf32>, vector<2x8x8xf32> -> vector<8x8x8xf32>
    %621 = vector.extract_strided_slice %600 {offsets = [0, 32], sizes = [16, 8], strides = [1, 1]} : vector<16x64xf32> to vector<16x8xf32>
    %622 = vector.shape_cast %621 : vector<16x8xf32> to vector<2x8x8xf32>
    %623 = vector.extract_strided_slice %600 {offsets = [0, 40], sizes = [16, 8], strides = [1, 1]} : vector<16x64xf32> to vector<16x8xf32>
    %624 = vector.shape_cast %623 : vector<16x8xf32> to vector<2x8x8xf32>
    %625 = vector.extract_strided_slice %600 {offsets = [0, 48], sizes = [16, 8], strides = [1, 1]} : vector<16x64xf32> to vector<16x8xf32>
    %626 = vector.shape_cast %625 : vector<16x8xf32> to vector<2x8x8xf32>
    %627 = vector.extract_strided_slice %600 {offsets = [0, 56], sizes = [16, 8], strides = [1, 1]} : vector<16x64xf32> to vector<16x8xf32>
    %628 = vector.shape_cast %627 : vector<16x8xf32> to vector<2x8x8xf32>
    %629 = tpu.concatenate %622, %624, %626, %628 in 0 : vector<2x8x8xf32>, vector<2x8x8xf32>, vector<2x8x8xf32>, vector<2x8x8xf32> -> vector<8x8x8xf32>
    "tpu.trace_start"() <{level = 10 : i32, message = "nqd,nkd->nqk"}> : () -> ()
    %cst_166 = arith.constant dense<0.000000e+00> : vector<8x8x8xf32>
    %630 = tpu.matmul %611, %620, %cst_166 {dimension_numbers = #tpu.dot_dimension_numbers<[2], [2], [1], [1], [0, 0, 0, 1, 1, 1], [0], [0]>} : vector<8x8x8xf32>, vector<8x8x8xf32>, vector<8x8x8xf32> -> vector<8x8x8xf32>
    "tpu.trace_stop"() : () -> ()
    %cst_167 = arith.constant 0.353553385 : f32
    %631 = vector.broadcast %cst_167 : f32 to vector<8x8x8xf32>
    %632 = arith.mulf %630, %631 : vector<8x8x8xf32>
    %cst_168 = arith.constant dense<0xFF800000> : vector<8x8xf32>
    %633 = vector.multi_reduction <maximumf>, %632, %cst_168 [2] : vector<8x8x8xf32> to vector<8x8xf32>
    %634 = vector.shape_cast %633 : vector<8x8xf32> to vector<8x8x1xf32>
    %635 = vector.broadcast %634 : vector<8x8x1xf32> to vector<8x8x8xf32>
    %636 = arith.subf %632, %635 : vector<8x8x8xf32>
    %637 = math.exp %636 : vector<8x8x8xf32>
    %cst_169 = arith.constant dense<0.000000e+00> : vector<8x8xf32>
    %638 = vector.multi_reduction <add>, %637, %cst_169 [2] : vector<8x8x8xf32> to vector<8x8xf32>
    %639 = vector.shape_cast %638 : vector<8x8xf32> to vector<8x8x1xf32>
    %640 = tpu.reciprocal %639 {approx = true} : vector<8x8x1xf32> -> vector<8x8x1xf32>
    %641 = vector.broadcast %640 : vector<8x8x1xf32> to vector<8x8x8xf32>
    %642 = arith.mulf %637, %641 : vector<8x8x8xf32>
    "tpu.trace_start"() <{level = 10 : i32, message = "nqk,nkd->nqd"}> : () -> ()
    %cst_170 = arith.constant dense<0.000000e+00> : vector<8x8x8xf32>
    %643 = tpu.matmul %642, %629, %cst_170 {dimension_numbers = #tpu.dot_dimension_numbers<[2], [1], [1], [2], [0, 0, 0, 1, 1, 2], [0], [0]>} : vector<8x8x8xf32>, vector<8x8x8xf32>, vector<8x8x8xf32> -> vector<8x8x8xf32>
    "tpu.trace_stop"() : () -> ()
    %644 = vector.extract_strided_slice %643 {offsets = [0, 0, 0], sizes = [2, 8, 8], strides = [1, 1, 1]} : vector<8x8x8xf32> to vector<2x8x8xf32>
    %645 = vector.shape_cast %644 : vector<2x8x8xf32> to vector<16x8xf32>
    %646 = vector.extract_strided_slice %643 {offsets = [2, 0, 0], sizes = [2, 8, 8], strides = [1, 1, 1]} : vector<8x8x8xf32> to vector<2x8x8xf32>
    %647 = vector.shape_cast %646 : vector<2x8x8xf32> to vector<16x8xf32>
    %648 = vector.extract_strided_slice %643 {offsets = [4, 0, 0], sizes = [2, 8, 8], strides = [1, 1, 1]} : vector<8x8x8xf32> to vector<2x8x8xf32>
    %649 = vector.shape_cast %648 : vector<2x8x8xf32> to vector<16x8xf32>
    %650 = vector.extract_strided_slice %643 {offsets = [6, 0, 0], sizes = [2, 8, 8], strides = [1, 1, 1]} : vector<8x8x8xf32> to vector<2x8x8xf32>
    %651 = vector.shape_cast %650 : vector<2x8x8xf32> to vector<16x8xf32>
    %652 = tpu.concatenate %645, %647, %649, %651 in 1 : vector<16x8xf32>, vector<16x8xf32>, vector<16x8xf32>, vector<16x8xf32> -> vector<16x32xf32>
    %cst_171 = arith.constant dense<0.000000e+00> : vector<16x32xf32>
    %653 = tpu.matmul %652, %602, %cst_171 {dimension_numbers = #tpu.dot_dimension_numbers<[1], [0], [0], [1], [0, 0, 1, 1], [], []>} : vector<16x32xf32>, vector<32x32xf32>, vector<16x32xf32> -> vector<16x32xf32>
    %654 = vector.broadcast %501 : vector<1x32xf32> to vector<16x32xf32>
    %655 = arith.addf %653, %654 : vector<16x32xf32>
    %656 = arith.addf %590, %655 : vector<16x32xf32>
    %cst_172 = arith.constant dense<0.000000e+00> : vector<16xf32>
    %657 = vector.multi_reduction <add>, %656, %cst_172 [1] : vector<16x32xf32> to vector<16xf32>
    %658 = vector.shape_cast %657 : vector<16xf32> to vector<16x1xf32>
    %cst_173 = arith.constant 3.200000e+01 : f32
    %659 = vector.broadcast %cst_173 : f32 to vector<16x1xf32>
    %660 = arith.divf %658, %659 : vector<16x1xf32>
    %661 = arith.mulf %656, %656 : vector<16x32xf32>
    %cst_174 = arith.constant dense<0.000000e+00> : vector<16xf32>
    %662 = vector.multi_reduction <add>, %661, %cst_174 [1] : vector<16x32xf32> to vector<16xf32>
    %663 = vector.shape_cast %662 : vector<16xf32> to vector<16x1xf32>
    %cst_175 = arith.constant 3.200000e+01 : f32
    %664 = vector.broadcast %cst_175 : f32 to vector<16x1xf32>
    %665 = arith.divf %663, %664 : vector<16x1xf32>
    %666 = arith.mulf %660, %660 : vector<16x1xf32>
    %667 = arith.subf %665, %666 : vector<16x1xf32>
    %668 = vector.broadcast %660 : vector<16x1xf32> to vector<16x32xf32>
    %669 = arith.subf %656, %668 : vector<16x32xf32>
    %cst_176 = arith.constant 9.99999974E-6 : f32
    %670 = vector.broadcast %cst_176 : f32 to vector<16x1xf32>
    %671 = arith.addf %667, %670 : vector<16x1xf32>
    %672 = math.rsqrt %671 : vector<16x1xf32>
    %673 = vector.broadcast %672 : vector<16x1xf32> to vector<16x32xf32>
    %674 = arith.mulf %669, %673 : vector<16x32xf32>
    %675 = vector.broadcast %502 : vector<1x32xf32> to vector<16x32xf32>
    %676 = arith.mulf %674, %675 : vector<16x32xf32>
    %677 = vector.broadcast %503 : vector<1x32xf32> to vector<16x32xf32>
    %678 = arith.addf %676, %677 : vector<16x32xf32>
    %c1_177 = arith.constant 1 : index
    %c0_178 = arith.constant 0 : index
    %c0_179 = arith.constant 0 : index
    %679 = vector.load %arg13[%c1_177, %c0_178, %c0_179] : memref<2x32x64xf32, #tpu.memory_space<vmem>>, vector<1x32x64xf32>
    %680 = vector.shape_cast %679 : vector<1x32x64xf32> to vector<32x64xf32>
    %c1_180 = arith.constant 1 : index
    %c0_181 = arith.constant 0 : index
    %c0_182 = arith.constant 0 : index
    %681 = vector.load %arg14[%c1_180, %c0_181, %c0_182] : memref<2x64x32xf32, #tpu.memory_space<vmem>>, vector<1x64x32xf32>
    %682 = vector.shape_cast %681 : vector<1x64x32xf32> to vector<64x32xf32>
    %cst_183 = arith.constant dense<0.000000e+00> : vector<16x64xf32>
    %683 = tpu.matmul %678, %680, %cst_183 {dimension_numbers = #tpu.dot_dimension_numbers<[1], [0], [0], [1], [0, 0, 1, 1], [], []>} : vector<16x32xf32>, vector<32x64xf32>, vector<16x64xf32> -> vector<16x64xf32>
    %684 = vector.broadcast %504 : vector<1x64xf32> to vector<16x64xf32>
    %685 = arith.addf %683, %684 : vector<16x64xf32>
    %cst_184 = arith.constant 0.000000e+00 : f32
    %686 = vector.broadcast %cst_184 : f32 to vector<16x64xf32>
    %687 = arith.maximumf %685, %686 : vector<16x64xf32>
    %cst_185 = arith.constant dense<0.000000e+00> : vector<16x32xf32>
    %688 = tpu.matmul %687, %682, %cst_185 {dimension_numbers = #tpu.dot_dimension_numbers<[1], [0], [0], [1], [0, 0, 1, 1], [], []>} : vector<16x64xf32>, vector<64x32xf32>, vector<16x32xf32> -> vector<16x32xf32>
    %689 = vector.broadcast %505 : vector<1x32xf32> to vector<16x32xf32>
    %690 = arith.addf %688, %689 : vector<16x32xf32>
    %691 = arith.addf %678, %690 : vector<16x32xf32>
    %cst_186 = arith.constant dense<0.000000e+00> : vector<16xf32>
    %692 = vector.multi_reduction <add>, %691, %cst_186 [1] : vector<16x32xf32> to vector<16xf32>
    %693 = vector.shape_cast %692 : vector<16xf32> to vector<16x1xf32>
    %cst_187 = arith.constant 3.200000e+01 : f32
    %694 = vector.broadcast %cst_187 : f32 to vector<16x1xf32>
    %695 = arith.divf %693, %694 : vector<16x1xf32>
    %696 = arith.mulf %691, %691 : vector<16x32xf32>
    %cst_188 = arith.constant dense<0.000000e+00> : vector<16xf32>
    %697 = vector.multi_reduction <add>, %696, %cst_188 [1] : vector<16x32xf32> to vector<16xf32>
    %698 = vector.shape_cast %697 : vector<16xf32> to vector<16x1xf32>
    %cst_189 = arith.constant 3.200000e+01 : f32
    %699 = vector.broadcast %cst_189 : f32 to vector<16x1xf32>
    %700 = arith.divf %698, %699 : vector<16x1xf32>
    %701 = arith.mulf %695, %695 : vector<16x1xf32>
    %702 = arith.subf %700, %701 : vector<16x1xf32>
    %703 = vector.broadcast %695 : vector<16x1xf32> to vector<16x32xf32>
    %704 = arith.subf %691, %703 : vector<16x32xf32>
    %cst_190 = arith.constant 9.99999974E-6 : f32
    %705 = vector.broadcast %cst_190 : f32 to vector<16x1xf32>
    %706 = arith.addf %702, %705 : vector<16x1xf32>
    %707 = math.rsqrt %706 : vector<16x1xf32>
    %708 = vector.broadcast %707 : vector<16x1xf32> to vector<16x32xf32>
    %709 = arith.mulf %704, %708 : vector<16x32xf32>
    %710 = vector.broadcast %506 : vector<1x32xf32> to vector<16x32xf32>
    %711 = arith.mulf %709, %710 : vector<16x32xf32>
    %712 = vector.broadcast %507 : vector<1x32xf32> to vector<16x32xf32>
    %713 = arith.addf %711, %712 : vector<16x32xf32>
    %c0_191 = arith.constant 0 : index
    %c0_192 = arith.constant 0 : index
    %714 = vector.load %arg16[%c0_191, %c0_192] : memref<32x128xf32, #tpu.memory_space<vmem>>, vector<32x128xf32>
    %c0_193 = arith.constant 0 : index
    %c0_194 = arith.constant 0 : index
    %715 = vector.load %arg17[%c0_193, %c0_194] : memref<1x128xf32, #tpu.memory_space<vmem>>, vector<1x128xf32>
    %cst_195 = arith.constant dense<0.000000e+00> : vector<16x128xf32>
    %716 = tpu.matmul %713, %714, %cst_195 {dimension_numbers = #tpu.dot_dimension_numbers<[1], [0], [0], [1], [0, 0, 1, 1], [], []>} : vector<16x32xf32>, vector<32x128xf32>, vector<16x128xf32> -> vector<16x128xf32>
    %717 = vector.broadcast %715 : vector<1x128xf32> to vector<16x128xf32>
    %718 = arith.addf %716, %717 : vector<16x128xf32>
    %c0_196 = arith.constant 0 : index
    %c0_197 = arith.constant 0 : index
    %719 = vector.load %arg18[%c0_196, %c0_197] : memref<16x128xf32, #tpu.memory_space<vmem>>, vector<16x128xf32>
    tpu.vector_store %arg18[%c0_196, %c0_197], %718 {strides = array<i32>} : memref<16x128xf32, #tpu.memory_space<vmem>>, vector<16x128xf32>,
    return
  }
}

</mosaic_0001>

<bundles_post_ra>
// kernel: transformer_autoencoder.1
= control target key start
LH: loop header
LB: loop body
LE: loop exit
PB: predicated region body
PF: predicated region fallthrough
CT: control target
= control target key end

     0   :  { %s14793_s0 = inlined_call_operand.vmem [shape: s32[16,1], index: 0, kind: input, shape index: {}]   ;;  %s14794_s1 = inlined_call_operand.vmem [shape: s32[16,1], index: 1, kind: input, shape index: {}]   ;;  %s14795_s2 = inlined_call_operand.vmem [shape: f32[16,32], index: 2, kind: input, shape index: {}]   ;;  %s14796_s3 = inlined_call_operand.vmem [shape: f32[2,32,96], index: 3, kind: input, shape index: {}]   ;;  %s14797_s4 = inlined_call_operand.vmem [shape: f32[2,32,32], index: 4, kind: input, shape index: {}]   ;;  %s14798_s5 = inlined_call_operand.vmem [shape: f32[2,32,64], index: 5, kind: input, shape index: {}]   ;;  %s14799_s6 = inlined_call_operand.vmem [shape: f32[2,64,32], index: 6, kind: input, shape index: {}]   ;;  %s14800_s7 = inlined_call_operand.vmem [shape: f32[2,8,128], index: 7, kind: input, shape index: {}]   ;;  %s14801_s8 = inlined_call_operand.vmem [shape: f32[2,32,96], index: 8, kind: input, shape index: {}]   ;;  %s14802_s9 = inlined_call_operand.vmem [shape: f32[2,32,32], index: 9, kind: input, shape index: {}]   ;;  %s14803_s10 = inlined_call_operand.hbm [shape: f32[2,32,32], index: 10, kind: input, shape index: {}]   ;;  %s14804_s11 = inlined_call_operand.hbm [shape: f32[2,32,64], index: 11, kind: input, shape index: {}]   ;;  %s14805_s12 = inlined_call_operand.hbm [shape: f32[2,32,32], index: 12, kind: input, shape index: {}]   ;;  %s14806_s13 = inlined_call_operand.hbm [shape: f32[2,32,64], index: 13, kind: input, shape index: {}]   ;;  %s14807_s14 = inlined_call_operand.vmem [shape: f32[2,64,32], index: 14, kind: input, shape index: {}]   ;;  %s14808_s15 = inlined_call_operand.vmem [shape: f32[2,13,128], index: 15, kind: input, shape index: {}]   ;;  %s14809_s16 = inlined_call_operand.vmem [shape: f32[32,128], index: 16, kind: input, shape index: {}]   ;;  %s14810_s17 = inlined_call_operand.vmem [shape: f32[1,128], index: 17, kind: input, shape index: {}]   ;;  %s14811_s18 = inlined_call_operand.vmem [shape: f32[16,128], index: 18, kind: output, shape index: {}]  }
   0x1   :  { %14815 = sst [smem:[#allocation12_spill]] %s14793_s0 }
   0x2   :  { %14816 = sst [smem:[#allocation13_spill]] %s14794_s1 }
   0x3   :  { %14817 = sst [smem:[#allocation14_spill]] %s14795_s2 }
   0x4   :  { %23 = vsyncpa [#allocation3], 0 }
   0x5   :  { %24 = vsyncpa [#allocation5], 0 }
   0x6   :  { %25 = vsyncpa [#allocation8], 0  ;;  %s12926_s27 = smov [#allocation4]   ;;  %s12927_s29 = smov [#allocation2]  }
   0x7   :  { %s63_s28 = sshll.u32 %s12926_s27, 4  ;;  %s51_s30 = sshll.u32 %s12927_s29, 4  ;;  %s64_s28 = int_to_ptr.vmem [resolvable:$true] %s63_s28  ;;  %s13037_s30 = int_to_ptr.vmem [resolvable:$true] %s51_s30 }
   0x8   :  { %s12832_s1 = scalar_lea.hbm %s14804_s11, 1024 }
   0x9   :  { %p12833_p0 = scmp.ne.s32.totalorder %s14804_s11, %s12832_s1  ;;  %p12836_p1 = scmp.lt.u32.totalorder %s12832_s1, %s14804_s11 }
   0xb   :  { %p12838_p2 = pnand %p12836_p1, %p12833_p0 }
   0xd   :  { %12841 = shalt.err (!%p12838_p2)
}
   0xe   :  { %s12842_s23 = scalar_lea.vmem %s64_s28, 1024  ;;  %p12847_p4 = scmp.lt.s32.totalorder %s64_s28, %s64_s28 }
   0xf   :  { %p12843_p3 = scmp.ne.s32.totalorder %s64_s28, %s12842_s23  ;;  %p12848_p5 = scmp.lt.s32.totalorder %s12842_s23, %s12842_s23 }
  0x11   :  { %p12849_p6 = por %p12848_p5, %p12847_p4 }
  0x13   :  { %p12850_p7 = pnand %p12849_p6, %p12843_p3 }
  0x15   :  { %12853 = shalt.err (!%p12850_p7)
}
  0x16   :  { %s12928_s24 = smov 128   ;;  %s12929_s25 = smov 8  }
  0x17   :  { %69 = dma.hbm_to_vmem [thread:$0]  %s14804_s11, 1024, %s64_s28, [#allocation5], %s12928_s24, %s12928_s24, %s12929_s25  }
  0x18   :  { %s12854_s19 = scalar_lea.hbm %s14803_s10, 1024 }
  0x19   :  { %p12855_p8 = scmp.ne.s32.totalorder %s14803_s10, %s12854_s19  ;;  %p12858_p9 = scmp.lt.u32.totalorder %s12854_s19, %s14803_s10 }
  0x1b   :  { %p12860_p10 = pnand %p12858_p9, %p12855_p8 }
  0x1d   :  { %12863 = shalt.err (!%p12860_p10)
}
  0x1e   :  { %s12864_s2 = scalar_lea.vmem %s13037_s30, 1024  ;;  %p12869_p12 = scmp.lt.s32.totalorder %s13037_s30, %s13037_s30 }
  0x1f   :  { %p12865_p11 = scmp.ne.s32.totalorder %s13037_s30, %s12864_s2  ;;  %p12870_p13 = scmp.lt.s32.totalorder %s12864_s2, %s12864_s2 }
  0x21   :  { %p12871_p0 = por %p12870_p13, %p12869_p12 }
  0x23   :  { %p12872_p1 = pnand %p12871_p0, %p12865_p11 }
  0x25   :  { %12875 = shalt.err (!%p12872_p1)
}
  0x26   :  { %57 = dma.hbm_to_vmem [thread:$0]  %s14803_s10, 1024, %s13037_s30, [#allocation3], %s12928_s24, %s12928_s24, %s12929_s25  }
  0x27   :  { %s12930_s23 = smov [#allocation6]   ;;  %s12931_s27 = smov [#allocation7]  }
  0x28   :  { %s75_s26 = sshll.u32 %s12930_s23, 4  ;;  %s87_s29 = sshll.u32 %s12931_s27, 4  ;;  %s76_s26 = int_to_ptr.vmem [resolvable:$true] %s75_s26  ;;  %s13074_s29 = int_to_ptr.vmem [resolvable:$true] %s87_s29 }
  0x29   :  { %s12876_s1 = scalar_lea.hbm %s14805_s12, 1024 }
  0x2a   :  { %p12877_p2 = scmp.ne.s32.totalorder %s14805_s12, %s12876_s1  ;;  %p12880_p3 = scmp.lt.u32.totalorder %s12876_s1, %s14805_s12 }
  0x2c   :  { %p12882_p4 = pnand %p12880_p3, %p12877_p2 }
  0x2e   :  { %12885 = shalt.err (!%p12882_p4)
}
  0x2f   :  { %s12886_s10 = scalar_lea.vmem %s76_s26, 1024  ;;  %p12891_p6 = scmp.lt.s32.totalorder %s76_s26, %s76_s26 }
  0x30   :  { %p12887_p5 = scmp.ne.s32.totalorder %s76_s26, %s12886_s10  ;;  %p12892_p7 = scmp.lt.s32.totalorder %s12886_s10, %s12886_s10 }
  0x32   :  { %p12893_p8 = por %p12892_p7, %p12891_p6 }
  0x34   :  { %p12894_p9 = pnand %p12893_p8, %p12887_p5 }
  0x36   :  { %12897 = shalt.err (!%p12894_p9)
}
  0x37   :  { %81 = dma.hbm_to_vmem [thread:$0]  %s14805_s12, 1024, %s76_s26, [#allocation5], %s12928_s24, %s12928_s24, %s12929_s25  }
  0x38   :  { %s12898_s27 = scalar_lea.hbm %s14806_s13, 1024 }
  0x39   :  { %p12899_p10 = scmp.ne.s32.totalorder %s14806_s13, %s12898_s27  ;;  %p12902_p11 = scmp.lt.u32.totalorder %s12898_s27, %s14806_s13 }
  0x3b   :  { %p12904_p12 = pnand %p12902_p11, %p12899_p10 }
  0x3d   :  { %12907 = shalt.err (!%p12904_p12)
}
  0x3e   :  { %s12908_s21 = scalar_lea.vmem %s13074_s29, 1024  ;;  %p12913_p0 = scmp.lt.s32.totalorder %s13074_s29, %s13074_s29 }
  0x3f   :  { %p12909_p13 = scmp.ne.s32.totalorder %s13074_s29, %s12908_s21  ;;  %p12914_p1 = scmp.lt.s32.totalorder %s12908_s21, %s12908_s21 }
  0x41   :  { %p12915_p2 = por %p12914_p1, %p12913_p0 }
  0x43   :  { %p12916_p3 = pnand %p12915_p2, %p12909_p13 }
  0x45   :  { %12919 = shalt.err (!%p12916_p3)
}
  0x46   :  { %93 = dma.hbm_to_vmem [thread:$0]  %s14806_s13, 1024, %s13074_s29, [#allocation8], %s12928_s24, %s12928_s24, %s12929_s25  }
  0x47   :  { %12920 = dma.done.wait [#allocation3], 1024  }
  0x48   :  { %12921 = vsyncadd [#allocation3], 4294966272 }
  0x49   :  { %12922 = dma.done.wait [#allocation5], 2048  }
  0x4a   :  { %12923 = vsyncadd [#allocation5], 4294965248 }
  0x4b   :  { %12924 = dma.done.wait [#allocation8], 1024  }
  0x4c   :  { %12925 = vsyncadd [#allocation8], 4294966272  ;;  %v12932_v0 = vmov 0   ;;  %s14818_s10 = sld [smem:[#allocation12_spill]]  ;;  %s14819_s28 = sld [smem:[#allocation14_spill]]  ;;  %v12933_v6 = vmov 0.0   ;;  %v116_v10 = vlaneseq }
  0x4d   :  { %12595 = vset.pattern.permute.xlu0 %v12932_v0  ;;  %12596 = vset.pattern.permute.xlu1 %v12932_v0  ;;  %v215_v7 = vld [vmem:[%s14796_s3] sm:$0xff]  ;;  %v216_v8 = vld [vmem:[%s14796_s3 + $0x8] sm:$0xff]  ;;  %vm132_vm0 = vcmask 130048   ;;  %v217_v14 = vld [vmem:[%s14796_s3 + $0x10] sm:$0xff]  ;;  %vm223_vm3 = vcmask 261120   ;;  %vm12934_vm4 = vmmov 0  }
  0x4e   :  { %11594 = vmatprep.subr.mxu0 %v12933_v6  ;;  %v12359_v9 = vpack.c.bf16 %v216_v8, %v215_v7  ;;  %v13130_v11 = vand.u32 127, %v116_v10  ;;  %v218_v15 = vld [vmem:[%s14796_s3 + $0x18] sm:$0xff]  ;;  %v13153_v21 = vshrl.u32 %v116_v10, 7  ;;  %v13161_v23 = vld [vmem:[%s14800_s7] sm:$0xff]  ;;  %11596 = vmatprep.mubr.msk.f32.mxu0 %vm12934_vm4, %v12933_v6  ;;  %s12936_s30 = smov 120   ;;  %s12937_s11 = smov 104  }
  0x4f   :  { %v12363_v17 = vpack.c.bf16 %v218_v15, %v217_v14  ;;  %s12938_s23 = smov 96   ;;  %vm325_vm5 = vcmask 64512   ;;  %s12939_s13 = smov 64   ;;  %vm1664_vm6 = vcmask 195584   ;;  %vm1900_vm7 = vcmask 523264  }
  0x50   :  { %v13156_v22 = vsub.s32 0, %v13153_v21  ;;  %s12940_s12 = smov 16   ;;  %s12941_s26 = smov 24  }
  0x52   :  { %v114_v1 = vld [vmem:[%s14818_s10] sm:$0xff]  ;;  %v131_v3 = vld [vmem:[%s14819_s28 + $0x8] sm:$0xff]  ;;  %v222_v24 = vrot.slane %v13161_v23, %v13156_v22 }
  0x53   :  { %v130_v2 = vld [vmem:[%s14819_s28] sm:$0xff]  ;;  %119 = vperm.xlu0 %12595, %v114_v1   ;;  %v115_v4 = vld [vmem:[%s14818_s10 + $0x8] sm:$0xff]  ;;  %s12935_s10 = smov 112  }
  0x54   :  { %v12355_v5 = vpack.c.bf16 %v131_v3, %v130_v2 }
  0x56   :  { %12356 = vmatprep.subr.bf16.mxu1 %v12355_v5 }
  0x57   :  { %122 = vperm.xlu0 %12595, %v115_v4   ;;  %12358 = vmatpush3.bf16.msra.mxu1 %v12355_v5 }
  0x58   :  { %12360 = vmatprep.subr.bf16.mxu1 %v12359_v9 }
  0xd2   :  { %v120_v12 = vpop.permute.xlu0 %119 }
  0xd3   :  { %vm124_vm1 = vcmp.eq.s32.totalorder %v13130_v11, %v120_v12 }
  0xd4   :  { %v10984_v13 = vsel %vm124_vm1, 1.0, %v12933_v6 }
  0xd5   :  { %11580 = vmatprep.mubr.msk.f32.mxu1 %vm132_vm0, %v10984_v13 }
  0xd6   :  { %v123_v16 = vpop.permute.xlu0 %122 }
  0xd7   :  { %vm125_vm2 = vcmp.eq.s32.totalorder %v13130_v11, %v123_v16 }
  0xd8   :  { %v10985_v18 = vsel %vm125_vm2, 1.0, %v12933_v6 }
  0xd9   :  { %11581 = vmatmul.mubr.msk.f32.vlgmr.msra.gmra.mrb[0].mxu1 %vm132_vm0, %v10985_v18 }
  0xda   :  { %12362 = vmatpush3.bf16.msra.mxu1 %v12359_v9 }
  0xdb   :  { %12364 = vmatprep.subr.bf16.mxu1 %v12363_v17 }
  0xde   :  { %12366 = vmatpush3.bf16.msra.mxu1 %v12363_v17 }
  0xdf   :  { %11604 = vmatprep.subr.mxu1 %v12933_v6 }
 0x1ac   :  { %v13145_v19 = vpop.f32.mrb[0].mxu1 }
 0x1ad   :  { %v13147_v20 = vpop.f32.mrb[1].mxu1 }
 0x1ae   :  { %11591 = vmatprep.mubr.msk.f32.mxu1 %vm223_vm3, %v13147_v20 }
 0x1af   :  { %11592 = vmatmul.mubr.msk.f32.vlgmr.msra.gmra.mrb[2].mxu1 %vm223_vm3, %v13145_v19 }
 0x1b0   :  { %11606 = vmatprep.mubr.msk.f32.mxu1 %vm12934_vm4, %v12933_v6 }
 0x282   :  { %v11593_v25 = vpop.f32.mrb[2].mxu1 }
 0x283   :  { %v296_v26 = vpop.f32.mrb[3].mxu1  ;;  %v13175_v28 = vadd.f32 %v11593_v25, %v222_v24 }
 0x284   :  { %v13169_v27 = vadd.f32 %v296_v26, %v222_v24 }
 0x286   :  { %315 = vrot.lane.b32.xlu0 %v13169_v27, %s12935_s10  ;;  %311 = vrot.lane.b32.xlu1 %v13169_v27, %s12936_s30 }
 0x28a   :  { %319 = vrot.lane.b32.xlu0 %v13169_v27, %s12937_s11  ;;  %313 = vrot.lane.b32.xlu1 %v13175_v28, %s12936_s30 }
 0x28e   :  { %323 = vrot.lane.b32.xlu0 %v13169_v27, %s12938_s23  ;;  %317 = vrot.lane.b32.xlu1 %v13175_v28, %s12935_s10 }
 0x292   :  { %321 = vrot.lane.b32.xlu1 %v13175_v28, %s12937_s11 }
 0x296   :  { %400 = vrot.lane.b32.xlu1 %v13175_v28, %s12938_s23 }
 0x2f8   :  { %v13189_v29 = vpop.permute.xlu0 %315  ;;  %v13191_v30 = vpop.permute.xlu1 %311 }
 0x2f9   :  { %476 = vrot.lane.b32.xlu0 %v13191_v30, %s12938_s23 }
 0x2fc   :  { %v13195_v31 = vpop.permute.xlu0 %319  ;;  %v13197_v32 = vpop.permute.xlu1 %313 }
 0x2fd   :  { %628 = vrot.lane.b32.xlu0 %v13189_v29, %s12938_s23  ;;  %552 = vrot.lane.b32.xlu1 %v13197_v32, %s12938_s23 }
 0x300   :  { %v324_v33 = vpop.permute.xlu0 %323  ;;  %v13203_v34 = vpop.permute.xlu1 %317 }
 0x301   :  { %11595 = vmatpush3.xpose.msk.msra.mxu0 %vm325_vm5, %v324_v33  ;;  %780 = vrot.lane.b32.xlu0 %v13195_v31, %s12938_s23 }
 0x302   :  { %704 = vrot.lane.b32.xlu1 %v13203_v34, %s12938_s23  ;;  %11599 = vmatprep.subr.mxu0 %v12933_v6 }
 0x304   :  { %11597 = vmatmul.mubr.msk.f32.vlgmr.msra.gmra.mrb[0].mxu0 %vm325_vm5, %v13169_v27  ;;  %v13213_v35 = vpop.permute.xlu1 %321 }
 0x305   :  { %11601 = vmatprep.mubr.msk.f32.mxu0 %vm12934_vm4, %v12933_v6 }
 0x306   :  { %856 = vrot.lane.b32.xlu1 %v13213_v35, %s12938_s23 }
 0x308   :  { %v401_v36 = vpop.permute.xlu1 %400 }
 0x309   :  { %11600 = vmatpush3.xpose.msk.msra.mxu0 %vm325_vm5, %v401_v36 }
 0x30a   :  { %11609 = vmatprep.subr.mxu0 %v12933_v6 }
 0x30c   :  { %11602 = vmatmul.mubr.msk.f32.vlgmr.msra.gmra.mrb[2].mxu0 %vm325_vm5, %v13175_v28 }
 0x30d   :  { %11611 = vmatprep.mubr.msk.f32.mxu0 %vm12934_vm4, %v12933_v6 }
 0x36b   :  { %v477_v37 = vpop.permute.xlu0 %476 }
 0x36c   :  { %11605 = vmatpush3.xpose.msk.msra.mxu1 %vm325_vm5, %v477_v37 }
 0x36d   :  { %11614 = vmatprep.subr.mxu1 %v12933_v6 }
 0x36f   :  { %11607 = vmatmul.mubr.msk.f32.vlgmr.msra.gmra.mrb[4].mxu1 %vm325_vm5, %v13191_v30  ;;  %v629_v38 = vpop.permute.xlu0 %628  ;;  %v553_v39 = vpop.permute.xlu1 %552 }
 0x370   :  { %11610 = vmatpush3.xpose.msk.msra.mxu0 %vm325_vm5, %v553_v39  ;;  %11615 = vmatpush3.xpose.msk.msra.mxu1 %vm325_vm5, %v629_v38 }
 0x371   :  { %11616 = vmatprep.mubr.msk.f32.mxu1 %vm12934_vm4, %v12933_v6  ;;  %11624 = vmatprep.subr.mxu1 %v12933_v6 }
 0x372   :  { %11619 = vmatprep.subr.mxu0 %v12933_v6 }
 0x373   :  { %11617 = vmatmul.mubr.msk.f32.vlgmr.msra.gmra.mrb[6].mxu1 %vm325_vm5, %v13189_v29  ;;  %v781_v40 = vpop.permute.xlu0 %780  ;;  %11612 = vmatmul.mubr.msk.f32.vlgmr.msra.gmra.mrb[4].mxu0 %vm325_vm5, %v13197_v32 }
 0x374   :  { %v705_v41 = vpop.permute.xlu1 %704  ;;  %11625 = vmatpush3.xpose.msk.msra.mxu1 %vm325_vm5, %v781_v40  ;;  %11621 = vmatprep.mubr.msk.f32.mxu0 %vm12934_vm4, %v12933_v6 }
 0x375   :  { %11620 = vmatpush3.xpose.msk.msra.mxu0 %vm325_vm5, %v705_v41  ;;  %11626 = vmatprep.mubr.msk.f32.mxu1 %vm12934_vm4, %v12933_v6 }
 0x376   :  { %11629 = vmatprep.subr.mxu0 %v12933_v6  ;;  %11634 = vmatprep.subr.mxu1 %v12933_v6 }
 0x377   :  { %11627 = vmatmul.mubr.msk.f32.vlgmr.msra.gmra.mrb[8].mxu1 %vm325_vm5, %v13195_v31 }
 0x378   :  { %11622 = vmatmul.mubr.msk.f32.vlgmr.msra.gmra.mrb[6].mxu0 %vm325_vm5, %v13203_v34  ;;  %v857_v42 = vpop.permute.xlu1 %856  ;;  %11636 = vmatprep.mubr.msk.f32.mxu1 %vm12934_vm4, %v12933_v6 }
 0x379   :  { %11630 = vmatpush3.xpose.msk.msra.mxu0 %vm325_vm5, %v857_v42  ;;  %11631 = vmatprep.mubr.msk.f32.mxu0 %vm12934_vm4, %v12933_v6 }
 0x37a   :  { %11639 = vmatprep.subr.mxu0 %v12933_v6 }
 0x37c   :  { %11632 = vmatmul.mubr.msk.f32.vlgmr.msra.gmra.mrb[8].mxu0 %vm325_vm5, %v13213_v35 }
 0x37d   :  { %11641 = vmatprep.mubr.msk.f32.mxu0 %vm12934_vm4, %v12933_v6 }
 0x3d7   :  { %v396_v43 = vpop.f32.mrb[0].mxu0 }
 0x3d8   :  { %v932_v44 = vmul.f32 0.35355338, %v396_v43  ;;  %v11598_v45 = vpop.f32.mrb[1].mxu0 }
 0x3da   :  { %v940_v46 = vsel %vm325_vm5, %v932_v44, -inf }
 0x3db   :  { %941 = vmax.xlane.f32.xlu0 %v940_v46 }
 0x3df   :  { %v472_v47 = vpop.f32.mrb[2].mxu0 }
 0x3e0   :  { %v933_v48 = vmul.f32 0.35355338, %v472_v47  ;;  %v11603_v49 = vpop.f32.mrb[3].mxu0 }
 0x3e2   :  { %v943_v50 = vsel %vm325_vm5, %v933_v48, -inf }
 0x3e3   :  { %944 = vmax.xlane.f32.xlu1 %v943_v50 }
 0x442   :  { %v548_v51 = vpop.f32.mrb[4].mxu1 }
 0x443   :  { %v934_v52 = vmul.f32 0.35355338, %v548_v51  ;;  %v11608_v53 = vpop.f32.mrb[5].mxu1 }
 0x445   :  { %v946_v54 = vsel %vm325_vm5, %v934_v52, -inf }
 0x446   :  { %947 = vmax.xlane.f32.xlu0 %v946_v54  ;;  %v624_v55 = vpop.f32.mrb[4].mxu0  ;;  %v700_v56 = vpop.f32.mrb[6].mxu1 }
 0x447   :  { %v935_v57 = vmul.f32 0.35355338, %v624_v55  ;;  %v936_v58 = vmul.f32 0.35355338, %v700_v56  ;;  %v11613_v59 = vpop.f32.mrb[5].mxu0  ;;  %v11618_v60 = vpop.f32.mrb[7].mxu1 }
 0x449   :  { %v952_v61 = vsel %vm325_vm5, %v936_v58, -inf  ;;  %v949_v62 = vsel %vm325_vm5, %v935_v57, -inf }
 0x44a   :  { %v852_v63 = vpop.f32.mrb[8].mxu1  ;;  %953 = vmax.xlane.f32.xlu1 %v952_v61  ;;  %950 = vmax.xlane.f32.xlu0 %v949_v62 }
 0x44b   :  { %v938_v0 = vmul.f32 0.35355338, %v852_v63  ;;  %v776_v1 = vpop.f32.mrb[6].mxu0  ;;  %v11628_v2 = vpop.f32.mrb[9].mxu1 }
 0x44c   :  { %v937_v3 = vmul.f32 0.35355338, %v776_v1  ;;  %v11623_v4 = vpop.f32.mrb[7].mxu0 }
 0x44d   :  { %v958_v5 = vsel %vm325_vm5, %v938_v0, -inf }
 0x44e   :  { %959 = vmax.xlane.f32.xlu1 %v958_v5  ;;  %v955_v7 = vsel %vm325_vm5, %v937_v3, -inf }
 0x44f   :  { %956 = vmax.xlane.f32.xlu0 %v955_v7  ;;  %v928_v8 = vpop.f32.mrb[8].mxu0 }
 0x450   :  { %v939_v9 = vmul.f32 0.35355338, %v928_v8  ;;  %v11633_v10 = vpop.f32.mrb[9].mxu0 }
 0x452   :  { %v961_v12 = vsel %vm325_vm5, %v939_v9, -inf }
 0x453   :  { %962 = vmax.xlane.f32.xlu0 %v961_v12 }
 0x45f   :  { %1028 = vrot.lane.b32.xlu1 %v13169_v27, %s12939_s13 }
 0x463   :  { %1180 = vrot.lane.b32.xlu1 %v13191_v30, %s12939_s13 }
 0x467   :  { %1256 = vrot.lane.b32.xlu1 %v13197_v32, %s12939_s13 }
 0x468   :  { %v942_v14 = vpop.xlane.xlu0 %941 }
 0x469   :  { %1104 = vrot.lane.b32.xlu0 %v13175_v28, %s12939_s13  ;;  %v964_v16 = vsub.f32 %v932_v44, %v942_v14 }
 0x46b   :  { %1408 = vrot.lane.b32.xlu1 %v13203_v34, %s12939_s13  ;;  %v972_v18 = vmul.f32 1.442695, %v964_v16 }
 0x46d   :  { %1332 = vrot.lane.b32.xlu0 %v13189_v29, %s12939_s13 }
 0x470   :  { %v945_v13 = vpop.xlane.xlu1 %944 }
 0x471   :  { %v965_v15 = vsub.f32 %v933_v48, %v945_v13 }
 0x473   :  { %v974_v17 = vmul.f32 1.442695, %v965_v15 }
 0x475   :  { %12597 = vpow2.f32 %v974_v17 }
 0x476   :  { %12599 = vpow2.f32 %v972_v18 }
 0x47f   :  { %v13281_v24 = vpop.eup %12597 }
 0x480   :  { %v13283_v25 = vpop.eup %12599  ;;  %v991_v26 = vsel %vm325_vm5, %v13281_v24, 0.0 }
 0x481   :  { %v988_v27 = vsel %vm325_vm5, %v13283_v25, 0.0 }
 0x48c   :  { %992 = vadd.xlane.f32.xlu0 %v991_v26 }
 0x48f   :  { %989 = vadd.xlane.f32.xlu1 %v988_v27 }
 0x4d3   :  { %v948_v28 = vpop.xlane.xlu0 %947 }
 0x4d4   :  { %v966_v29 = vsub.f32 %v934_v52, %v948_v28 }
 0x4d6   :  { %v976_v30 = vmul.f32 1.442695, %v966_v29 }
 0x4d7   :  { %v951_v32 = vpop.xlane.xlu0 %950  ;;  %v954_v33 = vpop.xlane.xlu1 %953 }
 0x4d8   :  { %12601 = vpow2.f32 %v976_v30  ;;  %v967_v34 = vsub.f32 %v935_v57, %v951_v32  ;;  %v968_v36 = vsub.f32 %v936_v58, %v954_v33 }
 0x4da   :  { %v978_v37 = vmul.f32 1.442695, %v967_v34  ;;  %v980_v38 = vmul.f32 1.442695, %v968_v36 }
 0x4db   :  { %v960_v39 = vpop.xlane.xlu1 %959 }
 0x4dc   :  { %12603 = vpow2.f32 %v978_v37  ;;  %v957_v40 = vpop.xlane.xlu0 %956  ;;  %v970_v41 = vsub.f32 %v938_v0, %v960_v39  ;;  %v305_v39 = vld [vmem:[%s14797_s4] sm:$0xff] }
 0x4dd   :  { %12605 = vpow2.f32 %v980_v38  ;;  %v969_v42 = vsub.f32 %v937_v3, %v957_v40  ;;  %v306_v40 = vld [vmem:[%s14797_s4 + $0x8] sm:$0xff] }
 0x4de   :  { %v984_v43 = vmul.f32 1.442695, %v970_v41  ;;  %v12367_v41 = vpack.c.bf16 %v306_v40, %v305_v39 }
 0x4df   :  { %v982_v44 = vmul.f32 1.442695, %v969_v42  ;;  %v1029_v45 = vpop.permute.xlu1 %1028  ;;  %v307_v42 = vld [vmem:[%s14797_s4 + $0x10] sm:$0xff] }
 0x4e0   :  { %12607 = vpow2.f32 %v984_v43  ;;  %v963_v46 = vpop.xlane.xlu0 %962  ;;  %11635 = vmatpush3.msra.mxu1 %v1029_v45  ;;  %v308_v43 = vld [vmem:[%s14797_s4 + $0x18] sm:$0xff] }
 0x4e1   :  { %12609 = vpow2.f32 %v982_v44  ;;  %v971_v47 = vsub.f32 %v939_v9, %v963_v46  ;;  %11644 = vmatprep.subr.mxu1 %v12933_v6  ;;  %v12371_v44 = vpack.c.bf16 %v308_v43, %v307_v42 }
 0x4e2   :  { %v12602_v48 = vpop.eup %12601 }
 0x4e3   :  { %v986_v49 = vmul.f32 1.442695, %v971_v47  ;;  %v994_v50 = vsel %vm325_vm5, %v12602_v48, 0.0  ;;  %v1181_v62 = vpop.permute.xlu1 %1180 }
 0x4e4   :  { %v1105_v51 = vpop.permute.xlu0 %1104  ;;  %995 = vadd.xlane.f32.xlu1 %v994_v50 }
 0x4e5   :  { %12611 = vpow2.f32 %v986_v49  ;;  %11640 = vmatpush3.msra.mxu0 %v1105_v51 }
 0x4e6   :  { %v12604_v52 = vpop.eup %12603  ;;  %11649 = vmatprep.subr.mxu0 %v12933_v6 }
 0x4e7   :  { %v12606_v53 = vpop.eup %12605  ;;  %v997_v54 = vsel %vm325_vm5, %v12604_v52, 0.0  ;;  %v1257_v63 = vpop.permute.xlu1 %1256 }
 0x4e8   :  { %998 = vadd.xlane.f32.xlu0 %v997_v54  ;;  %v1000_v55 = vsel %vm325_vm5, %v12606_v53, 0.0  ;;  %v1333_v0 = vpop.permute.xlu0 %1332 }
 0x4e9   :  { %1001 = vadd.xlane.f32.xlu1 %v1000_v55 }
 0x4ea   :  { %v13294_v56 = vpop.eup %12607 }
 0x4eb   :  { %v12610_v57 = vpop.eup %12609  ;;  %v1006_v58 = vsel %vm325_vm5, %v13294_v56, 0.0  ;;  %v1409_v1 = vpop.permute.xlu1 %1408 }
 0x4ec   :  { %v1003_v59 = vsel %vm325_vm5, %v12610_v57, 0.0 }
 0x4ed   :  { %1004 = vadd.xlane.f32.xlu0 %v1003_v59  ;;  %1007 = vadd.xlane.f32.xlu1 %v1006_v58 }
 0x4ef   :  { %v13299_v60 = vpop.eup %12611 }
 0x4f0   :  { %v1009_v61 = vsel %vm325_vm5, %v13299_v60, 0.0 }
 0x4f1   :  { %1010 = vadd.xlane.f32.xlu0 %v1009_v61 }
 0x4fe   :  { %1560 = vrot.lane.b32.xlu1 %v13213_v35, %s12939_s13 }
 0x507   :  { %1484 = vrot.lane.b32.xlu0 %v13195_v31, %s12939_s13 }
 0x519   :  { %v993_v2 = vpop.xlane.xlu0 %992 }
 0x51a   :  { %12613 = vrcp.f32 %v993_v2 }
 0x51c   :  { %v990_v3 = vpop.xlane.xlu1 %989 }
 0x51d   :  { %12615 = vrcp.f32 %v990_v3 }
 0x524   :  { %v12614_v4 = vpop.eup %12613 }
 0x525   :  { %v1021_v5 = vmul.f32 %v12614_v4, %v13281_v24 }
 0x527   :  { %v12616_v7 = vpop.eup %12615  ;;  %11642 = vmatmul.mubr.msk.f32.vlgmr.msra.gmra.mrb[10].mxu0 %vm325_vm5, %v1021_v5  ;;  %v13362_v5 = vsub.s32 1, %v13153_v21 }
 0x528   :  { %11650 = vmatpush3.msra.mxu0 %v1257_v63  ;;  %v1020_v35 = vmul.f32 %v12616_v7, %v13283_v25  ;;  %11651 = vmatprep.mubr.msk.f32.mxu0 %vm12934_vm4, %v12933_v6 }
 0x529   :  { %11659 = vmatprep.subr.mxu0 %v12933_v6  ;;  %v1670_v7 = vrot.slane %v13161_v23, %v13362_v5 }
 0x52a   :  { %11637 = vmatmul.mubr.msk.f32.vlgmr.msra.gmra.mrb[10].mxu1 %vm325_vm5, %v1020_v35 }
 0x52b   :  { %11645 = vmatpush3.msra.mxu1 %v1181_v62  ;;  %11646 = vmatprep.mubr.msk.f32.mxu1 %vm12934_vm4, %v12933_v6 }
 0x52c   :  { %11654 = vmatprep.subr.mxu1 %v12933_v6 }
 0x571   :  { %v996_v31 = vpop.xlane.xlu1 %995 }
 0x572   :  { %12617 = vrcp.f32 %v996_v31 }
 0x575   :  { %v999_v8 = vpop.xlane.xlu0 %998 }
 0x576   :  { %12619 = vrcp.f32 %v999_v8  ;;  %v1002_v9 = vpop.xlane.xlu1 %1001 }
 0x577   :  { %12621 = vrcp.f32 %v1002_v9 }
 0x57a   :  { %v1005_v10 = vpop.xlane.xlu0 %1004  ;;  %v1008_v12 = vpop.xlane.xlu1 %1007 }
 0x57b   :  { %12623 = vrcp.f32 %v1005_v10 }
 0x57c   :  { %v12618_v13 = vpop.eup %12617  ;;  %12625 = vrcp.f32 %v1008_v12 }
 0x57d   :  { %v1022_v14 = vmul.f32 %v12618_v13, %v12602_v48 }
 0x57e   :  { %v1011_v15 = vpop.xlane.xlu0 %1010  ;;  %v1561_v30 = vpop.permute.xlu1 %1560 }
 0x57f   :  { %12627 = vrcp.f32 %v1011_v15  ;;  %11647 = vmatmul.mubr.msk.f32.vlgmr.msra.gmra.mrb[12].mxu1 %vm325_vm5, %v1022_v14 }
 0x580   :  { %v12620_v16 = vpop.eup %12619  ;;  %11655 = vmatpush3.msra.mxu1 %v1333_v0  ;;  %11656 = vmatprep.mubr.msk.f32.mxu1 %vm12934_vm4, %v12933_v6 }
 0x581   :  { %v12622_v17 = vpop.eup %12621  ;;  %11664 = vmatprep.subr.mxu1 %v12933_v6  ;;  %v1023_v18 = vmul.f32 %v12620_v16, %v12604_v52 }
 0x582   :  { %v1485_v24 = vpop.permute.xlu0 %1484  ;;  %v1024_v25 = vmul.f32 %v12622_v17, %v12606_v53 }
 0x583   :  { %11652 = vmatmul.mubr.msk.f32.vlgmr.msra.gmra.mrb[12].mxu0 %vm325_vm5, %v1023_v18 }
 0x584   :  { %11657 = vmatmul.mubr.msk.f32.vlgmr.msra.gmra.mrb[14].mxu1 %vm325_vm5, %v1024_v25  ;;  %11660 = vmatpush3.msra.mxu0 %v1409_v1 }
 0x585   :  { %v12624_v26 = vpop.eup %12623  ;;  %11665 = vmatpush3.msra.mxu1 %v1485_v24  ;;  %11661 = vmatprep.mubr.msk.f32.mxu0 %vm12934_vm4, %v12933_v6  ;;  %v1799_v24 = vld [vmem:[%s14798_s5 + $0x10] sm:$0xff] }
 0x586   :  { %v12626_v27 = vpop.eup %12625  ;;  %11666 = vmatprep.mubr.msk.f32.mxu1 %vm12934_vm4, %v12933_v6  ;;  %11669 = vmatprep.subr.mxu0 %v12933_v6  ;;  %v1025_v28 = vmul.f32 %v12624_v26, %v12610_v57  ;;  %v1800_v26 = vld [vmem:[%s14798_s5 + $0x18] sm:$0xff] }
 0x587   :  { %v1026_v29 = vmul.f32 %v12626_v27, %v13294_v56  ;;  %12368 = vmatprep.subr.bf16.mxu1 %v12367_v41  ;;  %v12379_v27 = vpack.c.bf16 %v1800_v26, %v1799_v24 }
 0x588   :  { %11662 = vmatmul.mubr.msk.f32.vlgmr.msra.gmra.mrb[14].mxu0 %vm325_vm5, %v1025_v28  ;;  %v1801_v28 = vld [vmem:[%s14799_s6] sm:$0xff] }
 0x589   :  { %v12628_v32 = vpop.eup %12627  ;;  %11667 = vmatmul.mubr.msk.f32.vlgmr.msra.gmra.mrb[16].mxu1 %vm325_vm5, %v1026_v29  ;;  %11670 = vmatpush3.msra.mxu0 %v1561_v30  ;;  %v1802_v29 = vld [vmem:[%s14799_s6 + $0x8] sm:$0xff]  ;;  %v1803_v30 = vld [vmem:[%s14799_s6 + $0x10] sm:$0xff] }
 0x58a   :  { %11671 = vmatprep.mubr.msk.f32.mxu0 %vm12934_vm4, %v12933_v6  ;;  %v1027_v33 = vmul.f32 %v12628_v32, %v13299_v60  ;;  %12370 = vmatpush3.bf16.msra.mxu1 %v12367_v41  ;;  %v12383_v32 = vpack.c.bf16 %v1802_v29, %v1801_v28 }
 0x58b   :  { %12372 = vmatprep.subr.bf16.mxu1 %v12371_v44 }
 0x58c   :  { %11672 = vmatmul.mubr.msk.f32.vlgmr.msra.gmra.mrb[16].mxu0 %vm325_vm5, %v1027_v33  ;;  %v1804_v33 = vld [vmem:[%s14799_s6 + $0x18] sm:$0xff] }
 0x58e   :  { %12374 = vmatpush3.bf16.msra.mxu1 %v12371_v44 }
 0x58f   :  { %12384 = vmatprep.subr.bf16.mxu1 %v12383_v32 }
 0x5fa   :  { %v1176_v34 = vpop.f32.mrb[10].mxu0 }
 0x5fb   :  { %v11643_v36 = vpop.f32.mrb[11].mxu0 }
 0x5fc   :  { %v1805_v36 = vld [vmem:[%s14799_s6 + $0x20] sm:$0xff] }
 0x5fd   :  { %v1100_v37 = vpop.f32.mrb[10].mxu1 }
 0x5fe   :  { %v11638_v38 = vpop.f32.mrb[11].mxu1 }
 0x652   :  { %v1252_v45 = vpop.f32.mrb[12].mxu1 }
 0x653   :  { %1638 = vrot.lane.b32.xlu0 %v1252_v45, %s12929_s25  ;;  %v11648_v46 = vpop.f32.mrb[13].mxu1 }
 0x656   :  { %v1328_v47 = vpop.f32.mrb[12].mxu0 }
 0x657   :  { %v1404_v48 = vpop.f32.mrb[14].mxu1  ;;  %1640 = vrot.lane.b32.xlu1 %v1328_v47, %s12929_s25  ;;  %v11653_v49 = vpop.f32.mrb[13].mxu0 }
 0x658   :  { %1646 = vrot.lane.b32.xlu0 %v1404_v48, %s12940_s12  ;;  %v11658_v50 = vpop.f32.mrb[15].mxu1 }
 0x65b   :  { %v1480_v51 = vpop.f32.mrb[14].mxu0 }
 0x65c   :  { %v1556_v52 = vpop.f32.mrb[16].mxu1  ;;  %1648 = vrot.lane.b32.xlu1 %v1480_v51, %s12940_s12  ;;  %v11663_v53 = vpop.f32.mrb[15].mxu0 }
 0x65d   :  { %1654 = vrot.lane.b32.xlu0 %v1556_v52, %s12941_s26  ;;  %v11668_v54 = vpop.f32.mrb[17].mxu1  ;;  %v13408_v53 = vsub.s32 2, %v13153_v21 }
 0x65e   :  { %v13411_v54 = vsub.s32 3, %v13153_v21 }
 0x65f   :  { %v1632_v55 = vpop.f32.mrb[16].mxu0 }
 0x660   :  { %1656 = vrot.lane.b32.xlu1 %v1632_v55, %s12941_s26  ;;  %v11673_v56 = vpop.f32.mrb[17].mxu0 }
 0x661   :  { %v1788_v56 = vrot.slane %v13161_v23, %v13408_v53 }
 0x6c5   :  { %v1639_v57 = vpop.permute.xlu0 %1638 }
 0x6c6   :  { %v1660_v60 = vsel %vm325_vm5, %v1100_v37, %v1639_v57  ;;  %v1806_v37 = vld [vmem:[%s14799_s6 + $0x28] sm:$0xff] }
 0x6c7   :  { %v12391_v38 = vpack.c.bf16 %v1806_v37, %v1805_v36  ;;  %v11023_v36 = vld [vmem:[%s14796_s3 + $0x30] sm:$0xff] }
 0x6c9   :  { %v1641_v58 = vpop.permute.xlu1 %1640 }
 0x6ca   :  { %v1647_v59 = vpop.permute.xlu0 %1646  ;;  %v1661_v1 = vsel %vm325_vm5, %v1176_v34, %v1641_v58  ;;  %v12387_v34 = vpack.c.bf16 %v1804_v33, %v1803_v30  ;;  %v11021_v33 = vld [vmem:[%s14796_s3 + $0x20] sm:$0xff] }
 0x6cb   :  { %v1662_v62 = vsel %vm132_vm0, %v1660_v60, %v1647_v59  ;;  %v1794_v59 = vrot.slane %v13161_v23, %v13411_v54 }
 0x6ce   :  { %v1649_v61 = vpop.permute.xlu1 %1648 }
 0x6cf   :  { %v1655_v63 = vpop.permute.xlu0 %1654  ;;  %v1663_v2 = vsel %vm132_vm0, %v1661_v1, %v1649_v61 }
 0x6d0   :  { %v1665_v0 = vsel %vm1664_vm6, %v1662_v62, %v1655_v63 }
 0x6d1   :  { %11682 = vmatprep.mubr.msk.f32.mxu1 %vm223_vm3, %v1665_v0 }
 0x6d2   :  { %v1657_v3 = vpop.permute.xlu1 %1656 }
 0x6d3   :  { %v1666_v4 = vsel %vm1664_vm6, %v1663_v2, %v1657_v3  ;;  %v1807_v3 = vld [vmem:[%s14799_s6 + $0x30] sm:$0xff] }
 0x6d4   :  { %11683 = vmatmul.mubr.msk.f32.vlgmr.msra.gmra.mrb[18].mxu1 %vm223_vm3, %v1666_v4  ;;  %v1808_v4 = vld [vmem:[%s14799_s6 + $0x38] sm:$0xff] }
 0x6d5   :  { %12386 = vmatpush3.bf16.msra.mxu1 %v12383_v32 }
 0x6d6   :  { %12388 = vmatprep.subr.bf16.mxu1 %v12387_v34 }
 0x6d9   :  { %12390 = vmatpush3.bf16.msra.mxu1 %v12387_v34  ;;  %v11022_v34 = vld [vmem:[%s14796_s3 + $0x28] sm:$0xff] }
 0x6da   :  { %12392 = vmatprep.subr.bf16.mxu1 %v12391_v38  ;;  %v12399_v37 = vpack.c.bf16 %v11022_v34, %v11021_v33 }
 0x6dd   :  { %12394 = vmatpush3.bf16.msra.mxu1 %v12391_v38  ;;  %v11024_v38 = vld [vmem:[%s14796_s3 + $0x38] sm:$0xff]  ;;  %s14820_s3 = sld [smem:[#allocation13_spill]] }
 0x7a7   :  { %v11684_v35 = vpop.f32.mrb[18].mxu1 }
 0x7a8   :  { %v1749_v31 = vadd.f32 %v11684_v35, %v1670_v7  ;;  %v1743_v8 = vpop.f32.mrb[19].mxu1  ;;  %v13428_v35 = vsub.s32 4, %v13153_v21 }
 0x7a9   :  { %v1744_v9 = vadd.f32 %v1743_v8, %v1670_v7  ;;  %v12395_v7 = vpack.c.bf16 %v1808_v4, %v1807_v3 }
 0x7aa   :  { %v13367_v10 = vadd.f32 %v13145_v19, %v1749_v31  ;;  %v1797_v19 = vld [vmem:[%s14798_s5] sm:$0xff]  ;;  %v1812_v31 = vrot.slane %v13161_v23, %v13428_v35 }
 0x7ab   :  { %v1752_v12 = vadd.f32 %v1744_v9, %v13147_v20  ;;  %v1798_v20 = vld [vmem:[%s14798_s5 + $0x8] sm:$0xff]  ;;  %12396 = vmatprep.subr.bf16.mxu1 %v12395_v7 }
 0x7ac   :  { %v1757_v13 = vsel %vm223_vm3, %v13367_v10, 0.0  ;;  %v1764_v17 = vmul.f32 %v13367_v10, %v13367_v10  ;;  %v12375_v25 = vpack.c.bf16 %v1798_v20, %v1797_v19  ;;  %12398 = vmatpush3.bf16.msra.mxu1 %v12395_v7 }
 0x7ad   :  { %1758 = vadd.xlane.f32.xlu1 %v1757_v13  ;;  %v1754_v14 = vsel %vm223_vm3, %v1752_v12, 0.0  ;;  %v1763_v15 = vmul.f32 %v1752_v12, %v1752_v12  ;;  %11736 = vmatprep.subr.mxu1 %v12933_v6 }
 0x7ae   :  { %1755 = vadd.xlane.f32.xlu0 %v1754_v14  ;;  %v1768_v18 = vsel %vm223_vm3, %v1764_v17, 0.0  ;;  %12376 = vmatprep.subr.bf16.mxu0 %v12375_v25 }
 0x7af   :  { %v1765_v16 = vsel %vm223_vm3, %v1763_v15, 0.0  ;;  %12378 = vmatpush3.bf16.msra.mxu0 %v12375_v25  ;;  %v13437_v15 = vsub.s32 5, %v13153_v21 }
 0x7b0   :  { %12380 = vmatprep.subr.bf16.mxu0 %v12379_v27 }
 0x7b2   :  { %1766 = vadd.xlane.f32.xlu0 %v1765_v16  ;;  %v1899_v16 = vrot.slane %v13161_v23, %v13437_v15 }
 0x7b3   :  { %12382 = vmatpush3.bf16.msra.mxu0 %v12379_v27 }
 0x7b4   :  { %12400 = vmatprep.subr.bf16.mxu0 %v12399_v37 }
 0x7b6   :  { %1769 = vadd.xlane.f32.xlu0 %v1768_v18 }
 0x83a   :  { %v1759_v41 = vpop.xlane.xlu1 %1758 }
 0x83b   :  { %v1756_v39 = vpop.xlane.xlu0 %1755  ;;  %v1762_v43 = vmul.f32 0.03125, %v1759_v41 }
 0x83c   :  { %v1761_v40 = vmul.f32 0.03125, %v1756_v39  ;;  %v12403_v39 = vpack.c.bf16 %v11024_v38, %v11023_v36 }
 0x83d   :  { %v1774_v48 = vmul.f32 %v1762_v43, %v1762_v43  ;;  %v1778_v60 = vsub.f32 %v13367_v10, %v1762_v43 }
 0x83e   :  { %v1773_v44 = vmul.f32 %v1761_v40, %v1761_v40  ;;  %v1777_v55 = vsub.f32 %v1752_v12, %v1761_v40 }
 0x83f   :  { %v1767_v42 = vpop.xlane.xlu0 %1766 }
 0x840   :  { %v1771_v45 = vmul.f32 0.03125, %v1767_v42 }
 0x842   :  { %v1775_v46 = vsub.f32 %v1771_v45, %v1773_v44 }
 0x843   :  { %v1770_v47 = vpop.xlane.xlu0 %1769 }
 0x844   :  { %v1779_v49 = vadd.f32 1e-05, %v1775_v46  ;;  %v1772_v50 = vmul.f32 0.03125, %v1770_v47 }
 0x846   :  { %12629 = vrsqrt.f32 %v1779_v49  ;;  %v1776_v51 = vsub.f32 %v1772_v50, %v1774_v48 }
 0x848   :  { %v1780_v52 = vadd.f32 1e-05, %v1776_v51 }
 0x84a   :  { %12631 = vrsqrt.f32 %v1780_v52 }
 0x850   :  { %v12630_v57 = vpop.eup %12629 }
 0x851   :  { %v1783_v58 = vmul.f32 %v12630_v57, %v1777_v55  ;;  %v13462_v57 = vsub.s32 7, %v13153_v21 }
 0x853   :  { %v1789_v61 = vmul.f32 %v1788_v56, %v1783_v58 }
 0x854   :  { %v12632_v62 = vpop.eup %12631 }
 0x855   :  { %v1784_v63 = vmul.f32 %v12632_v62, %v1778_v60  ;;  %v1795_v0 = vadd.f32 %v1794_v59, %v1789_v61 }
 0x857   :  { %v1790_v1 = vmul.f32 %v1788_v56, %v1784_v63  ;;  %11693 = vmatprep.mubr.msk.f32.mxu0 %vm223_vm3, %v1795_v0  ;;  %v13459_v56 = vsub.s32 6, %v13153_v21  ;;  %v13481_v21 = vld [vmem:[%s14800_s7 + $0x8] sm:$0xff] }
 0x859   :  { %v1796_v2 = vadd.f32 %v1794_v59, %v1790_v1  ;;  %v2017_v59 = vrot.slane %v13161_v23, %v13459_v56  ;;  %v2023_v1 = vrot.slane %v13161_v23, %v13462_v57  ;;  %v2036_v23 = vrot.slane %v13481_v21, %v13156_v22 }
 0x85b   :  { %11694 = vmatmul.mubr.msk.f32.vlgmr.msra.gmra.mrb[18].mxu0 %vm223_vm3, %v1796_v2 }
 0x85c   :  { %12402 = vmatpush3.bf16.msra.mxu0 %v12399_v37 }
 0x85d   :  { %12404 = vmatprep.subr.bf16.mxu0 %v12403_v39 }
 0x860   :  { %12406 = vmatpush3.bf16.msra.mxu0 %v12403_v39 }
 0x861   :  { %11726 = vmatprep.subr.mxu0 %v12933_v6 }
 0x92e   :  { %v11695_v8 = vpop.f32.mrb[18].mxu0 }
 0x92f   :  { %v1891_v9 = vadd.f32 %v11695_v8, %v1812_v31  ;;  %v1885_v10 = vpop.f32.mrb[19].mxu0 }
 0x930   :  { %v1886_v12 = vadd.f32 %v1885_v10, %v1812_v31 }
 0x931   :  { %v1895_v14 = vmax.f32 %v1891_v9, 0.0 }
 0x932   :  { %v1894_v13 = vmax.f32 %v1886_v12, 0.0 }
 0x934   :  { %11712 = vmatprep.mubr.msk.f32.mxu1 %vm1900_vm7, %v1894_v13 }
 0x935   :  { %11713 = vmatmul.mubr.msk.f32.vlgmr.msra.gmra.mrb[20].mxu1 %vm1900_vm7, %v1895_v14 }
 0x936   :  { %11738 = vmatprep.mubr.msk.f32.mxu1 %vm12934_vm4, %v12933_v6 }
 0xa08   :  { %v11714_v17 = vpop.f32.mrb[20].mxu1 }
 0xa09   :  { %v1979_v18 = vadd.f32 %v11714_v17, %v1899_v16  ;;  %v1973_v19 = vpop.f32.mrb[21].mxu1 }
 0xa0a   :  { %v1974_v20 = vadd.f32 %v1973_v19, %v1899_v16 }
 0xa0b   :  { %v1983_v24 = vadd.f32 %v1979_v18, %v1796_v2 }
 0xa0c   :  { %v1982_v25 = vadd.f32 %v1974_v20, %v1795_v0 }
 0xa0d   :  { %v1987_v26 = vsel %vm223_vm3, %v1983_v24, 0.0  ;;  %v1993_v27 = vmul.f32 %v1983_v24, %v1983_v24 }
 0xa0e   :  { %1988 = vadd.xlane.f32.xlu0 %v1987_v26  ;;  %v1984_v28 = vsel %vm223_vm3, %v1982_v25, 0.0  ;;  %v1992_v29 = vmul.f32 %v1982_v25, %v1982_v25 }
 0xa0f   :  { %1985 = vadd.xlane.f32.xlu1 %v1984_v28  ;;  %v1997_v30 = vsel %vm223_vm3, %v1993_v27, 0.0 }
 0xa10   :  { %v1994_v32 = vsel %vm223_vm3, %v1992_v29, 0.0 }
 0xa12   :  { %1998 = vadd.xlane.f32.xlu0 %v1997_v30 }
 0xa13   :  { %1995 = vadd.xlane.f32.xlu1 %v1994_v32 }
 0xa9b   :  { %v1989_v40 = vpop.xlane.xlu0 %1988 }
 0xa9c   :  { %v1991_v41 = vmul.f32 0.03125, %v1989_v40  ;;  %v1986_v42 = vpop.xlane.xlu1 %1985 }
 0xa9d   :  { %v1990_v43 = vmul.f32 0.03125, %v1986_v42 }
 0xa9e   :  { %v2003_v45 = vmul.f32 %v1991_v41, %v1991_v41  ;;  %v2007_v58 = vsub.f32 %v1983_v24, %v1991_v41 }
 0xa9f   :  { %v1999_v44 = vpop.xlane.xlu0 %1998  ;;  %v2002_v48 = vmul.f32 %v1990_v43, %v1990_v43  ;;  %v2006_v61 = vsub.f32 %v1982_v25, %v1990_v43 }
 0xaa0   :  { %v2001_v46 = vmul.f32 0.03125, %v1999_v44  ;;  %v1996_v47 = vpop.xlane.xlu1 %1995 }
 0xaa1   :  { %v2000_v49 = vmul.f32 0.03125, %v1996_v47 }
 0xaa2   :  { %v2005_v50 = vsub.f32 %v2001_v46, %v2003_v45 }
 0xaa3   :  { %v2004_v51 = vsub.f32 %v2000_v49, %v2002_v48 }
 0xaa4   :  { %v2009_v52 = vadd.f32 1e-05, %v2005_v50 }
 0xaa5   :  { %v2008_v55 = vadd.f32 1e-05, %v2004_v51 }
 0xaa6   :  { %12633 = vrsqrt.f32 %v2009_v52 }
 0xaa7   :  { %12635 = vrsqrt.f32 %v2008_v55 }
 0xab0   :  { %v12634_v60 = vpop.eup %12633 }
 0xab1   :  { %v12636_v62 = vpop.eup %12635  ;;  %v2013_v63 = vmul.f32 %v12634_v60, %v2007_v58 }
 0xab2   :  { %v2012_v0 = vmul.f32 %v12636_v62, %v2006_v61 }
 0xab3   :  { %v2019_v2 = vmul.f32 %v2017_v59, %v2013_v63 }
 0xab4   :  { %v2018_v3 = vmul.f32 %v2017_v59, %v2012_v0 }
 0xab5   :  { %v13470_v7 = vadd.f32 %v2023_v1, %v2019_v2 }
 0xab6   :  { %v13468_v4 = vadd.f32 %v2023_v1, %v2018_v3 }
 0xab8   :  { %11723 = vmatprep.mubr.msk.f32.mxu0 %vm223_vm3, %v13468_v4 }
 0xab9   :  { %11724 = vmatmul.mubr.msk.f32.vlgmr.msra.gmra.mrb[20].mxu0 %vm223_vm3, %v13470_v7 }
 0xaba   :  { %11728 = vmatprep.mubr.msk.f32.mxu0 %vm12934_vm4, %v12933_v6 }
 0xb8c   :  { %v11725_v31 = vpop.f32.mrb[20].mxu0 }
 0xb8d   :  { %v13485_v8 = vadd.f32 %v11725_v31, %v2036_v23  ;;  %v2109_v9 = vpop.f32.mrb[21].mxu0 }
 0xb8e   :  { %v13487_v10 = vadd.f32 %v2109_v9, %v2036_v23 }
 0xb8f   :  { %2127 = vrot.lane.b32.xlu0 %v13485_v8, %s12936_s30 }
 0xb90   :  { %2125 = vrot.lane.b32.xlu1 %v13487_v10, %s12936_s30 }
 0xb93   :  { %2133 = vrot.lane.b32.xlu0 %v13487_v10, %s12937_s11 }
 0xb94   :  { %2129 = vrot.lane.b32.xlu1 %v13487_v10, %s12935_s10 }
 0xb97   :  { %2137 = vrot.lane.b32.xlu0 %v13487_v10, %s12938_s23 }
 0xb98   :  { %2131 = vrot.lane.b32.xlu1 %v13485_v8, %s12935_s10 }
 0xb9c   :  { %2135 = vrot.lane.b32.xlu1 %v13485_v8, %s12937_s11 }
 0xba0   :  { %2213 = vrot.lane.b32.xlu1 %v13485_v8, %s12938_s23 }
 0xc01   :  { %v13505_v12 = vpop.permute.xlu0 %2127 }
 0xc02   :  { %2365 = vrot.lane.b32.xlu1 %v13505_v12, %s12938_s23  ;;  %v13509_v13 = vpop.permute.xlu1 %2125 }
 0xc03   :  { %2289 = vrot.lane.b32.xlu0 %v13509_v13, %s12938_s23 }
 0xc05   :  { %v13513_v14 = vpop.permute.xlu0 %2133 }
 0xc06   :  { %v13515_v16 = vpop.permute.xlu1 %2129 }
 0xc07   :  { %2441 = vrot.lane.b32.xlu0 %v13515_v16, %s12938_s23 }
 0xc09   :  { %v2138_v17 = vpop.permute.xlu0 %2137 }
 0xc0a   :  { %11727 = vmatpush3.xpose.msk.msra.mxu0 %vm325_vm5, %v2138_v17  ;;  %v13520_v18 = vpop.permute.xlu1 %2131 }
 0xc0b   :  { %2593 = vrot.lane.b32.xlu0 %v13513_v14, %s12938_s23  ;;  %2517 = vrot.lane.b32.xlu1 %v13520_v18, %s12938_s23 }
 0xc0c   :  { %11731 = vmatprep.subr.mxu0 %v12933_v6 }
 0xc0d   :  { %11729 = vmatmul.mubr.msk.f32.vlgmr.msra.gmra.mrb[22].mxu0 %vm325_vm5, %v13487_v10 }
 0xc0e   :  { %v13529_v19 = vpop.permute.xlu1 %2135  ;;  %11733 = vmatprep.mubr.msk.f32.mxu0 %vm12934_vm4, %v12933_v6 }
 0xc0f   :  { %2669 = vrot.lane.b32.xlu1 %v13529_v19, %s12938_s23 }
 0xc12   :  { %v2214_v20 = vpop.permute.xlu1 %2213 }
 0xc13   :  { %11732 = vmatpush3.xpose.msk.msra.mxu0 %vm325_vm5, %v2214_v20 }
 0xc14   :  { %11741 = vmatprep.subr.mxu0 %v12933_v6 }
 0xc16   :  { %11734 = vmatmul.mubr.msk.f32.vlgmr.msra.gmra.mrb[24].mxu0 %vm325_vm5, %v13485_v8 }
 0xc17   :  { %11743 = vmatprep.mubr.msk.f32.mxu0 %vm12934_vm4, %v12933_v6 }
 0xc74   :  { %v2366_v24 = vpop.permute.xlu1 %2365 }
 0xc75   :  { %v2290_v25 = vpop.permute.xlu0 %2289  ;;  %11742 = vmatpush3.xpose.msk.msra.mxu0 %vm325_vm5, %v2366_v24 }
 0xc76   :  { %11737 = vmatpush3.xpose.msk.msra.mxu1 %vm325_vm5, %v2290_v25  ;;  %11751 = vmatprep.subr.mxu0 %v12933_v6 }
 0xc77   :  { %11746 = vmatprep.subr.mxu1 %v12933_v6 }
 0xc78   :  { %11744 = vmatmul.mubr.msk.f32.vlgmr.msra.gmra.mrb[26].mxu0 %vm325_vm5, %v13505_v12 }
 0xc79   :  { %11739 = vmatmul.mubr.msk.f32.vlgmr.msra.gmra.mrb[22].mxu1 %vm325_vm5, %v13509_v13  ;;  %v2442_v26 = vpop.permute.xlu0 %2441  ;;  %11753 = vmatprep.mubr.msk.f32.mxu0 %vm12934_vm4, %v12933_v6 }
 0xc7a   :  { %11747 = vmatpush3.xpose.msk.msra.mxu1 %vm325_vm5, %v2442_v26  ;;  %11748 = vmatprep.mubr.msk.f32.mxu1 %vm12934_vm4, %v12933_v6 }
 0xc7b   :  { %11756 = vmatprep.subr.mxu1 %v12933_v6 }
 0xc7d   :  { %11749 = vmatmul.mubr.msk.f32.vlgmr.msra.gmra.mrb[24].mxu1 %vm325_vm5, %v13515_v16  ;;  %v2594_v27 = vpop.permute.xlu0 %2593  ;;  %v2518_v28 = vpop.permute.xlu1 %2517 }
 0xc7e   :  { %11752 = vmatpush3.xpose.msk.msra.mxu0 %vm325_vm5, %v2518_v28  ;;  %11757 = vmatpush3.xpose.msk.msra.mxu1 %vm325_vm5, %v2594_v27 }
 0xc7f   :  { %11758 = vmatprep.mubr.msk.f32.mxu1 %vm12934_vm4, %v12933_v6  ;;  %11761 = vmatprep.subr.mxu0 %v12933_v6 }
 0xc80   :  { %11766 = vmatprep.subr.mxu1 %v12933_v6 }
 0xc81   :  { %11754 = vmatmul.mubr.msk.f32.vlgmr.msra.gmra.mrb[28].mxu0 %vm325_vm5, %v13520_v18  ;;  %11759 = vmatmul.mubr.msk.f32.vlgmr.msra.gmra.mrb[26].mxu1 %vm325_vm5, %v13513_v14  ;;  %v2670_v29 = vpop.permute.xlu1 %2669 }
 0xc82   :  { %11762 = vmatpush3.xpose.msk.msra.mxu0 %vm325_vm5, %v2670_v29  ;;  %11763 = vmatprep.mubr.msk.f32.mxu0 %vm12934_vm4, %v12933_v6 }
 0xc83   :  { %11771 = vmatprep.subr.mxu0 %v12933_v6  ;;  %11768 = vmatprep.mubr.msk.f32.mxu1 %vm12934_vm4, %v12933_v6 }
 0xc85   :  { %11764 = vmatmul.mubr.msk.f32.vlgmr.msra.gmra.mrb[30].mxu0 %vm325_vm5, %v13529_v19 }
 0xc86   :  { %11773 = vmatprep.mubr.msk.f32.mxu0 %vm12934_vm4, %v12933_v6 }
 0xce0   :  { %v2209_v30 = vpop.f32.mrb[22].mxu0 }
 0xce1   :  { %v2745_v32 = vmul.f32 0.35355338, %v2209_v30  ;;  %v11730_v33 = vpop.f32.mrb[23].mxu0 }
 0xce3   :  { %v2753_v34 = vsel %vm325_vm5, %v2745_v32, -inf }
 0xce4   :  { %2754 = vmax.xlane.f32.xlu0 %v2753_v34 }
 0xce9   :  { %v2285_v36 = vpop.f32.mrb[24].mxu0 }
 0xcea   :  { %v2746_v37 = vmul.f32 0.35355338, %v2285_v36  ;;  %v11735_v38 = vpop.f32.mrb[25].mxu0 }
 0xcec   :  { %v2756_v39 = vsel %vm325_vm5, %v2746_v37, -inf }
 0xced   :  { %2757 = vmax.xlane.f32.xlu1 %v2756_v39 }
 0xd4b   :  { %v2437_v40 = vpop.f32.mrb[26].mxu0 }
 0xd4c   :  { %v2361_v41 = vpop.f32.mrb[22].mxu1  ;;  %v11745_v42 = vpop.f32.mrb[27].mxu0  ;;  %v2748_v45 = vmul.f32 0.35355338, %v2437_v40 }
 0xd4d   :  { %v2747_v43 = vmul.f32 0.35355338, %v2361_v41  ;;  %v11740_v44 = vpop.f32.mrb[23].mxu1 }
 0xd4e   :  { %v2762_v51 = vsel %vm325_vm5, %v2748_v45, -inf }
 0xd4f   :  { %v2759_v46 = vsel %vm325_vm5, %v2747_v43, -inf }
 0xd50   :  { %2760 = vmax.xlane.f32.xlu0 %v2759_v46  ;;  %v2513_v47 = vpop.f32.mrb[24].mxu1 }
 0xd51   :  { %v2749_v48 = vmul.f32 0.35355338, %v2513_v47  ;;  %v11750_v49 = vpop.f32.mrb[25].mxu1 }
 0xd53   :  { %v2765_v50 = vsel %vm325_vm5, %v2749_v48, -inf }
 0xd54   :  { %v2665_v52 = vpop.f32.mrb[26].mxu1  ;;  %2766 = vmax.xlane.f32.xlu1 %v2765_v50  ;;  %2763 = vmax.xlane.f32.xlu0 %v2762_v51  ;;  %v2589_v55 = vpop.f32.mrb[28].mxu0 }
 0xd55   :  { %v2751_v58 = vmul.f32 0.35355338, %v2665_v52  ;;  %v2750_v59 = vmul.f32 0.35355338, %v2589_v55  ;;  %v11755_v60 = vpop.f32.mrb[29].mxu0  ;;  %v11760_v61 = vpop.f32.mrb[27].mxu1 }
 0xd57   :  { %v2771_v62 = vsel %vm325_vm5, %v2751_v58, -inf  ;;  %v2768_v63 = vsel %vm325_vm5, %v2750_v59, -inf }
 0xd58   :  { %2772 = vmax.xlane.f32.xlu1 %v2771_v62  ;;  %2769 = vmax.xlane.f32.xlu0 %v2768_v63  ;;  %v2741_v0 = vpop.f32.mrb[30].mxu0 }
 0xd59   :  { %v2752_v1 = vmul.f32 0.35355338, %v2741_v0  ;;  %v11765_v2 = vpop.f32.mrb[31].mxu0 }
 0xd5b   :  { %v2774_v3 = vsel %vm325_vm5, %v2752_v1, -inf }
 0xd5c   :  { %2775 = vmax.xlane.f32.xlu0 %v2774_v3 }
 0xd69   :  { %2841 = vrot.lane.b32.xlu1 %v13487_v10, %s12939_s13 }
 0xd6d   :  { %2993 = vrot.lane.b32.xlu1 %v13509_v13, %s12939_s13 }
 0xd71   :  { %3069 = vrot.lane.b32.xlu1 %v13505_v12, %s12939_s13  ;;  %v2755_v9 = vpop.xlane.xlu0 %2754 }
 0xd72   :  { %2917 = vrot.lane.b32.xlu0 %v13485_v8, %s12939_s13  ;;  %v2777_v17 = vsub.f32 %v2745_v32, %v2755_v9 }
 0xd74   :  { %v2785_v20 = vmul.f32 1.442695, %v2777_v17 }
 0xd75   :  { %3221 = vrot.lane.b32.xlu1 %v13520_v18, %s12939_s13 }
 0xd76   :  { %3145 = vrot.lane.b32.xlu0 %v13515_v16, %s12939_s13 }
 0xd7a   :  { %v2758_v23 = vpop.xlane.xlu1 %2757 }
 0xd7b   :  { %v2778_v31 = vsub.f32 %v2746_v37, %v2758_v23 }
 0xd7d   :  { %v2787_v10 = vmul.f32 1.442695, %v2778_v31 }
 0xd7f   :  { %12637 = vpow2.f32 %v2787_v10 }
 0xd80   :  { %12639 = vpow2.f32 %v2785_v20 }
 0xd89   :  { %v13597_v13 = vpop.eup %12637 }
 0xd8a   :  { %v2804_v12 = vsel %vm325_vm5, %v13597_v13, 0.0  ;;  %v13601_v8 = vpop.eup %12639 }
 0xd8b   :  { %v2801_v18 = vsel %vm325_vm5, %v13601_v8, 0.0 }
 0xd95   :  { %2805 = vadd.xlane.f32.xlu0 %v2804_v12 }
 0xd99   :  { %2802 = vadd.xlane.f32.xlu1 %v2801_v18 }
 0xddd   :  { %v2761_v16 = vpop.xlane.xlu0 %2760 }
 0xdde   :  { %v2779_v24 = vsub.f32 %v2747_v43, %v2761_v16 }
 0xde0   :  { %v2789_v25 = vmul.f32 1.442695, %v2779_v24 }
 0xde1   :  { %v2764_v26 = vpop.xlane.xlu0 %2763  ;;  %v2767_v27 = vpop.xlane.xlu1 %2766 }
 0xde2   :  { %12641 = vpow2.f32 %v2789_v25  ;;  %v2780_v28 = vsub.f32 %v2748_v45, %v2764_v26  ;;  %v2781_v29 = vsub.f32 %v2749_v48, %v2767_v27 }
 0xde4   :  { %v2791_v30 = vmul.f32 1.442695, %v2780_v28  ;;  %v2793_v32 = vmul.f32 1.442695, %v2781_v29 }
 0xde5   :  { %v2770_v33 = vpop.xlane.xlu0 %2769  ;;  %v2773_v34 = vpop.xlane.xlu1 %2772 }
 0xde6   :  { %12643 = vpow2.f32 %v2791_v30  ;;  %v2782_v36 = vsub.f32 %v2750_v59, %v2770_v33  ;;  %v2783_v37 = vsub.f32 %v2751_v58, %v2773_v34 }
 0xde7   :  { %12645 = vpow2.f32 %v2793_v32 }
 0xde8   :  { %v2795_v38 = vmul.f32 1.442695, %v2782_v36  ;;  %v2797_v39 = vmul.f32 1.442695, %v2783_v37 }
 0xde9   :  { %v2776_v40 = vpop.xlane.xlu0 %2775  ;;  %v2842_v41 = vpop.permute.xlu1 %2841 }
 0xdea   :  { %12647 = vpow2.f32 %v2795_v38  ;;  %v2784_v42 = vsub.f32 %v2752_v1, %v2776_v40  ;;  %11767 = vmatpush3.msra.mxu1 %v2842_v41  ;;  %v11027_v40 = vld [vmem:[%s14797_s4 + $0x20] sm:$0xff]  ;;  %v11028_v41 = vld [vmem:[%s14797_s4 + $0x28] sm:$0xff] }
 0xdeb   :  { %12649 = vpow2.f32 %v2797_v39  ;;  %11776 = vmatprep.subr.mxu1 %v12933_v6 }
 0xdec   :  { %v12642_v43 = vpop.eup %12641  ;;  %v2799_v44 = vmul.f32 1.442695, %v2784_v42  ;;  %v12407_v42 = vpack.c.bf16 %v11028_v41, %v11027_v40  ;;  %v11061_v41 = vld [vmem:[%s14799_s6 + $0x40] sm:$0xff] }
 0xded   :  { %v2918_v45 = vpop.permute.xlu0 %2917  ;;  %v2807_v46 = vsel %vm325_vm5, %v12642_v43, 0.0  ;;  %v2994_v61 = vpop.permute.xlu1 %2993 }
 0xdee   :  { %12651 = vpow2.f32 %v2799_v44  ;;  %2808 = vadd.xlane.f32.xlu1 %v2807_v46  ;;  %11772 = vmatpush3.msra.mxu0 %v2918_v45  ;;  %v11030_v44 = vld [vmem:[%s14797_s4 + $0x38] sm:$0xff] }
 0xdef   :  { %11781 = vmatprep.subr.mxu0 %v12933_v6 }
 0xdf0   :  { %v12644_v47 = vpop.eup %12643 }
 0xdf1   :  { %v12646_v48 = vpop.eup %12645  ;;  %v2810_v49 = vsel %vm325_vm5, %v12644_v47, 0.0  ;;  %v3070_v62 = vpop.permute.xlu1 %3069 }
 0xdf2   :  { %2811 = vadd.xlane.f32.xlu0 %v2810_v49  ;;  %v2813_v50 = vsel %vm325_vm5, %v12646_v48, 0.0  ;;  %v3146_v63 = vpop.permute.xlu0 %3145 }
 0xdf3   :  { %2814 = vadd.xlane.f32.xlu1 %v2813_v50 }
 0xdf4   :  { %v12648_v51 = vpop.eup %12647 }
 0xdf5   :  { %v13610_v52 = vpop.eup %12649  ;;  %v2816_v55 = vsel %vm325_vm5, %v12648_v51, 0.0  ;;  %v3222_v0 = vpop.permute.xlu1 %3221 }
 0xdf6   :  { %2817 = vadd.xlane.f32.xlu0 %v2816_v55  ;;  %v2819_v58 = vsel %vm325_vm5, %v13610_v52, 0.0 }
 0xdf7   :  { %2820 = vadd.xlane.f32.xlu1 %v2819_v58 }
 0xdf8   :  { %v13615_v59 = vpop.eup %12651 }
 0xdf9   :  { %v2822_v60 = vsel %vm325_vm5, %v13615_v59, 0.0 }
 0xdfa   :  { %2823 = vadd.xlane.f32.xlu0 %v2822_v60 }
 0xe08   :  { %3373 = vrot.lane.b32.xlu1 %v13529_v19, %s12939_s13 }
 0xe10   :  { %3297 = vrot.lane.b32.xlu0 %v13513_v14, %s12939_s13 }
 0xe22   :  { %v2806_v1 = vpop.xlane.xlu0 %2805 }
 0xe23   :  { %12653 = vrcp.f32 %v2806_v1 }
 0xe26   :  { %v2803_v2 = vpop.xlane.xlu1 %2802 }
 0xe27   :  { %12655 = vrcp.f32 %v2803_v2 }
 0xe2d   :  { %v12654_v3 = vpop.eup %12653 }
 0xe2e   :  { %v2834_v23 = vmul.f32 %v12654_v3, %v13597_v13 }
 0xe30   :  { %11774 = vmatmul.mubr.msk.f32.vlgmr.msra.gmra.mrb[32].mxu0 %vm325_vm5, %v2834_v23 }
 0xe31   :  { %v12656_v31 = vpop.eup %12655  ;;  %11782 = vmatpush3.msra.mxu0 %v3070_v62  ;;  %11783 = vmatprep.mubr.msk.f32.mxu0 %vm12934_vm4, %v12933_v6 }
 0xe32   :  { %v2833_v14 = vmul.f32 %v12656_v31, %v13601_v8  ;;  %11791 = vmatprep.subr.mxu0 %v12933_v6 }
 0xe34   :  { %11769 = vmatmul.mubr.msk.f32.vlgmr.msra.gmra.mrb[28].mxu1 %vm325_vm5, %v2833_v14 }
 0xe35   :  { %11777 = vmatpush3.msra.mxu1 %v2994_v61  ;;  %11778 = vmatprep.mubr.msk.f32.mxu1 %vm12934_vm4, %v12933_v6 }
 0xe36   :  { %11786 = vmatprep.subr.mxu1 %v12933_v6 }
 0xe7b   :  { %v2809_v19 = vpop.xlane.xlu1 %2808 }
 0xe7c   :  { %12657 = vrcp.f32 %v2809_v19 }
 0xe7f   :  { %v2812_v9 = vpop.xlane.xlu0 %2811 }
 0xe80   :  { %12659 = vrcp.f32 %v2812_v9  ;;  %v2815_v17 = vpop.xlane.xlu1 %2814 }
 0xe81   :  { %12661 = vrcp.f32 %v2815_v17 }
 0xe83   :  { %v2818_v10 = vpop.xlane.xlu0 %2817 }
 0xe84   :  { %12663 = vrcp.f32 %v2818_v10  ;;  %v2821_v20 = vpop.xlane.xlu1 %2820  ;;  %v3482_v10 = vrot.slane %v13481_v21, %v13362_v5 }
 0xe85   :  { %12665 = vrcp.f32 %v2821_v20 }
 0xe86   :  { %v12658_v13 = vpop.eup %12657 }
 0xe87   :  { %v2824_v12 = vpop.xlane.xlu0 %2823  ;;  %v2835_v8 = vmul.f32 %v12658_v13, %v12642_v43  ;;  %v11029_v43 = vld [vmem:[%s14797_s4 + $0x30] sm:$0xff] }
 0xe88   :  { %12667 = vrcp.f32 %v2824_v12  ;;  %v3374_v32 = vpop.permute.xlu1 %3373  ;;  %v12411_v45 = vpack.c.bf16 %v11030_v44, %v11029_v43  ;;  %v11063_v43 = vld [vmem:[%s14799_s6 + $0x50] sm:$0xff] }
 0xe89   :  { %11779 = vmatmul.mubr.msk.f32.vlgmr.msra.gmra.mrb[30].mxu1 %vm325_vm5, %v2835_v8 }
 0xe8a   :  { %v12660_v18 = vpop.eup %12659  ;;  %11787 = vmatpush3.msra.mxu1 %v3146_v63  ;;  %11788 = vmatprep.mubr.msk.f32.mxu1 %vm12934_vm4, %v12933_v6 }
 0xe8b   :  { %v12662_v16 = vpop.eup %12661  ;;  %11796 = vmatprep.subr.mxu1 %v12933_v6  ;;  %v2836_v24 = vmul.f32 %v12660_v18, %v12644_v47  ;;  %v3298_v25 = vpop.permute.xlu0 %3297 }
 0xe8c   :  { %v2837_v26 = vmul.f32 %v12662_v16, %v12646_v48 }
 0xe8d   :  { %11784 = vmatmul.mubr.msk.f32.vlgmr.msra.gmra.mrb[34].mxu0 %vm325_vm5, %v2836_v24 }
 0xe8e   :  { %v12664_v27 = vpop.eup %12663  ;;  %11789 = vmatmul.mubr.msk.f32.vlgmr.msra.gmra.mrb[32].mxu1 %vm325_vm5, %v2837_v26  ;;  %11792 = vmatpush3.msra.mxu0 %v3222_v0 }
 0xe8f   :  { %v12666_v28 = vpop.eup %12665  ;;  %11797 = vmatpush3.msra.mxu1 %v3298_v25  ;;  %11793 = vmatprep.mubr.msk.f32.mxu0 %vm12934_vm4, %v12933_v6  ;;  %v2838_v29 = vmul.f32 %v12664_v27, %v12648_v51 }
 0xe90   :  { %11798 = vmatprep.mubr.msk.f32.mxu1 %vm12934_vm4, %v12933_v6  ;;  %11801 = vmatprep.subr.mxu0 %v12933_v6  ;;  %v2839_v30 = vmul.f32 %v12666_v28, %v13610_v52  ;;  %v3838_v28 = vld [vmem:[%s14820_s3] sm:$0xff] }
 0xe91   :  { %11794 = vmatmul.mubr.msk.f32.vlgmr.msra.gmra.mrb[36].mxu0 %vm325_vm5, %v2838_v29  ;;  %12408 = vmatprep.subr.bf16.mxu1 %v12407_v42  ;;  %v3839_v29 = vld [vmem:[%s14820_s3 + $0x8] sm:$0xff] }
 0xe92   :  { %v12668_v33 = vpop.eup %12667  ;;  %11799 = vmatmul.mubr.msk.f32.vlgmr.msra.gmra.mrb[34].mxu1 %vm325_vm5, %v2839_v30  ;;  %11802 = vmatpush3.msra.mxu0 %v3374_v32  ;;  %v11057_v30 = vld [vmem:[%s14798_s5 + $0x20] sm:$0xff]  ;;  %v11058_v32 = vld [vmem:[%s14798_s5 + $0x28] sm:$0xff] }
 0xe93   :  { %11803 = vmatprep.mubr.msk.f32.mxu0 %vm12934_vm4, %v12933_v6  ;;  %v2840_v34 = vmul.f32 %v12668_v33, %v13615_v59  ;;  %12410 = vmatpush3.bf16.msra.mxu1 %v12407_v42  ;;  %v11059_v33 = vld [vmem:[%s14798_s5 + $0x30] sm:$0xff]  ;;  %v11062_v42 = vld [vmem:[%s14799_s6 + $0x48] sm:$0xff] }
 0xe94   :  { %12412 = vmatprep.subr.bf16.mxu1 %v12411_v45  ;;  %v12423_v44 = vpack.c.bf16 %v11062_v42, %v11061_v41 }
 0xe95   :  { %11804 = vmatmul.mubr.msk.f32.vlgmr.msra.gmra.mrb[38].mxu0 %vm325_vm5, %v2840_v34  ;;  %v12415_v34 = vpack.c.bf16 %v11058_v32, %v11057_v30  ;;  %v3940_v32 = vld [vmem:[%s14801_s8 + $0x18] sm:$0xff] }
 0xe97   :  { %12414 = vmatpush3.bf16.msra.mxu1 %v12411_v45  ;;  %12416 = vmatprep.subr.bf16.mxu0 %v12415_v34  ;;  %v11064_v45 = vld [vmem:[%s14799_s6 + $0x58] sm:$0xff] }
 0xe98   :  { %12418 = vmatpush3.bf16.msra.mxu0 %v12415_v34  ;;  %12424 = vmatprep.subr.bf16.mxu1 %v12423_v44  ;;  %v3625_v34 = vrot.slane %v13481_v21, %v13428_v35 }
 0xf03   :  { %v2989_v36 = vpop.f32.mrb[32].mxu0 }
 0xf04   :  { %v11775_v37 = vpop.f32.mrb[33].mxu0 }
 0xf07   :  { %v2913_v38 = vpop.f32.mrb[28].mxu1 }
 0xf08   :  { %v11770_v39 = vpop.f32.mrb[29].mxu1 }
 0xf09   :  { %v3853_v39 = vld [vmem:[%s14819_s28 + $0x8] sm:$0xff] }
 0xf5c   :  { %v3065_v46 = vpop.f32.mrb[30].mxu1 }
 0xf5d   :  { %3451 = vrot.lane.b32.xlu0 %v3065_v46, %s12929_s25  ;;  %v11780_v47 = vpop.f32.mrb[31].mxu1  ;;  %v12427_v46 = vpack.c.bf16 %v11064_v45, %v11063_v43 }
 0xf5e   :  { %v11065_v47 = vld [vmem:[%s14799_s6 + $0x60] sm:$0xff] }
 0xf60   :  { %v3141_v48 = vpop.f32.mrb[34].mxu0 }
 0xf61   :  { %v3217_v49 = vpop.f32.mrb[32].mxu1  ;;  %3453 = vrot.lane.b32.xlu1 %v3141_v48, %s12929_s25  ;;  %v11785_v50 = vpop.f32.mrb[35].mxu0  ;;  %v11066_v48 = vld [vmem:[%s14799_s6 + $0x68] sm:$0xff] }
 0xf62   :  { %3459 = vrot.lane.b32.xlu0 %v3217_v49, %s12940_s12  ;;  %v11790_v51 = vpop.f32.mrb[33].mxu1  ;;  %v12431_v49 = vpack.c.bf16 %v11066_v48, %v11065_v47 }
 0xf64   :  { %v3293_v52 = vpop.f32.mrb[36].mxu0 }
 0xf65   :  { %v3369_v55 = vpop.f32.mrb[34].mxu1  ;;  %3461 = vrot.lane.b32.xlu1 %v3293_v52, %s12940_s12  ;;  %v11795_v58 = vpop.f32.mrb[37].mxu0 }
 0xf66   :  { %3467 = vrot.lane.b32.xlu0 %v3369_v55, %s12941_s26  ;;  %v11800_v59 = vpop.f32.mrb[35].mxu1 }
 0xf68   :  { %v3445_v60 = vpop.f32.mrb[38].mxu0 }
 0xf69   :  { %3469 = vrot.lane.b32.xlu1 %v3445_v60, %s12941_s26  ;;  %v11805_v61 = vpop.f32.mrb[39].mxu0 }
 0xfcf   :  { %v3452_v62 = vpop.permute.xlu0 %3451 }
 0xfd0   :  { %v3473_v1 = vsel %vm325_vm5, %v2913_v38, %v3452_v62  ;;  %v3852_v38 = vld [vmem:[%s14819_s28] sm:$0xff] }
 0xfd1   :  { %v12439_v40 = vpack.c.bf16 %v3853_v39, %v3852_v38 }
 0xfd3   :  { %v3454_v63 = vpop.permute.xlu1 %3453 }
 0xfd4   :  { %v3460_v0 = vpop.permute.xlu0 %3459  ;;  %v3474_v14 = vsel %vm325_vm5, %v2989_v36, %v3454_v63  ;;  %v11060_v36 = vld [vmem:[%s14798_s5 + $0x38] sm:$0xff] }
 0xfd5   :  { %v3475_v3 = vsel %vm132_vm0, %v3473_v1, %v3460_v0  ;;  %v12419_v37 = vpack.c.bf16 %v11060_v36, %v11059_v33 }
 0xfd7   :  { %v3462_v2 = vpop.permute.xlu1 %3461  ;;  %12420 = vmatprep.subr.bf16.mxu0 %v12419_v37 }
 0xfd8   :  { %v3468_v23 = vpop.permute.xlu0 %3467  ;;  %v3476_v19 = vsel %vm132_vm0, %v3474_v14, %v3462_v2  ;;  %12422 = vmatpush3.bf16.msra.mxu0 %v12419_v37 }
 0xfd9   :  { %v3477_v31 = vsel %vm1664_vm6, %v3475_v3, %v3468_v23  ;;  %12440 = vmatprep.subr.bf16.mxu0 %v12439_v40 }
 0xfda   :  { %11814 = vmatprep.mubr.msk.f32.mxu1 %vm223_vm3, %v3477_v31  ;;  %v3599_v31 = vrot.slane %v13481_v21, %v13408_v53 }
 0xfdb   :  { %v3470_v9 = vpop.permute.xlu1 %3469 }
 0xfdc   :  { %v3478_v17 = vsel %vm1664_vm6, %v3476_v19, %v3470_v9  ;;  %v3605_v9 = vrot.slane %v13481_v21, %v13411_v54  ;;  %v13796_v21 = vld [vmem:[%s14808_s15] sm:$0xff] }
 0xfdd   :  { %11815 = vmatmul.mubr.msk.f32.vlgmr.msra.gmra.mrb[36].mxu1 %vm223_vm3, %v3478_v17 }
 0xfde   :  { %12426 = vmatpush3.bf16.msra.mxu1 %v12423_v44  ;;  %v3944_v44 = vrot.slane %v13796_v21, %v13156_v22 }
 0xfdf   :  { %12428 = vmatprep.subr.bf16.mxu1 %v12427_v46 }
 0xfe2   :  { %12430 = vmatpush3.bf16.msra.mxu1 %v12427_v46 }
 0xfe3   :  { %12432 = vmatprep.subr.bf16.mxu1 %v12431_v49 }
 0xfe6   :  { %12434 = vmatpush3.bf16.msra.mxu1 %v12431_v49 }
0x10b0   :  { %v11816_v20 = vpop.f32.mrb[36].mxu1 }
0x10b1   :  { %v3561_v13 = vadd.f32 %v11816_v20, %v3482_v10  ;;  %v3555_v12 = vpop.f32.mrb[37].mxu1 }
0x10b2   :  { %v3556_v8 = vadd.f32 %v3555_v12, %v3482_v10 }
0x10b3   :  { %v13680_v18 = vadd.f32 %v3561_v13, %v13470_v7 }
0x10b4   :  { %v13683_v16 = vadd.f32 %v3556_v8, %v13468_v4 }
0x10b5   :  { %v3569_v24 = vsel %vm223_vm3, %v13680_v18, 0.0  ;;  %v3575_v7 = vmul.f32 %v13680_v18, %v13680_v18 }
0x10b6   :  { %3570 = vadd.xlane.f32.xlu1 %v3569_v24  ;;  %v3566_v25 = vsel %vm223_vm3, %v13683_v16, 0.0  ;;  %v3574_v26 = vmul.f32 %v13683_v16, %v13683_v16  ;;  %v3938_v24 = vld [vmem:[%s14801_s8 + $0x8] sm:$0xff] }
0x10b7   :  { %3567 = vadd.xlane.f32.xlu0 %v3566_v25  ;;  %v3579_v4 = vsel %vm223_vm3, %v3575_v7, 0.0 }
0x10b8   :  { %v3576_v27 = vsel %vm223_vm3, %v3574_v26, 0.0 }
0x10bb   :  { %3577 = vadd.xlane.f32.xlu0 %v3576_v27 }
0x10bf   :  { %3580 = vadd.xlane.f32.xlu0 %v3579_v4 }
0x10c7   :  { %3841 = vperm.xlu1 %12596, %v3838_v28   ;;  %v11067_v28 = vld [vmem:[%s14799_s6 + $0x70] sm:$0xff] }
0x10d5   :  { %3844 = vperm.xlu0 %12595, %v3839_v29   ;;  %v3939_v29 = vld [vmem:[%s14801_s8 + $0x10] sm:$0xff] }
0x10d6   :  { %v12447_v33 = vpack.c.bf16 %v3940_v32, %v3939_v29 }
0x1143   :  { %v3571_v52 = vpop.xlane.xlu1 %3570 }
0x1144   :  { %v3568_v50 = vpop.xlane.xlu0 %3567  ;;  %v3573_v58 = vmul.f32 0.03125, %v3571_v52 }
0x1145   :  { %v3572_v51 = vmul.f32 0.03125, %v3568_v50 }
0x1146   :  { %v3585_v63 = vmul.f32 %v3573_v58, %v3573_v58  ;;  %v3589_v17 = vsub.f32 %v13680_v18, %v3573_v58 }
0x1147   :  { %v3584_v59 = vmul.f32 %v3572_v51, %v3572_v51  ;;  %v3588_v23 = vsub.f32 %v13683_v16, %v3572_v51  ;;  %v3842_v20 = vpop.permute.xlu1 %3841  ;;  %v3937_v16 = vld [vmem:[%s14801_s8] sm:$0xff] }
0x1148   :  { %v3578_v55 = vpop.xlane.xlu0 %3577  ;;  %vm3846_vm8 = vcmp.eq.s32.totalorder %v13130_v11, %v3842_v20  ;;  %v12443_v7 = vpack.c.bf16 %v3938_v24, %v3937_v16 }
0x1149   :  { %v3582_v60 = vmul.f32 0.03125, %v3578_v55  ;;  %v11073_v27 = vsel %vm3846_vm8, 1.0, %v12933_v6 }
0x114b   :  { %v3586_v61 = vsub.f32 %v3582_v60, %v3584_v59 }
0x114c   :  { %v3581_v62 = vpop.xlane.xlu0 %3580 }
0x114d   :  { %v3590_v0 = vadd.f32 1e-05, %v3586_v61  ;;  %v3583_v1 = vmul.f32 0.03125, %v3581_v62 }
0x114f   :  { %12669 = vrsqrt.f32 %v3590_v0  ;;  %v3587_v2 = vsub.f32 %v3583_v1, %v3585_v63 }
0x1151   :  { %v3591_v3 = vadd.f32 1e-05, %v3587_v2 }
0x1153   :  { %12671 = vrsqrt.f32 %v3591_v3 }
0x1154   :  { %v3845_v18 = vpop.permute.xlu0 %3844 }
0x1155   :  { %vm3847_vm9 = vcmp.eq.s32.totalorder %v13130_v11, %v3845_v18  ;;  %v11068_v11 = vld [vmem:[%s14799_s6 + $0x78] sm:$0xff] }
0x1156   :  { %v11074_v4 = vsel %vm3847_vm9, 1.0, %v12933_v6  ;;  %v12435_v30 = vpack.c.bf16 %v11068_v11, %v11067_v28 }
0x1158   :  { %12436 = vmatprep.subr.bf16.mxu1 %v12435_v30 }
0x1159   :  { %v12670_v14 = vpop.eup %12669  ;;  %12438 = vmatpush3.bf16.msra.mxu1 %v12435_v30 }
0x115a   :  { %v3594_v19 = vmul.f32 %v12670_v14, %v3588_v23  ;;  %11870 = vmatprep.subr.mxu1 %v12933_v6 }
0x115c   :  { %v3600_v10 = vmul.f32 %v3599_v31, %v3594_v19 }
0x115d   :  { %v12672_v13 = vpop.eup %12671 }
0x115e   :  { %v3595_v12 = vmul.f32 %v12672_v13, %v3589_v17  ;;  %v13743_v8 = vadd.f32 %v3605_v9, %v3600_v10 }
0x1160   :  { %v3601_v25 = vmul.f32 %v3599_v31, %v3595_v12  ;;  %11825 = vmatprep.mubr.msk.f32.mxu0 %vm223_vm3, %v13743_v8 }
0x1162   :  { %v13754_v26 = vadd.f32 %v3605_v9, %v3601_v25 }
0x1164   :  { %11826 = vmatmul.mubr.msk.f32.vlgmr.msra.gmra.mrb[40].mxu0 %vm223_vm3, %v13754_v26 }
0x1165   :  { %12442 = vmatpush3.bf16.msra.mxu0 %v12439_v40  ;;  %11851 = vmatprep.mubr.msk.f32.mxu0 %vm132_vm0, %v11073_v27 }
0x1166   :  { %12444 = vmatprep.subr.bf16.mxu0 %v12443_v7 }
0x1168   :  { %11852 = vmatmul.mubr.msk.f32.vlgmr.msra.gmra.mrb[42].mxu0 %vm132_vm0, %v11074_v4 }
0x1169   :  { %12446 = vmatpush3.bf16.msra.mxu0 %v12443_v7 }
0x116a   :  { %12448 = vmatprep.subr.bf16.mxu0 %v12447_v33 }
0x116d   :  { %12450 = vmatpush3.bf16.msra.mxu0 %v12447_v33 }
0x116e   :  { %11865 = vmatprep.subr.mxu0 %v12933_v6 }
0x1237   :  { %v11827_v36 = vpop.f32.mrb[40].mxu0 }
0x1238   :  { %v3704_v37 = vadd.f32 %v11827_v36, %v3625_v34  ;;  %v3698_v38 = vpop.f32.mrb[41].mxu0 }
0x1239   :  { %v3699_v39 = vadd.f32 %v3698_v38, %v3625_v34 }
0x123a   :  { %v3708_v42 = vmax.f32 %v3704_v37, 0.0 }
0x123b   :  { %v3707_v40 = vmax.f32 %v3699_v39, 0.0  ;;  %v13779_v41 = vpop.f32.mrb[42].mxu0 }
0x123c   :  { %v13781_v43 = vpop.f32.mrb[43].mxu0 }
0x123d   :  { %11844 = vmatprep.mubr.msk.f32.mxu1 %vm1900_vm7, %v3707_v40  ;;  %11862 = vmatprep.mubr.msk.f32.mxu0 %vm223_vm3, %v13781_v43 }
0x123e   :  { %11845 = vmatmul.mubr.msk.f32.vlgmr.msra.gmra.mrb[38].mxu1 %vm1900_vm7, %v3708_v42  ;;  %11863 = vmatmul.mubr.msk.f32.vlgmr.msra.gmra.mrb[44].mxu0 %vm223_vm3, %v13779_v41 }
0x123f   :  { %11867 = vmatprep.mubr.msk.f32.mxu0 %vm12934_vm4, %v12933_v6  ;;  %11872 = vmatprep.mubr.msk.f32.mxu1 %vm12934_vm4, %v12933_v6 }
0x1311   :  { %v13800_v45 = vpop.f32.mrb[38].mxu1  ;;  %v11864_v46 = vpop.f32.mrb[44].mxu0 }
0x1312   :  { %v13802_v47 = vpop.f32.mrb[39].mxu1  ;;  %v4017_v48 = vpop.f32.mrb[45].mxu0  ;;  %v13810_v50 = vadd.f32 %v11864_v46, %v3944_v44 }
0x1313   :  { %v13804_v49 = vadd.f32 %v4017_v48, %v3944_v44 }
0x1315   :  { %4036 = vrot.lane.b32.xlu0 %v13804_v49, %s12935_s10  ;;  %4032 = vrot.lane.b32.xlu1 %v13804_v49, %s12936_s30 }
0x1319   :  { %4040 = vrot.lane.b32.xlu0 %v13804_v49, %s12937_s11  ;;  %4034 = vrot.lane.b32.xlu1 %v13810_v50, %s12936_s30 }
0x131d   :  { %4044 = vrot.lane.b32.xlu0 %v13804_v49, %s12938_s23  ;;  %4038 = vrot.lane.b32.xlu1 %v13810_v50, %s12935_s10 }
0x1321   :  { %4042 = vrot.lane.b32.xlu1 %v13810_v50, %s12937_s11 }
0x1325   :  { %4120 = vrot.lane.b32.xlu1 %v13810_v50, %s12938_s23 }
0x1387   :  { %v13824_v51 = vpop.permute.xlu0 %4036  ;;  %v13826_v52 = vpop.permute.xlu1 %4032 }
0x1388   :  { %4196 = vrot.lane.b32.xlu0 %v13826_v52, %s12938_s23 }
0x138b   :  { %v13830_v55 = vpop.permute.xlu0 %4040  ;;  %v13832_v58 = vpop.permute.xlu1 %4034 }
0x138c   :  { %4348 = vrot.lane.b32.xlu0 %v13824_v51, %s12938_s23  ;;  %4272 = vrot.lane.b32.xlu1 %v13832_v58, %s12938_s23 }
0x138f   :  { %v4045_v59 = vpop.permute.xlu0 %4044  ;;  %v13838_v60 = vpop.permute.xlu1 %4038 }
0x1390   :  { %11866 = vmatpush3.xpose.msk.msra.mxu0 %vm325_vm5, %v4045_v59  ;;  %4500 = vrot.lane.b32.xlu0 %v13830_v55, %s12938_s23 }
0x1391   :  { %4424 = vrot.lane.b32.xlu1 %v13838_v60, %s12938_s23  ;;  %11875 = vmatprep.subr.mxu0 %v12933_v6 }
0x1393   :  { %11868 = vmatmul.mubr.msk.f32.vlgmr.msra.gmra.mrb[46].mxu0 %vm325_vm5, %v13804_v49  ;;  %v13848_v61 = vpop.permute.xlu1 %4042 }
0x1394   :  { %11877 = vmatprep.mubr.msk.f32.mxu0 %vm12934_vm4, %v12933_v6 }
0x1395   :  { %4576 = vrot.lane.b32.xlu1 %v13848_v61, %s12938_s23 }
0x1397   :  { %v4121_v62 = vpop.permute.xlu1 %4120 }
0x1398   :  { %11871 = vmatpush3.xpose.msk.msra.mxu1 %vm325_vm5, %v4121_v62 }
0x1399   :  { %11880 = vmatprep.subr.mxu1 %v12933_v6 }
0x139b   :  { %11873 = vmatmul.mubr.msk.f32.vlgmr.msra.gmra.mrb[40].mxu1 %vm325_vm5, %v13810_v50 }
0x139c   :  { %11882 = vmatprep.mubr.msk.f32.mxu1 %vm12934_vm4, %v12933_v6 }
0x13fa   :  { %v4197_v63 = vpop.permute.xlu0 %4196 }
0x13fb   :  { %11876 = vmatpush3.xpose.msk.msra.mxu0 %vm325_vm5, %v4197_v63 }
0x13fc   :  { %11885 = vmatprep.subr.mxu0 %v12933_v6 }
0x13fe   :  { %11878 = vmatmul.mubr.msk.f32.vlgmr.msra.gmra.mrb[48].mxu0 %vm325_vm5, %v13826_v52  ;;  %v4349_v0 = vpop.permute.xlu0 %4348  ;;  %v4273_v1 = vpop.permute.xlu1 %4272 }
0x13ff   :  { %11881 = vmatpush3.xpose.msk.msra.mxu1 %vm325_vm5, %v4273_v1  ;;  %11886 = vmatpush3.xpose.msk.msra.mxu0 %vm325_vm5, %v4349_v0 }
0x1400   :  { %11887 = vmatprep.mubr.msk.f32.mxu0 %vm12934_vm4, %v12933_v6  ;;  %11895 = vmatprep.subr.mxu0 %v12933_v6 }
0x1401   :  { %11890 = vmatprep.subr.mxu1 %v12933_v6 }
0x1402   :  { %11888 = vmatmul.mubr.msk.f32.vlgmr.msra.gmra.mrb[50].mxu0 %vm325_vm5, %v13824_v51  ;;  %v4501_v2 = vpop.permute.xlu0 %4500  ;;  %11883 = vmatmul.mubr.msk.f32.vlgmr.msra.gmra.mrb[42].mxu1 %vm325_vm5, %v13832_v58 }
0x1403   :  { %v4425_v3 = vpop.permute.xlu1 %4424  ;;  %11896 = vmatpush3.xpose.msk.msra.mxu0 %vm325_vm5, %v4501_v2  ;;  %11892 = vmatprep.mubr.msk.f32.mxu1 %vm12934_vm4, %v12933_v6 }
0x1404   :  { %11891 = vmatpush3.xpose.msk.msra.mxu1 %vm325_vm5, %v4425_v3  ;;  %11897 = vmatprep.mubr.msk.f32.mxu0 %vm12934_vm4, %v12933_v6 }
0x1405   :  { %11900 = vmatprep.subr.mxu1 %v12933_v6  ;;  %11905 = vmatprep.subr.mxu0 %v12933_v6 }
0x1406   :  { %11898 = vmatmul.mubr.msk.f32.vlgmr.msra.gmra.mrb[52].mxu0 %vm325_vm5, %v13830_v55 }
0x1407   :  { %11893 = vmatmul.mubr.msk.f32.vlgmr.msra.gmra.mrb[44].mxu1 %vm325_vm5, %v13838_v60  ;;  %v4577_v23 = vpop.permute.xlu1 %4576  ;;  %11907 = vmatprep.mubr.msk.f32.mxu0 %vm12934_vm4, %v12933_v6 }
0x1408   :  { %11901 = vmatpush3.xpose.msk.msra.mxu1 %vm325_vm5, %v4577_v23  ;;  %11902 = vmatprep.mubr.msk.f32.mxu1 %vm12934_vm4, %v12933_v6 }
0x1409   :  { %11910 = vmatprep.subr.mxu1 %v12933_v6 }
0x140b   :  { %11903 = vmatmul.mubr.msk.f32.vlgmr.msra.gmra.mrb[46].mxu1 %vm325_vm5, %v13848_v61 }
0x140c   :  { %11912 = vmatprep.mubr.msk.f32.mxu1 %vm12934_vm4, %v12933_v6 }
0x1466   :  { %v4116_v31 = vpop.f32.mrb[46].mxu0 }
0x1467   :  { %v4652_v14 = vmul.f32 0.35355338, %v4116_v31  ;;  %v11869_v19 = vpop.f32.mrb[47].mxu0 }
0x1469   :  { %v4660_v9 = vsel %vm325_vm5, %v4652_v14, -inf }
0x146a   :  { %4661 = vmax.xlane.f32.xlu0 %v4660_v9 }
0x146e   :  { %v4192_v17 = vpop.f32.mrb[40].mxu1 }
0x146f   :  { %v4653_v10 = vmul.f32 0.35355338, %v4192_v17  ;;  %v11874_v20 = vpop.f32.mrb[41].mxu1 }
0x1471   :  { %v4663_v13 = vsel %vm325_vm5, %v4653_v10, -inf }
0x1472   :  { %4664 = vmax.xlane.f32.xlu1 %v4663_v13 }
0x14d1   :  { %v4268_v12 = vpop.f32.mrb[48].mxu0 }
0x14d2   :  { %v4654_v16 = vmul.f32 0.35355338, %v4268_v12  ;;  %v11879_v24 = vpop.f32.mrb[49].mxu0 }
0x14d4   :  { %v4666_v25 = vsel %vm325_vm5, %v4654_v16, -inf }
0x14d5   :  { %4667 = vmax.xlane.f32.xlu0 %v4666_v25  ;;  %v4344_v18 = vpop.f32.mrb[42].mxu1  ;;  %v4420_v27 = vpop.f32.mrb[50].mxu0 }
0x14d6   :  { %v4655_v7 = vmul.f32 0.35355338, %v4344_v18  ;;  %v4656_v4 = vmul.f32 0.35355338, %v4420_v27  ;;  %v11884_v28 = vpop.f32.mrb[43].mxu1  ;;  %v11889_v11 = vpop.f32.mrb[51].mxu0 }
0x14d8   :  { %v4672_v29 = vsel %vm325_vm5, %v4656_v4, -inf  ;;  %v4669_v30 = vsel %vm325_vm5, %v4655_v7, -inf }
0x14d9   :  { %v4572_v32 = vpop.f32.mrb[52].mxu0  ;;  %4673 = vmax.xlane.f32.xlu1 %v4672_v29  ;;  %4670 = vmax.xlane.f32.xlu0 %v4669_v30 }
0x14da   :  { %v4658_v33 = vmul.f32 0.35355338, %v4572_v32  ;;  %v4496_v34 = vpop.f32.mrb[44].mxu1  ;;  %v11899_v36 = vpop.f32.mrb[53].mxu0 }
0x14db   :  { %v4657_v37 = vmul.f32 0.35355338, %v4496_v34  ;;  %v11894_v38 = vpop.f32.mrb[45].mxu1 }
0x14dc   :  { %v4678_v39 = vsel %vm325_vm5, %v4658_v33, -inf }
0x14dd   :  { %4679 = vmax.xlane.f32.xlu1 %v4678_v39  ;;  %v4675_v40 = vsel %vm325_vm5, %v4657_v37, -inf }
0x14de   :  { %4676 = vmax.xlane.f32.xlu0 %v4675_v40  ;;  %v4648_v42 = vpop.f32.mrb[46].mxu1 }
0x14df   :  { %v4659_v44 = vmul.f32 0.35355338, %v4648_v42  ;;  %v11904_v46 = vpop.f32.mrb[47].mxu1 }
0x14e1   :  { %v4681_v48 = vsel %vm325_vm5, %v4659_v44, -inf }
0x14e2   :  { %4682 = vmax.xlane.f32.xlu0 %v4681_v48 }
0x14ee   :  { %4748 = vrot.lane.b32.xlu1 %v13804_v49, %s12939_s13 }
0x14f2   :  { %4900 = vrot.lane.b32.xlu1 %v13826_v52, %s12939_s13 }
0x14f6   :  { %4976 = vrot.lane.b32.xlu1 %v13832_v58, %s12939_s13 }
0x14f7   :  { %v4662_v62 = vpop.xlane.xlu0 %4661 }
0x14f8   :  { %4824 = vrot.lane.b32.xlu0 %v13810_v50, %s12939_s13  ;;  %v4684_v0 = vsub.f32 %v4652_v14, %v4662_v62 }
0x14fa   :  { %5128 = vrot.lane.b32.xlu1 %v13838_v60, %s12939_s13  ;;  %v4692_v1 = vmul.f32 1.442695, %v4684_v0 }
0x14fc   :  { %5052 = vrot.lane.b32.xlu0 %v13824_v51, %s12939_s13 }
0x14ff   :  { %v4665_v59 = vpop.xlane.xlu1 %4664 }
0x1500   :  { %v4685_v63 = vsub.f32 %v4653_v10, %v4665_v59 }
0x1502   :  { %v4694_v49 = vmul.f32 1.442695, %v4685_v63 }
0x1504   :  { %12673 = vpow2.f32 %v4694_v49 }
0x1505   :  { %12675 = vpow2.f32 %v4692_v1 }
0x150e   :  { %v13916_v52 = vpop.eup %12673 }
0x150f   :  { %v13918_v58 = vpop.eup %12675  ;;  %v4711_v50 = vsel %vm325_vm5, %v13916_v52, 0.0 }
0x1510   :  { %v4708_v60 = vsel %vm325_vm5, %v13918_v58, 0.0 }
0x151b   :  { %4712 = vadd.xlane.f32.xlu0 %v4711_v50 }
0x151e   :  { %4709 = vadd.xlane.f32.xlu1 %v4708_v60 }
0x1562   :  { %v4668_v51 = vpop.xlane.xlu0 %4667 }
0x1563   :  { %v4686_v2 = vsub.f32 %v4654_v16, %v4668_v51 }
0x1565   :  { %v4696_v3 = vmul.f32 1.442695, %v4686_v2 }
0x1566   :  { %v4671_v23 = vpop.xlane.xlu0 %4670  ;;  %v4674_v31 = vpop.xlane.xlu1 %4673 }
0x1567   :  { %12677 = vpow2.f32 %v4696_v3  ;;  %v4687_v14 = vsub.f32 %v4655_v7, %v4671_v23  ;;  %v4688_v19 = vsub.f32 %v4656_v4, %v4674_v31 }
0x1569   :  { %v4698_v9 = vmul.f32 1.442695, %v4687_v14  ;;  %v4700_v17 = vmul.f32 1.442695, %v4688_v19 }
0x156a   :  { %v4680_v10 = vpop.xlane.xlu1 %4679 }
0x156b   :  { %12679 = vpow2.f32 %v4698_v9  ;;  %v4677_v20 = vpop.xlane.xlu0 %4676  ;;  %v4690_v13 = vsub.f32 %v4658_v33, %v4680_v10 }
0x156c   :  { %12681 = vpow2.f32 %v4700_v17  ;;  %v4689_v12 = vsub.f32 %v4657_v37, %v4677_v20 }
0x156d   :  { %v4704_v24 = vmul.f32 1.442695, %v4690_v13 }
0x156e   :  { %v4702_v25 = vmul.f32 1.442695, %v4689_v12  ;;  %v4749_v18 = vpop.permute.xlu1 %4748 }
0x156f   :  { %12683 = vpow2.f32 %v4704_v24  ;;  %v4683_v27 = vpop.xlane.xlu0 %4682  ;;  %11906 = vmatpush3.msra.mxu0 %v4749_v18 }
0x1570   :  { %12685 = vpow2.f32 %v4702_v25  ;;  %v4691_v16 = vsub.f32 %v4659_v44, %v4683_v27  ;;  %11915 = vmatprep.subr.mxu0 %v12933_v6 }
0x1571   :  { %v12678_v7 = vpop.eup %12677 }
0x1572   :  { %v4706_v4 = vmul.f32 1.442695, %v4691_v16  ;;  %v4714_v28 = vsel %vm325_vm5, %v12678_v7, 0.0  ;;  %v4901_v42 = vpop.permute.xlu1 %4900 }
0x1573   :  { %v4825_v11 = vpop.permute.xlu0 %4824  ;;  %4715 = vadd.xlane.f32.xlu1 %v4714_v28 }
0x1574   :  { %12687 = vpow2.f32 %v4706_v4  ;;  %11911 = vmatpush3.msra.mxu1 %v4825_v11  ;;  %v4027_v4 = vld [vmem:[%s14802_s9 + $0x8] sm:$0xff]  ;;  %v4028_v11 = vld [vmem:[%s14802_s9 + $0x10] sm:$0xff] }
0x1575   :  { %v12680_v29 = vpop.eup %12679  ;;  %11920 = vmatprep.subr.mxu1 %v12933_v6 }
0x1576   :  { %v12682_v30 = vpop.eup %12681  ;;  %v4717_v32 = vsel %vm325_vm5, %v12680_v29, 0.0  ;;  %v4977_v44 = vpop.permute.xlu1 %4976 }
0x1577   :  { %4718 = vadd.xlane.f32.xlu0 %v4717_v32  ;;  %v4720_v33 = vsel %vm325_vm5, %v12682_v30, 0.0  ;;  %v5053_v46 = vpop.permute.xlu0 %5052 }
0x1578   :  { %4721 = vadd.xlane.f32.xlu1 %v4720_v33 }
0x1579   :  { %v13929_v34 = vpop.eup %12683 }
0x157a   :  { %v12686_v36 = vpop.eup %12685  ;;  %v4726_v37 = vsel %vm325_vm5, %v13929_v34, 0.0  ;;  %v5129_v48 = vpop.permute.xlu1 %5128 }
0x157b   :  { %v4723_v38 = vsel %vm325_vm5, %v12686_v36, 0.0 }
0x157c   :  { %4724 = vadd.xlane.f32.xlu0 %v4723_v38  ;;  %4727 = vadd.xlane.f32.xlu1 %v4726_v37 }
0x157e   :  { %v13934_v39 = vpop.eup %12687 }
0x157f   :  { %v4729_v40 = vsel %vm325_vm5, %v13934_v39, 0.0 }
0x1580   :  { %4730 = vadd.xlane.f32.xlu0 %v4729_v40 }
0x158d   :  { %5280 = vrot.lane.b32.xlu1 %v13848_v61, %s12939_s13 }
0x1596   :  { %5204 = vrot.lane.b32.xlu0 %v13830_v55, %s12939_s13 }
0x15a8   :  { %v4713_v59 = vpop.xlane.xlu0 %4712 }
0x15a9   :  { %12689 = vrcp.f32 %v4713_v59  ;;  %v12829_v59 = vld [vmem:[%s14800_s7 + $0x8] sm:$0xff] }
0x15ab   :  { %v4710_v62 = vpop.xlane.xlu1 %4709 }
0x15ac   :  { %12691 = vrcp.f32 %v4710_v62  ;;  %v3712_v62 = vrot.slane %v12829_v59, %v13437_v15 }
0x15b3   :  { %v12690_v63 = vpop.eup %12689 }
0x15b4   :  { %v4741_v0 = vmul.f32 %v12690_v63, %v13916_v52  ;;  %v3786_v63 = vadd.f32 %v13802_v47, %v3712_v62  ;;  %v5604_v47 = vld [vmem:[#allocation4] sm:$0xff] }
0x15b6   :  { %v12692_v49 = vpop.eup %12691  ;;  %11913 = vmatmul.mubr.msk.f32.vlgmr.msra.gmra.mrb[48].mxu1 %vm325_vm5, %v4741_v0  ;;  %v3791_v0 = vadd.f32 %v13800_v45, %v3712_v62  ;;  %v5605_v45 = vld [vmem:[#allocation4 + $0x8] sm:$0xff] }
0x15b7   :  { %11921 = vmatpush3.msra.mxu1 %v4977_v44  ;;  %v4740_v61 = vmul.f32 %v12692_v49, %v13918_v58  ;;  %11922 = vmatprep.mubr.msk.f32.mxu1 %vm12934_vm4, %v12933_v6  ;;  %v3794_v49 = vadd.f32 %v3786_v63, %v13743_v8 }
0x15b8   :  { %11930 = vmatprep.subr.mxu1 %v12933_v6 }
0x15b9   :  { %11908 = vmatmul.mubr.msk.f32.vlgmr.msra.gmra.mrb[54].mxu0 %vm325_vm5, %v4740_v61  ;;  %v3795_v61 = vadd.f32 %v3791_v0, %v13754_v26 }
0x15ba   :  { %11916 = vmatpush3.msra.mxu0 %v4901_v42  ;;  %11917 = vmatprep.mubr.msk.f32.mxu0 %vm12934_vm4, %v12933_v6 }
0x15bb   :  { %11925 = vmatprep.subr.mxu0 %v12933_v6 }
0x1600   :  { %v4716_v55 = vpop.xlane.xlu1 %4715 }
0x1601   :  { %12693 = vrcp.f32 %v4716_v55  ;;  %v3796_v55 = vsel %vm223_vm3, %v3794_v49, 0.0 }
0x1604   :  { %v4719_v1 = vpop.xlane.xlu0 %4718 }
0x1605   :  { %12695 = vrcp.f32 %v4719_v1  ;;  %v4722_v52 = vpop.xlane.xlu1 %4721  ;;  %v3804_v1 = vmul.f32 %v3794_v49, %v3794_v49 }
0x1606   :  { %12697 = vrcp.f32 %v4722_v52 }
0x1607   :  { %v3806_v52 = vsel %vm223_vm3, %v3804_v1, 0.0 }
0x1609   :  { %v4725_v58 = vpop.xlane.xlu0 %4724  ;;  %v4728_v50 = vpop.xlane.xlu1 %4727 }
0x160a   :  { %12699 = vrcp.f32 %v4725_v58  ;;  %v3805_v58 = vmul.f32 %v3795_v61, %v3795_v61 }
0x160b   :  { %v12694_v60 = vpop.eup %12693  ;;  %12701 = vrcp.f32 %v4728_v50 }
0x160c   :  { %v4742_v51 = vmul.f32 %v12694_v60, %v12678_v7  ;;  %v4026_v7 = vld [vmem:[%s14802_s9] sm:$0xff]  ;;  %v3809_v50 = vsel %vm223_vm3, %v3805_v58, 0.0  ;;  %v3799_v60 = vsel %vm223_vm3, %v3795_v61, 0.0 }
0x160d   :  { %v4731_v2 = vpop.xlane.xlu0 %4730  ;;  %v5281_v13 = vpop.permute.xlu1 %5280  ;;  %v12451_v28 = vpack.c.bf16 %v4027_v4, %v4026_v7 }
0x160e   :  { %12703 = vrcp.f32 %v4731_v2  ;;  %11918 = vmatmul.mubr.msk.f32.vlgmr.msra.gmra.mrb[56].mxu0 %vm325_vm5, %v4742_v51  ;;  %v12467_v51 = vpack.c.bf16 %v5605_v45, %v5604_v47 }
0x160f   :  { %v12696_v3 = vpop.eup %12695  ;;  %11926 = vmatpush3.msra.mxu0 %v5053_v46  ;;  %11927 = vmatprep.mubr.msk.f32.mxu0 %vm12934_vm4, %v12933_v6 }
0x1610   :  { %v12698_v23 = vpop.eup %12697  ;;  %11935 = vmatprep.subr.mxu0 %v12933_v6  ;;  %v4743_v31 = vmul.f32 %v12696_v3, %v12680_v29  ;;  %v4029_v29 = vld [vmem:[%s14802_s9 + $0x18] sm:$0xff] }
0x1611   :  { %v5205_v14 = vpop.permute.xlu0 %5204  ;;  %v4744_v19 = vmul.f32 %v12698_v23, %v12682_v30  ;;  %v12455_v30 = vpack.c.bf16 %v4029_v29, %v4028_v11 }
0x1612   :  { %11923 = vmatmul.mubr.msk.f32.vlgmr.msra.gmra.mrb[50].mxu1 %vm325_vm5, %v4743_v31 }
0x1613   :  { %11928 = vmatmul.mubr.msk.f32.vlgmr.msra.gmra.mrb[58].mxu0 %vm325_vm5, %v4744_v19  ;;  %11931 = vmatpush3.msra.mxu1 %v5129_v48  ;;  %v5606_v19 = vld [vmem:[#allocation4 + $0x10] sm:$0xff] }
0x1614   :  { %v12700_v9 = vpop.eup %12699  ;;  %11936 = vmatpush3.msra.mxu0 %v5205_v14  ;;  %11932 = vmatprep.mubr.msk.f32.mxu1 %vm12934_vm4, %v12933_v6 }
0x1615   :  { %v12702_v17 = vpop.eup %12701  ;;  %11937 = vmatprep.mubr.msk.f32.mxu0 %vm12934_vm4, %v12933_v6  ;;  %11940 = vmatprep.subr.mxu1 %v12933_v6  ;;  %v4745_v10 = vmul.f32 %v12700_v9, %v12686_v36  ;;  %v5607_v9 = vld [vmem:[#allocation4 + $0x18] sm:$0xff] }
0x1616   :  { %v4746_v20 = vmul.f32 %v12702_v17, %v13929_v34  ;;  %12452 = vmatprep.subr.bf16.mxu0 %v12451_v28 }
0x1617   :  { %11933 = vmatmul.mubr.msk.f32.vlgmr.msra.gmra.mrb[52].mxu1 %vm325_vm5, %v4745_v10 }
0x1618   :  { %v12704_v12 = vpop.eup %12703  ;;  %11938 = vmatmul.mubr.msk.f32.vlgmr.msra.gmra.mrb[60].mxu0 %vm325_vm5, %v4746_v20  ;;  %11941 = vmatpush3.msra.mxu1 %v5281_v13 }
0x1619   :  { %11942 = vmatprep.mubr.msk.f32.mxu1 %vm12934_vm4, %v12933_v6  ;;  %v4747_v24 = vmul.f32 %v12704_v12, %v13934_v39  ;;  %12454 = vmatpush3.bf16.msra.mxu0 %v12451_v28  ;;  %v12471_v12 = vpack.c.bf16 %v5607_v9, %v5606_v19 }
0x161a   :  { %12456 = vmatprep.subr.bf16.mxu0 %v12455_v30 }
0x161b   :  { %11943 = vmatmul.mubr.msk.f32.vlgmr.msra.gmra.mrb[54].mxu1 %vm325_vm5, %v4747_v24 }
0x161d   :  { %12458 = vmatpush3.bf16.msra.mxu0 %v12455_v30 }
0x161e   :  { %12468 = vmatprep.subr.bf16.mxu0 %v12467_v51 }
0x1689   :  { %v13970_v25 = vpop.f32.mrb[48].mxu1 }
0x168a   :  { %v11914_v18 = vpop.f32.mrb[49].mxu1 }
0x168c   :  { %v4820_v27 = vpop.f32.mrb[54].mxu0 }
0x168d   :  { %v11909_v16 = vpop.f32.mrb[55].mxu0 }
0x16e1   :  { %v4972_v32 = vpop.f32.mrb[56].mxu0 }
0x16e2   :  { %5358 = vrot.lane.b32.xlu0 %v4972_v32, %s12929_s25  ;;  %v11919_v33 = vpop.f32.mrb[57].mxu0 }
0x16e5   :  { %v5048_v34 = vpop.f32.mrb[50].mxu1 }
0x16e6   :  { %v5124_v36 = vpop.f32.mrb[58].mxu0  ;;  %5360 = vrot.lane.b32.xlu1 %v5048_v34, %s12929_s25  ;;  %v11924_v37 = vpop.f32.mrb[51].mxu1 }
0x16e7   :  { %5366 = vrot.lane.b32.xlu0 %v5124_v36, %s12940_s12  ;;  %v11929_v38 = vpop.f32.mrb[59].mxu0 }
0x16e8   :  { %v3829_v38 = vrot.slane %v12829_v59, %v13459_v56 }
0x16ea   :  { %v5200_v39 = vpop.f32.mrb[52].mxu1 }
0x16eb   :  { %v5276_v40 = vpop.f32.mrb[60].mxu0  ;;  %5368 = vrot.lane.b32.xlu1 %v5200_v39, %s12940_s12  ;;  %v11934_v42 = vpop.f32.mrb[53].mxu1 }
0x16ec   :  { %5374 = vrot.lane.b32.xlu0 %v5276_v40, %s12941_s26  ;;  %v11939_v44 = vpop.f32.mrb[61].mxu0  ;;  %v3835_v42 = vrot.slane %v12829_v59, %v13462_v57  ;;  %v5389_v59 = vrot.slane %v13796_v21, %v13362_v5 }
0x16ee   :  { %v5352_v46 = vpop.f32.mrb[54].mxu1 }
0x16ef   :  { %5376 = vrot.lane.b32.xlu1 %v5352_v46, %s12941_s26  ;;  %v11944_v48 = vpop.f32.mrb[55].mxu1 }
0x170b   :  { %3797 = vadd.xlane.f32.xlu0 %v3796_v55 }
0x170f   :  { %3807 = vadd.xlane.f32.xlu0 %v3806_v52 }
0x1713   :  { %3810 = vadd.xlane.f32.xlu0 %v3809_v50  ;;  %3800 = vadd.xlane.f32.xlu1 %v3799_v60 }
0x1754   :  { %v5359_v8 = vpop.permute.xlu0 %5358 }
0x1755   :  { %v5380_v3 = vsel %vm325_vm5, %v4820_v27, %v5359_v8 }
0x1758   :  { %v5361_v26 = vpop.permute.xlu1 %5360 }
0x1759   :  { %v5367_v2 = vpop.permute.xlu0 %5366  ;;  %v5381_v10 = vsel %vm325_vm5, %v13970_v25, %v5361_v26 }
0x175a   :  { %v5382_v31 = vsel %vm132_vm0, %v5380_v3, %v5367_v2  ;;  %v5515_v2 = vld [vmem:[#allocation2] sm:$0xff]  ;;  %v5516_v3 = vld [vmem:[#allocation2 + $0x8] sm:$0xff] }
0x175d   :  { %v5369_v23 = vpop.permute.xlu1 %5368 }
0x175e   :  { %v5375_v14 = vpop.permute.xlu0 %5374  ;;  %v5383_v20 = vsel %vm132_vm0, %v5381_v10, %v5369_v23  ;;  %v5517_v23 = vld [vmem:[#allocation2 + $0x10] sm:$0xff] }
0x175f   :  { %v5384_v17 = vsel %vm1664_vm6, %v5382_v31, %v5375_v14  ;;  %v5518_v31 = vld [vmem:[#allocation2 + $0x18] sm:$0xff]  ;;  %v5611_v14 = vrot.slane %v13796_v21, %v13437_v15 }
0x1760   :  { %11953 = vmatprep.mubr.msk.f32.mxu0 %vm223_vm3, %v5384_v17 }
0x1761   :  { %v5377_v13 = vpop.permute.xlu1 %5376 }
0x1762   :  { %v5385_v24 = vsel %vm1664_vm6, %v5383_v20, %v5377_v13 }
0x1763   :  { %11954 = vmatmul.mubr.msk.f32.vlgmr.msra.gmra.mrb[62].mxu0 %vm223_vm3, %v5385_v24 }
0x1764   :  { %12470 = vmatpush3.bf16.msra.mxu0 %v12467_v51 }
0x1765   :  { %12472 = vmatprep.subr.bf16.mxu0 %v12471_v12 }
0x1768   :  { %12474 = vmatpush3.bf16.msra.mxu0 %v12471_v12 }
0x1769   :  { %11988 = vmatprep.subr.mxu0 %v12933_v6 }
0x1798   :  { %v3798_v18 = vpop.xlane.xlu0 %3797 }
0x1799   :  { %v3802_v27 = vmul.f32 0.03125, %v3798_v18 }
0x179b   :  { %v3814_v7 = vmul.f32 %v3802_v27, %v3802_v27  ;;  %v3818_v37 = vsub.f32 %v3794_v49, %v3802_v27 }
0x179c   :  { %v3808_v16 = vpop.xlane.xlu0 %3807 }
0x179d   :  { %v3812_v25 = vmul.f32 0.03125, %v3808_v16 }
0x179f   :  { %v3816_v4 = vsub.f32 %v3812_v25, %v3814_v7 }
0x17a0   :  { %v3811_v28 = vpop.xlane.xlu0 %3810  ;;  %v3801_v11 = vpop.xlane.xlu1 %3800 }
0x17a1   :  { %v3820_v29 = vadd.f32 1e-05, %v3816_v4  ;;  %v3803_v30 = vmul.f32 0.03125, %v3801_v11  ;;  %v3813_v32 = vmul.f32 0.03125, %v3811_v28 }
0x17a3   :  { %12705 = vrsqrt.f32 %v3820_v29  ;;  %v3815_v33 = vmul.f32 %v3803_v30, %v3803_v30  ;;  %v3819_v46 = vsub.f32 %v3795_v61, %v3803_v30 }
0x17a5   :  { %v3817_v34 = vsub.f32 %v3813_v32, %v3815_v33  ;;  %v5506_v33 = vrot.slane %v13796_v21, %v13408_v53 }
0x17a7   :  { %v3821_v36 = vadd.f32 1e-05, %v3817_v34 }
0x17a9   :  { %12707 = vrsqrt.f32 %v3821_v36 }
0x17ad   :  { %v12706_v39 = vpop.eup %12705 }
0x17ae   :  { %v3824_v40 = vmul.f32 %v12706_v39, %v3818_v37 }
0x17b0   :  { %v3830_v44 = vmul.f32 %v3829_v38, %v3824_v40  ;;  %v5512_v40 = vrot.slane %v13796_v21, %v13411_v54 }
0x17b2   :  { %v14014_v48 = vadd.f32 %v3835_v42, %v3830_v44 }
0x17b3   :  { %v12708_v62 = vpop.eup %12707 }
0x17b4   :  { %v3825_v63 = vmul.f32 %v12708_v62, %v3819_v46  ;;  %11975 = vmatprep.mubr.msk.f32.mxu0 %vm223_vm3, %v14014_v48 }
0x17b6   :  { %v3831_v0 = vmul.f32 %v3829_v38, %v3825_v63 }
0x17b8   :  { %v14018_v55 = vadd.f32 %v3835_v42, %v3831_v0 }
0x17ba   :  { %11976 = vmatmul.mubr.msk.f32.vlgmr.msra.gmra.mrb[64].mxu0 %vm223_vm3, %v14018_v55 }
0x17bb   :  { %11990 = vmatprep.mubr.msk.f32.mxu0 %vm12934_vm4, %v12933_v6 }
0x1836   :  { %v11955_v49 = vpop.f32.mrb[62].mxu0 }
0x1837   :  { %v5468_v61 = vadd.f32 %v11955_v49, %v5389_v59  ;;  %v5462_v1 = vpop.f32.mrb[63].mxu0 }
0x1838   :  { %v5463_v52 = vadd.f32 %v5462_v1, %v5389_v59  ;;  %v5522_v59 = vrot.slane %v13796_v21, %v13428_v35 }
0x1839   :  { %v5472_v58 = vadd.f32 %v13779_v41, %v5468_v61  ;;  %v12459_v41 = vpack.c.bf16 %v5516_v3, %v5515_v2 }
0x183a   :  { %v5471_v50 = vadd.f32 %v5463_v52, %v13781_v43  ;;  %v12463_v43 = vpack.c.bf16 %v5518_v31, %v5517_v23 }
0x183b   :  { %v5476_v60 = vsel %vm223_vm3, %v5472_v58, 0.0  ;;  %v5482_v47 = vmul.f32 %v5472_v58, %v5472_v58  ;;  %12460 = vmatprep.subr.bf16.mxu1 %v12459_v41 }
0x183c   :  { %5477 = vadd.xlane.f32.xlu0 %v5476_v60  ;;  %v5473_v45 = vsel %vm223_vm3, %v5471_v50, 0.0  ;;  %v5481_v51 = vmul.f32 %v5471_v50, %v5471_v50  ;;  %12462 = vmatpush3.bf16.msra.mxu1 %v12459_v41 }
0x183d   :  { %5474 = vadd.xlane.f32.xlu1 %v5473_v45  ;;  %v5486_v8 = vsel %vm223_vm3, %v5482_v47, 0.0  ;;  %12464 = vmatprep.subr.bf16.mxu1 %v12463_v43 }
0x183e   :  { %v5483_v26 = vsel %vm223_vm3, %v5481_v51, 0.0 }
0x1840   :  { %5487 = vadd.xlane.f32.xlu0 %v5486_v8  ;;  %12466 = vmatpush3.bf16.msra.mxu1 %v12463_v43 }
0x1841   :  { %5484 = vadd.xlane.f32.xlu1 %v5483_v26  ;;  %11978 = vmatprep.subr.mxu1 %v12933_v6 }
0x188d   :  { %v11977_v19 = vpop.f32.mrb[64].mxu0 }
0x188e   :  { %v14035_v9 = vadd.f32 %v11977_v19, %v5611_v14  ;;  %v5684_v17 = vpop.f32.mrb[65].mxu0 }
0x188f   :  { %v14041_v10 = vadd.f32 %v5684_v17, %v5611_v14 }
0x1890   :  { %5719 = vrot.lane.b32.xlu1 %v14035_v9, %s12935_s10  ;;  %5715 = vrot.lane.b32.xlu0 %v14035_v9, %s12936_s30 }
0x1894   :  { %5717 = vrot.lane.b32.xlu0 %v14041_v10, %s12935_s10  ;;  %5713 = vrot.lane.b32.xlu1 %v14041_v10, %s12936_s30 }
0x1898   :  { %5721 = vrot.lane.b32.xlu0 %v14041_v10, %s12937_s11 }
0x18c9   :  { %v5478_v20 = vpop.xlane.xlu0 %5477 }
0x18ca   :  { %v5480_v13 = vmul.f32 0.03125, %v5478_v20  ;;  %v5475_v12 = vpop.xlane.xlu1 %5474 }
0x18cb   :  { %v5479_v24 = vmul.f32 0.03125, %v5475_v12 }
0x18cc   :  { %v5492_v27 = vmul.f32 %v5480_v13, %v5480_v13  ;;  %v5496_v32 = vsub.f32 %v5472_v58, %v5480_v13 }
0x18cd   :  { %v5488_v18 = vpop.xlane.xlu0 %5487  ;;  %v5491_v25 = vmul.f32 %v5479_v24, %v5479_v24  ;;  %v5495_v36 = vsub.f32 %v5471_v50, %v5479_v24 }
0x18ce   :  { %v5490_v16 = vmul.f32 0.03125, %v5488_v18  ;;  %v5485_v7 = vpop.xlane.xlu1 %5484 }
0x18cf   :  { %v5489_v4 = vmul.f32 0.03125, %v5485_v7 }
0x18d0   :  { %v5494_v28 = vsub.f32 %v5490_v16, %v5492_v27 }
0x18d1   :  { %v5493_v11 = vsub.f32 %v5489_v4, %v5491_v25 }
0x18d2   :  { %v5498_v29 = vadd.f32 1e-05, %v5494_v28 }
0x18d3   :  { %v5497_v30 = vadd.f32 1e-05, %v5493_v11 }
0x18d4   :  { %12709 = vrsqrt.f32 %v5498_v29 }
0x18d5   :  { %12711 = vrsqrt.f32 %v5497_v30 }
0x18de   :  { %v12710_v34 = vpop.eup %12709 }
0x18df   :  { %v12712_v37 = vpop.eup %12711  ;;  %v5502_v38 = vmul.f32 %v12710_v34, %v5496_v32 }
0x18e0   :  { %v5501_v39 = vmul.f32 %v12712_v37, %v5495_v36 }
0x18e1   :  { %v5508_v42 = vmul.f32 %v5506_v33, %v5502_v38 }
0x18e2   :  { %v5507_v44 = vmul.f32 %v5506_v33, %v5501_v39 }
0x18e3   :  { %v14055_v62 = vadd.f32 %v5512_v40, %v5508_v42 }
0x18e4   :  { %v14053_v46 = vadd.f32 %v5512_v40, %v5507_v44 }
0x18e6   :  { %11964 = vmatprep.mubr.msk.f32.mxu1 %vm223_vm3, %v14053_v46 }
0x18e7   :  { %11965 = vmatmul.mubr.msk.f32.vlgmr.msra.gmra.mrb[56].mxu1 %vm223_vm3, %v14055_v62 }
0x18e8   :  { %11979 = vmatpush3.xpose.msk.msra.mxu1 %vm325_vm5, %v14041_v10  ;;  %11980 = vmatprep.mubr.msk.f32.mxu1 %vm12934_vm4, %v12933_v6 }
0x18e9   :  { %11983 = vmatprep.subr.mxu1 %v12933_v6 }
0x1902   :  { %v14066_v63 = vpop.permute.xlu1 %5719  ;;  %v14084_v21 = vpop.permute.xlu0 %5715 }
0x1906   :  { %v14068_v0 = vpop.permute.xlu1 %5713  ;;  %v14097_v58 = vpop.permute.xlu0 %5717 }
0x1907   :  { %11989 = vmatpush3.xpose.msk.msra.mxu0 %vm325_vm5, %v14068_v0 }
0x1908   :  { %11998 = vmatprep.subr.mxu0 %v12933_v6 }
0x190a   :  { %v14100_v60 = vpop.permute.xlu0 %5721 }
0x19ba   :  { %v11966_v49 = vpop.f32.mrb[56].mxu1 }
0x19bb   :  { %v5601_v61 = vadd.f32 %v11966_v49, %v5522_v59  ;;  %v5595_v1 = vpop.f32.mrb[57].mxu1 }
0x19bc   :  { %v5596_v52 = vadd.f32 %v5595_v1, %v5522_v59 }
0x19bd   :  { %5701 = vrot.lane.b32.xlu1 %v5601_v61, %s12936_s30 }
0x19be   :  { %5703 = vrot.lane.b32.xlu0 %v5596_v52, %s12935_s10  ;;  %11981 = vmatmul.mubr.msk.f32.vlgmr.msra.gmra.mrb[58].mxu1 %vm325_vm5, %v5596_v52 }
0x19bf   :  { %11984 = vmatpush3.xpose.msk.msra.mxu1 %vm325_vm5, %v14035_v9  ;;  %11985 = vmatprep.mubr.msk.f32.mxu1 %vm12934_vm4, %v12933_v6 }
0x19c0   :  { %11993 = vmatprep.subr.mxu1 %v12933_v6 }
0x19c1   :  { %5699 = vrot.lane.b32.xlu1 %v5596_v52, %s12936_s30 }
0x19c2   :  { %5707 = vrot.lane.b32.xlu0 %v5596_v52, %s12937_s11  ;;  %11986 = vmatmul.mubr.msk.f32.vlgmr.msra.gmra.mrb[60].mxu1 %vm325_vm5, %v5601_v61 }
0x19c3   :  { %11994 = vmatpush3.xpose.msk.msra.mxu1 %vm325_vm5, %v14084_v21  ;;  %11995 = vmatprep.mubr.msk.f32.mxu1 %vm12934_vm4, %v12933_v6 }
0x19c4   :  { %12003 = vmatprep.subr.mxu1 %v12933_v6 }
0x19c5   :  { %5705 = vrot.lane.b32.xlu1 %v5601_v61, %s12935_s10 }
0x19c9   :  { %5723 = vrot.lane.b32.xlu1 %v14035_v9, %s12937_s11 }
0x19cd   :  { %5709 = vrot.lane.b32.xlu1 %v5601_v61, %s12937_s11 }
0x1a2f   :  { %v5702_v50 = vpop.permute.xlu1 %5701 }
0x1a30   :  { %11996 = vmatmul.mubr.msk.f32.vlgmr.msra.gmra.mrb[62].mxu1 %vm325_vm5, %v5702_v50  ;;  %v5704_v45 = vpop.permute.xlu0 %5703 }
0x1a31   :  { %12004 = vmatpush3.xpose.msk.msra.mxu1 %vm325_vm5, %v14066_v63  ;;  %12005 = vmatprep.mubr.msk.f32.mxu1 %vm12934_vm4, %v12933_v6 }
0x1a32   :  { %12013 = vmatprep.subr.mxu1 %v12933_v6 }
0x1a33   :  { %v5700_v47 = vpop.permute.xlu1 %5699 }
0x1a34   :  { %11991 = vmatmul.mubr.msk.f32.vlgmr.msra.gmra.mrb[66].mxu0 %vm325_vm5, %v5700_v47  ;;  %v5708_v8 = vpop.permute.xlu0 %5707 }
0x1a35   :  { %11999 = vmatpush3.xpose.msk.msra.mxu0 %vm325_vm5, %v14097_v58  ;;  %12000 = vmatprep.mubr.msk.f32.mxu0 %vm12934_vm4, %v12933_v6 }
0x1a36   :  { %12008 = vmatprep.subr.mxu0 %v12933_v6 }
0x1a37   :  { %v5706_v51 = vpop.permute.xlu1 %5705 }
0x1a38   :  { %12001 = vmatmul.mubr.msk.f32.vlgmr.msra.gmra.mrb[68].mxu0 %vm325_vm5, %v5704_v45  ;;  %12006 = vmatmul.mubr.msk.f32.vlgmr.msra.gmra.mrb[64].mxu1 %vm325_vm5, %v5706_v51 }
0x1a39   :  { %12009 = vmatpush3.xpose.msk.msra.mxu0 %vm325_vm5, %v14100_v60  ;;  %12010 = vmatprep.mubr.msk.f32.mxu0 %vm12934_vm4, %v12933_v6 }
0x1a3a   :  { %12015 = vmatprep.mubr.msk.f32.mxu1 %vm12934_vm4, %v12933_v6  ;;  %12018 = vmatprep.subr.mxu0 %v12933_v6 }
0x1a3b   :  { %v14122_v26 = vpop.permute.xlu1 %5723 }
0x1a3c   :  { %12011 = vmatmul.mubr.msk.f32.vlgmr.msra.gmra.mrb[70].mxu0 %vm325_vm5, %v5708_v8  ;;  %12014 = vmatpush3.xpose.msk.msra.mxu1 %vm325_vm5, %v14122_v26 }
0x1a3d   :  { %12023 = vmatprep.subr.mxu1 %v12933_v6  ;;  %12020 = vmatprep.mubr.msk.f32.mxu0 %vm12934_vm4, %v12933_v6 }
0x1a3f   :  { %v5710_v2 = vpop.permute.xlu1 %5709 }
0x1a40   :  { %12016 = vmatmul.mubr.msk.f32.vlgmr.msra.gmra.mrb[66].mxu1 %vm325_vm5, %v5710_v2 }
0x1a41   :  { %12025 = vmatprep.mubr.msk.f32.mxu1 %vm12934_vm4, %v12933_v6 }
0x1a91   :  { %v5795_v3 = vpop.f32.mrb[58].mxu1 }
0x1a92   :  { %v6317_v23 = vmul.f32 0.35355338, %v5795_v3  ;;  %v11982_v41 = vpop.f32.mrb[59].mxu1 }
0x1a94   :  { %v6325_v31 = vsel %vm325_vm5, %v6317_v23, -inf }
0x1a95   :  { %6326 = vmax.xlane.f32.xlu0 %v6325_v31  ;;  %v5869_v43 = vpop.f32.mrb[60].mxu1 }
0x1a96   :  { %v6318_v14 = vmul.f32 0.35355338, %v5869_v43  ;;  %v11987_v19 = vpop.f32.mrb[61].mxu1 }
0x1a98   :  { %v6328_v17 = vsel %vm325_vm5, %v6318_v14, -inf }
0x1a99   :  { %6329 = vmax.xlane.f32.xlu1 %v6328_v17 }
0x1b03   :  { %v6017_v20 = vpop.f32.mrb[62].mxu1 }
0x1b04   :  { %v11997_v13 = vpop.f32.mrb[63].mxu1  ;;  %v6320_v27 = vmul.f32 0.35355338, %v6017_v20 }
0x1b06   :  { %v6334_v30 = vsel %vm325_vm5, %v6320_v27, -inf }
0x1b07   :  { %v5943_v12 = vpop.f32.mrb[66].mxu0 }
0x1b08   :  { %v6319_v24 = vmul.f32 0.35355338, %v5943_v12  ;;  %v11992_v18 = vpop.f32.mrb[67].mxu0 }
0x1b0a   :  { %v6331_v16 = vsel %vm325_vm5, %v6319_v24, -inf }
0x1b0b   :  { %6332 = vmax.xlane.f32.xlu0 %v6331_v16  ;;  %v6091_v7 = vpop.f32.mrb[68].mxu0  ;;  %v6165_v25 = vpop.f32.mrb[64].mxu1 }
0x1b0c   :  { %v6321_v4 = vmul.f32 0.35355338, %v6091_v7  ;;  %v12002_v28 = vpop.f32.mrb[69].mxu0  ;;  %v12007_v11 = vpop.f32.mrb[65].mxu1  ;;  %v6322_v29 = vmul.f32 0.35355338, %v6165_v25 }
0x1b0e   :  { %v6337_v32 = vsel %vm325_vm5, %v6321_v4, -inf  ;;  %v6340_v38 = vsel %vm325_vm5, %v6322_v29, -inf }
0x1b0f   :  { %6335 = vmax.xlane.f32.xlu0 %v6334_v30  ;;  %6338 = vmax.xlane.f32.xlu1 %v6337_v32  ;;  %v6239_v33 = vpop.f32.mrb[70].mxu0 }
0x1b10   :  { %v6323_v34 = vmul.f32 0.35355338, %v6239_v33  ;;  %v12012_v36 = vpop.f32.mrb[71].mxu0 }
0x1b12   :  { %v6343_v37 = vsel %vm325_vm5, %v6323_v34, -inf }
0x1b13   :  { %6344 = vmax.xlane.f32.xlu1 %v6343_v37  ;;  %6341 = vmax.xlane.f32.xlu0 %v6340_v38  ;;  %v6313_v39 = vpop.f32.mrb[66].mxu1 }
0x1b14   :  { %v6324_v40 = vmul.f32 0.35355338, %v6313_v39  ;;  %v12017_v42 = vpop.f32.mrb[67].mxu1 }
0x1b16   :  { %v6346_v44 = vsel %vm325_vm5, %v6324_v40, -inf }
0x1b17   :  { %6347 = vmax.xlane.f32.xlu0 %v6346_v44 }
0x1b22   :  { %v6327_v61 = vpop.xlane.xlu0 %6326 }
0x1b23   :  { %v6349_v1 = vsub.f32 %v6317_v23, %v6327_v61 }
0x1b24   :  { %6413 = vrot.lane.b32.xlu1 %v14041_v10, %s12938_s23 }
0x1b25   :  { %v6357_v52 = vmul.f32 1.442695, %v6349_v1 }
0x1b26   :  { %v6330_v59 = vpop.xlane.xlu1 %6329 }
0x1b27   :  { %v6350_v49 = vsub.f32 %v6318_v14, %v6330_v59 }
0x1b28   :  { %6565 = vrot.lane.b32.xlu1 %v14068_v0, %s12938_s23 }
0x1b29   :  { %v6359_v10 = vmul.f32 1.442695, %v6350_v49 }
0x1b2b   :  { %12713 = vpow2.f32 %v6359_v10 }
0x1b2c   :  { %6641 = vrot.lane.b32.xlu1 %v14084_v21, %s12938_s23  ;;  %12715 = vpow2.f32 %v6357_v52 }
0x1b2d   :  { %6489 = vrot.lane.b32.xlu0 %v14035_v9, %s12938_s23 }
0x1b30   :  { %6793 = vrot.lane.b32.xlu1 %v14066_v63, %s12938_s23 }
0x1b31   :  { %6717 = vrot.lane.b32.xlu0 %v14097_v58, %s12938_s23 }
0x1b35   :  { %v14153_v0 = vpop.eup %12713 }
0x1b36   :  { %v6376_v21 = vsel %vm325_vm5, %v14153_v0, 0.0  ;;  %v14157_v9 = vpop.eup %12715 }
0x1b37   :  { %v6373_v63 = vsel %vm325_vm5, %v14157_v9, 0.0 }
0x1b50   :  { %6377 = vadd.xlane.f32.xlu0 %v6376_v21 }
0x1b54   :  { %6374 = vadd.xlane.f32.xlu1 %v6373_v63 }
0x1b98   :  { %v6333_v58 = vpop.xlane.xlu0 %6332 }
0x1b99   :  { %v6351_v50 = vsub.f32 %v6319_v24, %v6333_v58 }
0x1b9b   :  { %v6361_v47 = vmul.f32 1.442695, %v6351_v50 }
0x1b9c   :  { %v6336_v45 = vpop.xlane.xlu0 %6335  ;;  %v6339_v51 = vpop.xlane.xlu1 %6338 }
0x1b9d   :  { %12717 = vpow2.f32 %v6361_v47  ;;  %v6352_v8 = vsub.f32 %v6320_v27, %v6336_v45  ;;  %v6353_v2 = vsub.f32 %v6321_v4, %v6339_v51 }
0x1b9f   :  { %v6363_v3 = vmul.f32 1.442695, %v6352_v8  ;;  %v6365_v23 = vmul.f32 1.442695, %v6353_v2 }
0x1ba0   :  { %v6342_v41 = vpop.xlane.xlu0 %6341  ;;  %v6345_v31 = vpop.xlane.xlu1 %6344 }
0x1ba1   :  { %12719 = vpow2.f32 %v6363_v3  ;;  %v6354_v43 = vsub.f32 %v6322_v29, %v6342_v41  ;;  %v6355_v14 = vsub.f32 %v6323_v34, %v6345_v31 }
0x1ba2   :  { %12721 = vpow2.f32 %v6365_v23 }
0x1ba3   :  { %v6367_v19 = vmul.f32 1.442695, %v6354_v43  ;;  %v6369_v17 = vmul.f32 1.442695, %v6355_v14 }
0x1ba4   :  { %v6348_v20 = vpop.xlane.xlu0 %6347  ;;  %v6414_v13 = vpop.permute.xlu1 %6413 }
0x1ba5   :  { %12723 = vpow2.f32 %v6367_v19  ;;  %v6356_v12 = vsub.f32 %v6324_v40, %v6348_v20  ;;  %12019 = vmatpush3.msra.mxu0 %v6414_v13  ;;  %v5693_v20 = vld [vmem:[#allocation6] sm:$0xff]  ;;  %v5694_v13 = vld [vmem:[#allocation6 + $0x8] sm:$0xff] }
0x1ba6   :  { %12725 = vpow2.f32 %v6369_v17  ;;  %12028 = vmatprep.subr.mxu0 %v12933_v6 }
0x1ba7   :  { %v12718_v24 = vpop.eup %12717  ;;  %v6371_v18 = vmul.f32 1.442695, %v6356_v12  ;;  %v12475_v12 = vpack.c.bf16 %v5694_v13, %v5693_v20  ;;  %v7187_v13 = vld [vmem:[%s14807_s14 + $0x18] sm:$0xff] }
0x1ba8   :  { %v6490_v27 = vpop.permute.xlu0 %6489  ;;  %v6379_v16 = vsel %vm325_vm5, %v12718_v24, 0.0  ;;  %v6566_v36 = vpop.permute.xlu1 %6565 }
0x1ba9   :  { %12727 = vpow2.f32 %v6371_v18  ;;  %6380 = vadd.xlane.f32.xlu1 %v6379_v16  ;;  %12024 = vmatpush3.msra.mxu1 %v6490_v27  ;;  %v5696_v18 = vld [vmem:[#allocation6 + $0x18] sm:$0xff] }
0x1baa   :  { %12033 = vmatprep.subr.mxu1 %v12933_v6 }
0x1bab   :  { %v12720_v7 = vpop.eup %12719 }
0x1bac   :  { %v12722_v25 = vpop.eup %12721  ;;  %v6382_v4 = vsel %vm325_vm5, %v12720_v7, 0.0  ;;  %v6642_v37 = vpop.permute.xlu1 %6641 }
0x1bad   :  { %6383 = vadd.xlane.f32.xlu0 %v6382_v4  ;;  %v6385_v28 = vsel %vm325_vm5, %v12722_v25, 0.0  ;;  %v6718_v38 = vpop.permute.xlu0 %6717 }
0x1bae   :  { %6386 = vadd.xlane.f32.xlu1 %v6385_v28 }
0x1baf   :  { %v12724_v11 = vpop.eup %12723 }
0x1bb0   :  { %v14166_v29 = vpop.eup %12725  ;;  %v6388_v30 = vsel %vm325_vm5, %v12724_v11, 0.0  ;;  %v6794_v39 = vpop.permute.xlu1 %6793 }
0x1bb1   :  { %6389 = vadd.xlane.f32.xlu0 %v6388_v30  ;;  %v6391_v32 = vsel %vm325_vm5, %v14166_v29, 0.0 }
0x1bb2   :  { %6392 = vadd.xlane.f32.xlu1 %v6391_v32 }
0x1bb3   :  { %v14171_v33 = vpop.eup %12727 }
0x1bb4   :  { %v6394_v34 = vsel %vm325_vm5, %v14171_v33, 0.0 }
0x1bb5   :  { %6395 = vadd.xlane.f32.xlu0 %v6394_v34 }
0x1bc3   :  { %6945 = vrot.lane.b32.xlu1 %v14122_v26, %s12938_s23 }
0x1bcb   :  { %6869 = vrot.lane.b32.xlu0 %v14100_v60, %s12938_s23 }
0x1bdd   :  { %v6378_v40 = vpop.xlane.xlu0 %6377 }
0x1bde   :  { %12729 = vrcp.f32 %v6378_v40 }
0x1be1   :  { %v6375_v42 = vpop.xlane.xlu1 %6374 }
0x1be2   :  { %12731 = vrcp.f32 %v6375_v42 }
0x1be8   :  { %v12730_v44 = vpop.eup %12729 }
0x1be9   :  { %v6406_v59 = vmul.f32 %v12730_v44, %v14153_v0 }
0x1beb   :  { %12026 = vmatmul.mubr.msk.f32.vlgmr.msra.gmra.mrb[68].mxu1 %vm325_vm5, %v6406_v59 }
0x1bec   :  { %v12732_v49 = vpop.eup %12731  ;;  %12034 = vmatpush3.msra.mxu1 %v6642_v37  ;;  %12035 = vmatprep.mubr.msk.f32.mxu1 %vm12934_vm4, %v12933_v6 }
0x1bed   :  { %v6405_v60 = vmul.f32 %v12732_v49, %v14157_v9  ;;  %12043 = vmatprep.subr.mxu1 %v12933_v6 }
0x1bef   :  { %12021 = vmatmul.mubr.msk.f32.vlgmr.msra.gmra.mrb[72].mxu0 %vm325_vm5, %v6405_v60 }
0x1bf0   :  { %12029 = vmatpush3.msra.mxu0 %v6566_v36  ;;  %12030 = vmatprep.mubr.msk.f32.mxu0 %vm12934_vm4, %v12933_v6 }
0x1bf1   :  { %12038 = vmatprep.subr.mxu0 %v12933_v6 }
0x1c36   :  { %v6381_v26 = vpop.xlane.xlu1 %6380 }
0x1c37   :  { %12733 = vrcp.f32 %v6381_v26 }
0x1c3a   :  { %v6384_v61 = vpop.xlane.xlu0 %6383 }
0x1c3b   :  { %12735 = vrcp.f32 %v6384_v61  ;;  %v6387_v1 = vpop.xlane.xlu1 %6386 }
0x1c3c   :  { %12737 = vrcp.f32 %v6387_v1 }
0x1c3e   :  { %v6390_v10 = vpop.xlane.xlu0 %6389 }
0x1c3f   :  { %12739 = vrcp.f32 %v6390_v10  ;;  %v6393_v52 = vpop.xlane.xlu1 %6392  ;;  %v12830_v10 = vld [vmem:[%s14808_s15] sm:$0xff] }
0x1c40   :  { %12741 = vrcp.f32 %v6393_v52  ;;  %v7054_v52 = vrot.slane %v12830_v10, %v13459_v56 }
0x1c41   :  { %v12734_v0 = vpop.eup %12733 }
0x1c42   :  { %v6396_v21 = vpop.xlane.xlu0 %6395  ;;  %v6407_v9 = vmul.f32 %v12734_v0, %v12718_v24  ;;  %v5695_v24 = vld [vmem:[#allocation6 + $0x10] sm:$0xff] }
0x1c43   :  { %12743 = vrcp.f32 %v6396_v21  ;;  %v6946_v23 = vpop.permute.xlu1 %6945  ;;  %v12479_v27 = vpack.c.bf16 %v5696_v18, %v5695_v24  ;;  %v7188_v24 = vld [vmem:[%s14807_s14 + $0x20] sm:$0xff]  ;;  %v7189_v18 = vld [vmem:[%s14807_s14 + $0x28] sm:$0xff] }
0x1c44   :  { %12031 = vmatmul.mubr.msk.f32.vlgmr.msra.gmra.mrb[74].mxu0 %vm325_vm5, %v6407_v9 }
0x1c45   :  { %v12736_v63 = vpop.eup %12735  ;;  %12039 = vmatpush3.msra.mxu0 %v6718_v38  ;;  %12040 = vmatprep.mubr.msk.f32.mxu0 %vm12934_vm4, %v12933_v6 }
0x1c46   :  { %v12738_v58 = vpop.eup %12737  ;;  %12048 = vmatprep.subr.mxu0 %v12933_v6  ;;  %v6408_v50 = vmul.f32 %v12736_v63, %v12720_v7  ;;  %v6870_v47 = vpop.permute.xlu0 %6869 }
0x1c47   :  { %v6409_v45 = vmul.f32 %v12738_v58, %v12722_v25 }
0x1c48   :  { %12036 = vmatmul.mubr.msk.f32.vlgmr.msra.gmra.mrb[70].mxu1 %vm325_vm5, %v6408_v50 }
0x1c49   :  { %v12740_v51 = vpop.eup %12739  ;;  %12041 = vmatmul.mubr.msk.f32.vlgmr.msra.gmra.mrb[76].mxu0 %vm325_vm5, %v6409_v45  ;;  %12044 = vmatpush3.msra.mxu1 %v6794_v39 }
0x1c4a   :  { %v12742_v8 = vpop.eup %12741  ;;  %12049 = vmatpush3.msra.mxu0 %v6870_v47  ;;  %12045 = vmatprep.mubr.msk.f32.mxu1 %vm12934_vm4, %v12933_v6  ;;  %v6410_v2 = vmul.f32 %v12740_v51, %v12724_v11 }
0x1c4b   :  { %12050 = vmatprep.mubr.msk.f32.mxu0 %vm12934_vm4, %v12933_v6  ;;  %12053 = vmatprep.subr.mxu1 %v12933_v6  ;;  %v6411_v3 = vmul.f32 %v12742_v8, %v14166_v29 }
0x1c4c   :  { %12046 = vmatmul.mubr.msk.f32.vlgmr.msra.gmra.mrb[72].mxu1 %vm325_vm5, %v6410_v2  ;;  %12476 = vmatprep.subr.bf16.mxu0 %v12475_v12 }
0x1c4d   :  { %v12744_v41 = vpop.eup %12743  ;;  %12051 = vmatmul.mubr.msk.f32.vlgmr.msra.gmra.mrb[78].mxu0 %vm325_vm5, %v6411_v3  ;;  %12054 = vmatpush3.msra.mxu1 %v6946_v23  ;;  %v7181_v23 = vld [vmem:[#allocation7 + $0x8] sm:$0xff] }
0x1c4e   :  { %12055 = vmatprep.mubr.msk.f32.mxu1 %vm12934_vm4, %v12933_v6  ;;  %v6412_v31 = vmul.f32 %v12744_v41, %v14171_v33  ;;  %12478 = vmatpush3.bf16.msra.mxu0 %v12475_v12 }
0x1c4f   :  { %12480 = vmatprep.subr.bf16.mxu0 %v12479_v27 }
0x1c50   :  { %12056 = vmatmul.mubr.msk.f32.vlgmr.msra.gmra.mrb[74].mxu1 %vm325_vm5, %v6412_v31  ;;  %v7183_v31 = vld [vmem:[#allocation7 + $0x18] sm:$0xff] }
0x1c52   :  { %12482 = vmatpush3.bf16.msra.mxu0 %v12479_v27  ;;  %v12499_v27 = vpack.c.bf16 %v7189_v18, %v7188_v24  ;;  %v11141_v24 = vld [vmem:[%s14801_s8 + $0x20] sm:$0xff]  ;;  %v11142_v18 = vld [vmem:[%s14801_s8 + $0x28] sm:$0xff] }
0x1cbe   :  { %v6561_v43 = vpop.f32.mrb[68].mxu1 }
0x1cbf   :  { %v12027_v14 = vpop.f32.mrb[69].mxu1 }
0x1cc0   :  { %v7184_v14 = vld [vmem:[%s14807_s14] sm:$0xff] }
0x1cc2   :  { %v6485_v19 = vpop.f32.mrb[72].mxu0 }
0x1cc3   :  { %v12022_v17 = vpop.f32.mrb[73].mxu0 }
0x1cc4   :  { %v7186_v17 = vld [vmem:[%s14807_s14 + $0x10] sm:$0xff] }
0x1cc5   :  { %v12495_v12 = vpack.c.bf16 %v7187_v13, %v7186_v17 }
0x1d17   :  { %v6637_v16 = vpop.f32.mrb[74].mxu0 }
0x1d18   :  { %7023 = vrot.lane.b32.xlu0 %v6637_v16, %s12929_s25  ;;  %v12032_v7 = vpop.f32.mrb[75].mxu0 }
0x1d1b   :  { %v6713_v25 = vpop.f32.mrb[70].mxu1 }
0x1d1c   :  { %v6789_v4 = vpop.f32.mrb[76].mxu0  ;;  %7025 = vrot.lane.b32.xlu1 %v6713_v25, %s12929_s25  ;;  %v12037_v28 = vpop.f32.mrb[71].mxu1 }
0x1d1d   :  { %7031 = vrot.lane.b32.xlu0 %v6789_v4, %s12940_s12  ;;  %v12042_v11 = vpop.f32.mrb[77].mxu0 }
0x1d1f   :  { %v6865_v29 = vpop.f32.mrb[72].mxu1 }
0x1d20   :  { %v6941_v30 = vpop.f32.mrb[78].mxu0  ;;  %7033 = vrot.lane.b32.xlu1 %v6865_v29, %s12940_s12  ;;  %v12047_v32 = vpop.f32.mrb[73].mxu1 }
0x1d21   :  { %7039 = vrot.lane.b32.xlu0 %v6941_v30, %s12941_s26  ;;  %v12052_v33 = vpop.f32.mrb[79].mxu0 }
0x1d23   :  { %v7017_v34 = vpop.f32.mrb[74].mxu1 }
0x1d24   :  { %7041 = vrot.lane.b32.xlu1 %v7017_v34, %s12941_s26  ;;  %v12057_v36 = vpop.f32.mrb[75].mxu1 }
0x1d8a   :  { %v7024_v37 = vpop.permute.xlu0 %7023 }
0x1d8b   :  { %v7045_v40 = vsel %vm325_vm5, %v6485_v19, %v7024_v37  ;;  %v7185_v19 = vld [vmem:[%s14807_s14 + $0x8] sm:$0xff] }
0x1d8c   :  { %v12491_v20 = vpack.c.bf16 %v7185_v19, %v7184_v14 }
0x1d8e   :  { %v7026_v38 = vpop.permute.xlu1 %7025  ;;  %12492 = vmatprep.subr.bf16.mxu0 %v12491_v20 }
0x1d8f   :  { %v7032_v39 = vpop.permute.xlu0 %7031  ;;  %v7046_v60 = vsel %vm325_vm5, %v6561_v43, %v7026_v38 }
0x1d90   :  { %v7047_v44 = vsel %vm132_vm0, %v7045_v40, %v7032_v39  ;;  %v14257_v39 = vld [vmem:[%s14808_s15 + $0x8] sm:$0x1f] }
0x1d92   :  { %v7034_v42 = vpop.permute.xlu1 %7033 }
0x1d93   :  { %v7040_v59 = vpop.permute.xlu0 %7039  ;;  %v7048_v26 = vsel %vm132_vm0, %v7046_v60, %v7034_v42  ;;  %v7171_v42 = vrot.slane %v12830_v10, %v13462_v57  ;;  %v7190_v10 = vld [vmem:[%s14807_s14 + $0x30] sm:$0xff] }
0x1d94   :  { %v7049_v49 = vsel %vm1664_vm6, %v7047_v44, %v7040_v59 }
0x1d95   :  { %12066 = vmatprep.mubr.msk.f32.mxu0 %vm223_vm3, %v7049_v49  ;;  %v7177_v49 = vrot.slane %v14257_v39, %v13156_v22 }
0x1d96   :  { %v7042_v61 = vpop.permute.xlu1 %7041 }
0x1d97   :  { %v7050_v1 = vsel %vm1664_vm6, %v7048_v26, %v7042_v61 }
0x1d98   :  { %12067 = vmatmul.mubr.msk.f32.vlgmr.msra.gmra.mrb[80].mxu0 %vm223_vm3, %v7050_v1 }
0x1d99   :  { %12494 = vmatpush3.bf16.msra.mxu0 %v12491_v20 }
0x1d9a   :  { %12496 = vmatprep.subr.bf16.mxu0 %v12495_v12 }
0x1d9d   :  { %12498 = vmatpush3.bf16.msra.mxu0 %v12495_v12 }
0x1d9e   :  { %12500 = vmatprep.subr.bf16.mxu0 %v12499_v27 }
0x1da1   :  { %12502 = vmatpush3.bf16.msra.mxu0 %v12499_v27  ;;  %v11143_v27 = vld [vmem:[%s14801_s8 + $0x30] sm:$0xff] }
0x1e6b   :  { %v12068_v0 = vpop.f32.mrb[80].mxu0 }
0x1e6c   :  { %v7133_v21 = vadd.f32 %v12068_v0, %v7054_v52  ;;  %v7127_v9 = vpop.f32.mrb[81].mxu0 }
0x1e6d   :  { %v7128_v63 = vadd.f32 %v7127_v9, %v7054_v52  ;;  %v7191_v9 = vld [vmem:[%s14807_s14 + $0x38] sm:$0xff] }
0x1e6e   :  { %v14226_v58 = vadd.f32 %v7133_v21, %v14055_v62  ;;  %v7180_v62 = vld [vmem:[#allocation7] sm:$0xff] }
0x1e6f   :  { %v7136_v50 = vadd.f32 %v7128_v63, %v14053_v46  ;;  %v7182_v46 = vld [vmem:[#allocation7 + $0x10] sm:$0xff]  ;;  %v12483_v41 = vpack.c.bf16 %v7181_v23, %v7180_v62  ;;  %v12503_v63 = vpack.c.bf16 %v7191_v9, %v7190_v10 }
0x1e70   :  { %v7141_v47 = vsel %vm223_vm3, %v14226_v58, 0.0  ;;  %v7147_v2 = vmul.f32 %v14226_v58, %v14226_v58  ;;  %v12487_v43 = vpack.c.bf16 %v7183_v31, %v7182_v46 }
0x1e71   :  { %7142 = vadd.xlane.f32.xlu1 %v7141_v47  ;;  %v7138_v45 = vsel %vm223_vm3, %v7136_v50, 0.0  ;;  %v7146_v51 = vmul.f32 %v7136_v50, %v7136_v50  ;;  %12484 = vmatprep.subr.bf16.mxu1 %v12483_v41 }
0x1e72   :  { %7139 = vadd.xlane.f32.xlu0 %v7138_v45  ;;  %v7151_v3 = vsel %vm223_vm3, %v7147_v2, 0.0  ;;  %12486 = vmatpush3.bf16.msra.mxu1 %v12483_v41 }
0x1e73   :  { %v7148_v8 = vsel %vm223_vm3, %v7146_v51, 0.0  ;;  %12488 = vmatprep.subr.bf16.mxu1 %v12487_v43  ;;  %12504 = vmatprep.subr.bf16.mxu0 %v12503_v63 }
0x1e74   :  { %12506 = vmatpush3.bf16.msra.mxu0 %v12503_v63 }
0x1e75   :  { %12120 = vmatprep.subr.mxu0 %v12933_v6 }
0x1e76   :  { %7149 = vadd.xlane.f32.xlu0 %v7148_v8  ;;  %12490 = vmatpush3.bf16.msra.mxu1 %v12487_v43 }
0x1e7a   :  { %7152 = vadd.xlane.f32.xlu0 %v7151_v3  ;;  %v7282_v3 = vrot.slane %v14257_v39, %v13408_v53 }
0x1efe   :  { %v7143_v25 = vpop.xlane.xlu1 %7142 }
0x1eff   :  { %v7140_v16 = vpop.xlane.xlu0 %7139  ;;  %v7145_v28 = vmul.f32 0.03125, %v7143_v25 }
0x1f00   :  { %v7144_v7 = vmul.f32 0.03125, %v7140_v16  ;;  %v12507_v16 = vpack.c.bf16 %v11142_v18, %v11141_v24 }
0x1f01   :  { %v7157_v33 = vmul.f32 %v7145_v28, %v7145_v28  ;;  %v7161_v60 = vsub.f32 %v14226_v58, %v7145_v28  ;;  %v7195_v58 = vrot.slane %v14257_v39, %v13362_v5 }
0x1f02   :  { %v7156_v11 = vmul.f32 %v7144_v7, %v7144_v7  ;;  %v7160_v40 = vsub.f32 %v7136_v50, %v7144_v7  ;;  %v11144_v7 = vld [vmem:[%s14801_s8 + $0x38] sm:$0xff]  ;;  %12508 = vmatprep.subr.bf16.mxu1 %v12507_v16 }
0x1f03   :  { %v7150_v4 = vpop.xlane.xlu0 %7149  ;;  %v12511_v25 = vpack.c.bf16 %v11144_v7, %v11143_v27 }
0x1f04   :  { %v7154_v29 = vmul.f32 0.03125, %v7150_v4 }
0x1f06   :  { %v7158_v30 = vsub.f32 %v7154_v29, %v7156_v11 }
0x1f07   :  { %v7153_v32 = vpop.xlane.xlu0 %7152 }
0x1f08   :  { %v7162_v34 = vadd.f32 1e-05, %v7158_v30  ;;  %v7155_v36 = vmul.f32 0.03125, %v7153_v32 }
0x1f0a   :  { %12745 = vrsqrt.f32 %v7162_v34  ;;  %v7159_v37 = vsub.f32 %v7155_v36, %v7157_v33 }
0x1f0c   :  { %v7163_v38 = vadd.f32 1e-05, %v7159_v37 }
0x1f0e   :  { %12747 = vrsqrt.f32 %v7163_v38 }
0x1f14   :  { %v12746_v44 = vpop.eup %12745 }
0x1f15   :  { %v7166_v59 = vmul.f32 %v12746_v44, %v7160_v40 }
0x1f17   :  { %v7172_v26 = vmul.f32 %v7171_v42, %v7166_v59 }
0x1f18   :  { %v12748_v61 = vpop.eup %12747 }
0x1f19   :  { %v7167_v1 = vmul.f32 %v12748_v61, %v7161_v60  ;;  %v7178_v52 = vadd.f32 %v7177_v49, %v7172_v26 }
0x1f1b   :  { %v7173_v0 = vmul.f32 %v7171_v42, %v7167_v1  ;;  %12077 = vmatprep.mubr.msk.f32.mxu1 %vm223_vm3, %v7178_v52 }
0x1f1d   :  { %v7179_v21 = vadd.f32 %v7177_v49, %v7173_v0  ;;  %v7399_v49 = vrot.slane %v14257_v39, %v13411_v54  ;;  %v7405_v0 = vrot.slane %v14257_v39, %v13428_v35 }
0x1f1f   :  { %12078 = vmatmul.mubr.msk.f32.vlgmr.msra.gmra.mrb[76].mxu1 %vm223_vm3, %v7179_v21 }
0x1f20   :  { %12510 = vmatpush3.bf16.msra.mxu1 %v12507_v16 }
0x1f21   :  { %12512 = vmatprep.subr.bf16.mxu1 %v12511_v25 }
0x1f24   :  { %12514 = vmatpush3.bf16.msra.mxu1 %v12511_v25 }
0x1f25   :  { %12110 = vmatprep.subr.mxu1 %v12933_v6 }
0x1ff2   :  { %v12079_v50 = vpop.f32.mrb[76].mxu1 }
0x1ff3   :  { %v7274_v47 = vadd.f32 %v12079_v50, %v7195_v58  ;;  %v7268_v45 = vpop.f32.mrb[77].mxu1 }
0x1ff4   :  { %v7269_v51 = vadd.f32 %v7268_v45, %v7195_v58  ;;  %v14314_v58 = vld [vmem:[%s14808_s15 + $0x10] sm:$0xff] }
0x1ff5   :  { %v7278_v2 = vmax.f32 %v7274_v47, 0.0  ;;  %v7419_v39 = vrot.slane %v14314_v58, %v13156_v22 }
0x1ff6   :  { %v7277_v8 = vmax.f32 %v7269_v51, 0.0 }
0x1ff8   :  { %12096 = vmatprep.mubr.msk.f32.mxu0 %vm1900_vm7, %v7277_v8 }
0x1ff9   :  { %12097 = vmatmul.mubr.msk.f32.vlgmr.msra.gmra.mrb[82].mxu0 %vm1900_vm7, %v7278_v2 }
0x1ffa   :  { %12122 = vmatprep.mubr.msk.f32.mxu0 %vm12934_vm4, %v12933_v6 }
0x20cc   :  { %v12098_v62 = vpop.f32.mrb[82].mxu0 }
0x20cd   :  { %v7361_v23 = vadd.f32 %v12098_v62, %v7282_v3  ;;  %v7355_v46 = vpop.f32.mrb[83].mxu0 }
0x20ce   :  { %v7356_v41 = vadd.f32 %v7355_v46, %v7282_v3 }
0x20cf   :  { %v7365_v31 = vadd.f32 %v7361_v23, %v7179_v21 }
0x20d0   :  { %v7364_v43 = vadd.f32 %v7356_v41, %v7178_v52 }
0x20d1   :  { %v7369_v14 = vsel %vm223_vm3, %v7365_v31, 0.0  ;;  %v7375_v19 = vmul.f32 %v7365_v31, %v7365_v31 }
0x20d2   :  { %7370 = vadd.xlane.f32.xlu0 %v7369_v14  ;;  %v7366_v17 = vsel %vm223_vm3, %v7364_v43, 0.0  ;;  %v7374_v20 = vmul.f32 %v7364_v43, %v7364_v43 }
0x20d3   :  { %7367 = vadd.xlane.f32.xlu1 %v7366_v17  ;;  %v7379_v13 = vsel %vm223_vm3, %v7375_v19, 0.0 }
0x20d4   :  { %v7376_v12 = vsel %vm223_vm3, %v7374_v20, 0.0 }
0x20d6   :  { %7380 = vadd.xlane.f32.xlu0 %v7379_v13 }
0x20d7   :  { %7377 = vadd.xlane.f32.xlu1 %v7376_v12 }
0x215f   :  { %v7371_v4 = vpop.xlane.xlu0 %7370 }
0x2160   :  { %v7373_v28 = vmul.f32 0.03125, %v7371_v4  ;;  %v7368_v11 = vpop.xlane.xlu1 %7367 }
0x2161   :  { %v7372_v29 = vmul.f32 0.03125, %v7368_v11 }
0x2162   :  { %v7385_v32 = vmul.f32 %v7373_v28, %v7373_v28  ;;  %v7389_v59 = vsub.f32 %v7365_v31, %v7373_v28 }
0x2163   :  { %v7381_v30 = vpop.xlane.xlu0 %7380  ;;  %v7384_v36 = vmul.f32 %v7372_v29, %v7372_v29  ;;  %v7388_v26 = vsub.f32 %v7364_v43, %v7372_v29 }
0x2164   :  { %v7383_v33 = vmul.f32 0.03125, %v7381_v30  ;;  %v7378_v34 = vpop.xlane.xlu1 %7377 }
0x2165   :  { %v7382_v37 = vmul.f32 0.03125, %v7378_v34 }
0x2166   :  { %v7387_v38 = vsub.f32 %v7383_v33, %v7385_v32 }
0x2167   :  { %v7386_v40 = vsub.f32 %v7382_v37, %v7384_v36 }
0x2168   :  { %v7391_v42 = vadd.f32 1e-05, %v7387_v38 }
0x2169   :  { %v7390_v44 = vadd.f32 1e-05, %v7386_v40 }
0x216a   :  { %12749 = vrsqrt.f32 %v7391_v42 }
0x216b   :  { %12751 = vrsqrt.f32 %v7390_v44 }
0x2174   :  { %v12750_v60 = vpop.eup %12749 }
0x2175   :  { %v12752_v61 = vpop.eup %12751  ;;  %v7395_v1 = vmul.f32 %v12750_v60, %v7389_v59 }
0x2176   :  { %v7394_v52 = vmul.f32 %v12752_v61, %v7388_v26 }
0x2177   :  { %v7401_v21 = vmul.f32 %v7399_v49, %v7395_v1 }
0x2178   :  { %v7400_v10 = vmul.f32 %v7399_v49, %v7394_v52 }
0x2179   :  { %v14303_v63 = vadd.f32 %v7405_v0, %v7401_v21 }
0x217a   :  { %v14301_v9 = vadd.f32 %v7405_v0, %v7400_v10 }
0x217c   :  { %12107 = vmatprep.mubr.msk.f32.mxu1 %vm223_vm3, %v14301_v9 }
0x217d   :  { %12108 = vmatmul.mubr.msk.f32.vlgmr.msra.gmra.mrb[78].mxu1 %vm223_vm3, %v14303_v63 }
0x217e   :  { %12112 = vmatprep.mubr.msk.f32.mxu1 %vm12934_vm4, %v12933_v6 }
0x2250   :  { %v12109_v50 = vpop.f32.mrb[78].mxu1 }
0x2251   :  { %v14318_v47 = vadd.f32 %v12109_v50, %v7419_v39  ;;  %v7492_v45 = vpop.f32.mrb[79].mxu1 }
0x2252   :  { %v14320_v51 = vadd.f32 %v7492_v45, %v7419_v39 }
0x2253   :  { %7510 = vrot.lane.b32.xlu0 %v14318_v47, %s12936_s30 }
0x2254   :  { %7508 = vrot.lane.b32.xlu1 %v14320_v51, %s12936_s30 }
0x2257   :  { %7516 = vrot.lane.b32.xlu0 %v14320_v51, %s12937_s11 }
0x2258   :  { %7512 = vrot.lane.b32.xlu1 %v14320_v51, %s12935_s10 }
0x225b   :  { %7520 = vrot.lane.b32.xlu0 %v14320_v51, %s12938_s23 }
0x225c   :  { %7514 = vrot.lane.b32.xlu1 %v14318_v47, %s12935_s10 }
0x2260   :  { %7518 = vrot.lane.b32.xlu1 %v14318_v47, %s12937_s11 }
0x2264   :  { %7596 = vrot.lane.b32.xlu1 %v14318_v47, %s12938_s23 }
0x22c5   :  { %v14338_v8 = vpop.permute.xlu0 %7510 }
0x22c6   :  { %7748 = vrot.lane.b32.xlu1 %v14338_v8, %s12938_s23  ;;  %v14342_v2 = vpop.permute.xlu1 %7508 }
0x22c7   :  { %7672 = vrot.lane.b32.xlu0 %v14342_v2, %s12938_s23 }
0x22c9   :  { %v14346_v3 = vpop.permute.xlu0 %7516 }
0x22ca   :  { %v14348_v62 = vpop.permute.xlu1 %7512 }
0x22cb   :  { %7824 = vrot.lane.b32.xlu0 %v14348_v62, %s12938_s23 }
0x22cd   :  { %v7521_v23 = vpop.permute.xlu0 %7520 }
0x22ce   :  { %12111 = vmatpush3.xpose.msk.msra.mxu1 %vm325_vm5, %v7521_v23  ;;  %v14353_v46 = vpop.permute.xlu1 %7514 }
0x22cf   :  { %7976 = vrot.lane.b32.xlu0 %v14346_v3, %s12938_s23  ;;  %7900 = vrot.lane.b32.xlu1 %v14353_v46, %s12938_s23 }
0x22d0   :  { %12115 = vmatprep.subr.mxu1 %v12933_v6 }
0x22d1   :  { %12113 = vmatmul.mubr.msk.f32.vlgmr.msra.gmra.mrb[80].mxu1 %vm325_vm5, %v14320_v51 }
0x22d2   :  { %v14362_v41 = vpop.permute.xlu1 %7518  ;;  %12117 = vmatprep.mubr.msk.f32.mxu1 %vm12934_vm4, %v12933_v6 }
0x22d3   :  { %8052 = vrot.lane.b32.xlu1 %v14362_v41, %s12938_s23 }
0x22d6   :  { %v7597_v31 = vpop.permute.xlu1 %7596 }
0x22d7   :  { %12116 = vmatpush3.xpose.msk.msra.mxu1 %vm325_vm5, %v7597_v31 }
0x22d8   :  { %12125 = vmatprep.subr.mxu1 %v12933_v6 }
0x22da   :  { %12118 = vmatmul.mubr.msk.f32.vlgmr.msra.gmra.mrb[82].mxu1 %vm325_vm5, %v14318_v47 }
0x22db   :  { %12127 = vmatprep.mubr.msk.f32.mxu1 %vm12934_vm4, %v12933_v6 }
0x2338   :  { %v7749_v43 = vpop.permute.xlu1 %7748 }
0x2339   :  { %v7673_v14 = vpop.permute.xlu0 %7672  ;;  %12126 = vmatpush3.xpose.msk.msra.mxu1 %vm325_vm5, %v7749_v43 }
0x233a   :  { %12121 = vmatpush3.xpose.msk.msra.mxu0 %vm325_vm5, %v7673_v14  ;;  %12135 = vmatprep.subr.mxu1 %v12933_v6 }
0x233b   :  { %12130 = vmatprep.subr.mxu0 %v12933_v6 }
0x233c   :  { %12128 = vmatmul.mubr.msk.f32.vlgmr.msra.gmra.mrb[84].mxu1 %vm325_vm5, %v14338_v8 }
0x233d   :  { %12123 = vmatmul.mubr.msk.f32.vlgmr.msra.gmra.mrb[84].mxu0 %vm325_vm5, %v14342_v2  ;;  %v7825_v19 = vpop.permute.xlu0 %7824  ;;  %12137 = vmatprep.mubr.msk.f32.mxu1 %vm12934_vm4, %v12933_v6 }
0x233e   :  { %12131 = vmatpush3.xpose.msk.msra.mxu0 %vm325_vm5, %v7825_v19  ;;  %12132 = vmatprep.mubr.msk.f32.mxu0 %vm12934_vm4, %v12933_v6 }
0x233f   :  { %12140 = vmatprep.subr.mxu0 %v12933_v6 }
0x2341   :  { %12133 = vmatmul.mubr.msk.f32.vlgmr.msra.gmra.mrb[86].mxu0 %vm325_vm5, %v14348_v62  ;;  %v7977_v17 = vpop.permute.xlu0 %7976  ;;  %v7901_v20 = vpop.permute.xlu1 %7900 }
0x2342   :  { %12136 = vmatpush3.xpose.msk.msra.mxu1 %vm325_vm5, %v7901_v20  ;;  %12141 = vmatpush3.xpose.msk.msra.mxu0 %vm325_vm5, %v7977_v17 }
0x2343   :  { %12142 = vmatprep.mubr.msk.f32.mxu0 %vm12934_vm4, %v12933_v6  ;;  %12145 = vmatprep.subr.mxu1 %v12933_v6 }
0x2344   :  { %12150 = vmatprep.subr.mxu0 %v12933_v6 }
0x2345   :  { %12138 = vmatmul.mubr.msk.f32.vlgmr.msra.gmra.mrb[86].mxu1 %vm325_vm5, %v14353_v46  ;;  %12143 = vmatmul.mubr.msk.f32.vlgmr.msra.gmra.mrb[88].mxu0 %vm325_vm5, %v14346_v3  ;;  %v8053_v13 = vpop.permute.xlu1 %8052 }
0x2346   :  { %12146 = vmatpush3.xpose.msk.msra.mxu1 %vm325_vm5, %v8053_v13  ;;  %12147 = vmatprep.mubr.msk.f32.mxu1 %vm12934_vm4, %v12933_v6 }
0x2347   :  { %12155 = vmatprep.subr.mxu1 %v12933_v6  ;;  %12152 = vmatprep.mubr.msk.f32.mxu0 %vm12934_vm4, %v12933_v6 }
0x2349   :  { %12148 = vmatmul.mubr.msk.f32.vlgmr.msra.gmra.mrb[88].mxu1 %vm325_vm5, %v14362_v41 }
0x234a   :  { %12157 = vmatprep.mubr.msk.f32.mxu1 %vm12934_vm4, %v12933_v6 }
0x23a4   :  { %v7592_v12 = vpop.f32.mrb[80].mxu1 }
0x23a5   :  { %v8128_v24 = vmul.f32 0.35355338, %v7592_v12  ;;  %v12114_v18 = vpop.f32.mrb[81].mxu1 }
0x23a7   :  { %v8136_v27 = vsel %vm325_vm5, %v8128_v24, -inf }
0x23a8   :  { %8137 = vmax.xlane.f32.xlu0 %v8136_v27 }
0x23ad   :  { %v7668_v16 = vpop.f32.mrb[82].mxu1 }
0x23ae   :  { %v8129_v7 = vmul.f32 0.35355338, %v7668_v16  ;;  %v12119_v25 = vpop.f32.mrb[83].mxu1 }
0x23b0   :  { %v8139_v4 = vsel %vm325_vm5, %v8129_v7, -inf }
0x23b1   :  { %8140 = vmax.xlane.f32.xlu1 %v8139_v4 }
0x240f   :  { %v7820_v28 = vpop.f32.mrb[84].mxu1 }
0x2410   :  { %v7744_v11 = vpop.f32.mrb[84].mxu0  ;;  %v12129_v29 = vpop.f32.mrb[85].mxu1  ;;  %v8131_v33 = vmul.f32 0.35355338, %v7820_v28 }
0x2411   :  { %v8130_v30 = vmul.f32 0.35355338, %v7744_v11  ;;  %v12124_v32 = vpop.f32.mrb[85].mxu0 }
0x2412   :  { %v8145_v42 = vsel %vm325_vm5, %v8131_v33, -inf }
0x2413   :  { %v8142_v34 = vsel %vm325_vm5, %v8130_v30, -inf }
0x2414   :  { %8143 = vmax.xlane.f32.xlu0 %v8142_v34  ;;  %v7896_v36 = vpop.f32.mrb[86].mxu0 }
0x2415   :  { %v8132_v37 = vmul.f32 0.35355338, %v7896_v36  ;;  %v12134_v38 = vpop.f32.mrb[87].mxu0 }
0x2417   :  { %v8148_v40 = vsel %vm325_vm5, %v8132_v37, -inf }
0x2418   :  { %v8048_v44 = vpop.f32.mrb[88].mxu0  ;;  %8149 = vmax.xlane.f32.xlu1 %v8148_v40  ;;  %8146 = vmax.xlane.f32.xlu0 %v8145_v42  ;;  %v7972_v59 = vpop.f32.mrb[86].mxu1 }
0x2419   :  { %v8134_v49 = vmul.f32 0.35355338, %v8048_v44  ;;  %v8133_v60 = vmul.f32 0.35355338, %v7972_v59  ;;  %v12139_v26 = vpop.f32.mrb[87].mxu1  ;;  %v12144_v61 = vpop.f32.mrb[89].mxu0 }
0x241b   :  { %v8154_v1 = vsel %vm325_vm5, %v8134_v49, -inf  ;;  %v8151_v52 = vsel %vm325_vm5, %v8133_v60, -inf }
0x241c   :  { %8155 = vmax.xlane.f32.xlu1 %v8154_v1  ;;  %8152 = vmax.xlane.f32.xlu0 %v8151_v52  ;;  %v8124_v0 = vpop.f32.mrb[88].mxu1 }
0x241d   :  { %v8135_v21 = vmul.f32 0.35355338, %v8124_v0  ;;  %v12149_v10 = vpop.f32.mrb[89].mxu1 }
0x241f   :  { %v8157_v39 = vsel %vm325_vm5, %v8135_v21, -inf }
0x2420   :  { %8158 = vmax.xlane.f32.xlu0 %v8157_v39 }
0x242d   :  { %8224 = vrot.lane.b32.xlu1 %v14320_v51, %s12939_s13 }
0x2431   :  { %8376 = vrot.lane.b32.xlu1 %v14342_v2, %s12939_s13 }
0x2435   :  { %8452 = vrot.lane.b32.xlu1 %v14338_v8, %s12939_s13  ;;  %v8138_v23 = vpop.xlane.xlu0 %8137 }
0x2436   :  { %8300 = vrot.lane.b32.xlu0 %v14318_v47, %s12939_s13  ;;  %v8160_v31 = vsub.f32 %v8128_v24, %v8138_v23 }
0x2438   :  { %v8168_v43 = vmul.f32 1.442695, %v8160_v31 }
0x2439   :  { %8604 = vrot.lane.b32.xlu1 %v14353_v46, %s12939_s13 }
0x243a   :  { %8528 = vrot.lane.b32.xlu0 %v14348_v62, %s12939_s13 }
0x243e   :  { %v8141_v50 = vpop.xlane.xlu1 %8140 }
0x243f   :  { %v8161_v45 = vsub.f32 %v8129_v7, %v8141_v50 }
0x2441   :  { %v8170_v51 = vmul.f32 1.442695, %v8161_v45 }
0x2443   :  { %12753 = vpow2.f32 %v8170_v51 }
0x2444   :  { %12755 = vpow2.f32 %v8168_v43 }
0x244d   :  { %v14430_v2 = vpop.eup %12753 }
0x244e   :  { %v8187_v8 = vsel %vm325_vm5, %v14430_v2, 0.0  ;;  %v14434_v47 = vpop.eup %12755 }
0x244f   :  { %v8184_v46 = vsel %vm325_vm5, %v14434_v47, 0.0 }
0x2459   :  { %8188 = vadd.xlane.f32.xlu0 %v8187_v8 }
0x245d   :  { %8185 = vadd.xlane.f32.xlu1 %v8184_v46 }
0x24a1   :  { %v8144_v62 = vpop.xlane.xlu0 %8143 }
0x24a2   :  { %v8162_v14 = vsub.f32 %v8130_v30, %v8144_v62 }
0x24a4   :  { %v8172_v19 = vmul.f32 1.442695, %v8162_v14 }
0x24a5   :  { %v8147_v17 = vpop.xlane.xlu0 %8146  ;;  %v8150_v20 = vpop.xlane.xlu1 %8149 }
0x24a6   :  { %12757 = vpow2.f32 %v8172_v19  ;;  %v8163_v13 = vsub.f32 %v8131_v33, %v8147_v17  ;;  %v8164_v12 = vsub.f32 %v8132_v37, %v8150_v20 }
0x24a8   :  { %v8174_v24 = vmul.f32 1.442695, %v8163_v13  ;;  %v8176_v18 = vmul.f32 1.442695, %v8164_v12 }
0x24a9   :  { %v8153_v27 = vpop.xlane.xlu0 %8152  ;;  %v8156_v16 = vpop.xlane.xlu1 %8155 }
0x24aa   :  { %12759 = vpow2.f32 %v8174_v24  ;;  %v8165_v7 = vsub.f32 %v8133_v60, %v8153_v27  ;;  %v8166_v25 = vsub.f32 %v8134_v49, %v8156_v16 }
0x24ab   :  { %12761 = vpow2.f32 %v8176_v18 }
0x24ac   :  { %v8178_v4 = vmul.f32 1.442695, %v8165_v7  ;;  %v8180_v28 = vmul.f32 1.442695, %v8166_v25 }
0x24ad   :  { %v8159_v11 = vpop.xlane.xlu0 %8158  ;;  %v8225_v29 = vpop.permute.xlu1 %8224 }
0x24ae   :  { %12763 = vpow2.f32 %v8178_v4  ;;  %v8167_v30 = vsub.f32 %v8135_v21, %v8159_v11  ;;  %12151 = vmatpush3.msra.mxu0 %v8225_v29  ;;  %v11147_v29 = vld [vmem:[%s14802_s9 + $0x20] sm:$0xff] }
0x24af   :  { %12765 = vpow2.f32 %v8180_v28  ;;  %12160 = vmatprep.subr.mxu0 %v12933_v6 }
0x24b0   :  { %v12758_v32 = vpop.eup %12757  ;;  %v8182_v33 = vmul.f32 1.442695, %v8167_v30  ;;  %v11148_v30 = vld [vmem:[%s14802_s9 + $0x28] sm:$0xff] }
0x24b1   :  { %v8301_v34 = vpop.permute.xlu0 %8300  ;;  %v8190_v36 = vsel %vm325_vm5, %v12758_v32, 0.0  ;;  %v8377_v1 = vpop.permute.xlu1 %8376 }
0x24b2   :  { %12767 = vpow2.f32 %v8182_v33  ;;  %8191 = vadd.xlane.f32.xlu1 %v8190_v36  ;;  %12156 = vmatpush3.msra.mxu1 %v8301_v34  ;;  %v11149_v33 = vld [vmem:[%s14802_s9 + $0x30] sm:$0xff]  ;;  %v11150_v34 = vld [vmem:[%s14802_s9 + $0x38] sm:$0xff] }
0x24b3   :  { %12165 = vmatprep.subr.mxu1 %v12933_v6  ;;  %v12519_v36 = vpack.c.bf16 %v11150_v34, %v11149_v33  ;;  %v8995_v33 = vld [vmem:[#allocation2 + $0x38] sm:$0xff] }
0x24b4   :  { %v12760_v37 = vpop.eup %12759 }
0x24b5   :  { %v12762_v38 = vpop.eup %12761  ;;  %v8193_v40 = vsel %vm325_vm5, %v12760_v37, 0.0  ;;  %v8453_v52 = vpop.permute.xlu1 %8452 }
0x24b6   :  { %8194 = vadd.xlane.f32.xlu0 %v8193_v40  ;;  %v8196_v42 = vsel %vm325_vm5, %v12762_v38, 0.0  ;;  %v8529_v0 = vpop.permute.xlu0 %8528 }
0x24b7   :  { %8197 = vadd.xlane.f32.xlu1 %v8196_v42 }
0x24b8   :  { %v12764_v44 = vpop.eup %12763 }
0x24b9   :  { %v12766_v59 = vpop.eup %12765  ;;  %v8199_v49 = vsel %vm325_vm5, %v12764_v44, 0.0  ;;  %v8605_v21 = vpop.permute.xlu1 %8604 }
0x24ba   :  { %8200 = vadd.xlane.f32.xlu0 %v8199_v49  ;;  %v8202_v60 = vsel %vm325_vm5, %v12766_v59, 0.0 }
0x24bb   :  { %8203 = vadd.xlane.f32.xlu1 %v8202_v60 }
0x24bc   :  { %v14445_v26 = vpop.eup %12767 }
0x24bd   :  { %v8205_v61 = vsel %vm325_vm5, %v14445_v26, 0.0 }
0x24be   :  { %8206 = vadd.xlane.f32.xlu0 %v8205_v61 }
0x24cc   :  { %8756 = vrot.lane.b32.xlu1 %v14362_v41, %s12939_s13 }
0x24d4   :  { %8680 = vrot.lane.b32.xlu0 %v14346_v3, %s12939_s13 }
0x24e6   :  { %v8189_v10 = vpop.xlane.xlu0 %8188 }
0x24e7   :  { %12769 = vrcp.f32 %v8189_v10 }
0x24ea   :  { %v8186_v39 = vpop.xlane.xlu1 %8185 }
0x24eb   :  { %12771 = vrcp.f32 %v8186_v39 }
0x24f1   :  { %v12770_v50 = vpop.eup %12769 }
0x24f2   :  { %v8217_v45 = vmul.f32 %v12770_v50, %v14430_v2 }
0x24f4   :  { %12158 = vmatmul.mubr.msk.f32.vlgmr.msra.gmra.mrb[90].mxu1 %vm325_vm5, %v8217_v45 }
0x24f5   :  { %v12772_v23 = vpop.eup %12771  ;;  %12166 = vmatpush3.msra.mxu1 %v8453_v52  ;;  %12167 = vmatprep.mubr.msk.f32.mxu1 %vm12934_vm4, %v12933_v6 }
0x24f6   :  { %v8216_v3 = vmul.f32 %v12772_v23, %v14434_v47  ;;  %12175 = vmatprep.subr.mxu1 %v12933_v6 }
0x24f8   :  { %12153 = vmatmul.mubr.msk.f32.vlgmr.msra.gmra.mrb[90].mxu0 %vm325_vm5, %v8216_v3 }
0x24f9   :  { %12161 = vmatpush3.msra.mxu0 %v8377_v1  ;;  %12162 = vmatprep.mubr.msk.f32.mxu0 %vm12934_vm4, %v12933_v6 }
0x24fa   :  { %12170 = vmatprep.subr.mxu0 %v12933_v6 }
0x253f   :  { %v8192_v41 = vpop.xlane.xlu1 %8191 }
0x2540   :  { %12773 = vrcp.f32 %v8192_v41 }
0x2543   :  { %v8195_v31 = vpop.xlane.xlu0 %8194 }
0x2544   :  { %12775 = vrcp.f32 %v8195_v31  ;;  %v8198_v51 = vpop.xlane.xlu1 %8197 }
0x2545   :  { %12777 = vrcp.f32 %v8198_v51  ;;  %v9084_v51 = vld [vmem:[#allocation4 + $0x30] sm:$0xff] }
0x2547   :  { %v8201_v43 = vpop.xlane.xlu0 %8200 }
0x2548   :  { %12779 = vrcp.f32 %v8201_v43  ;;  %v8204_v2 = vpop.xlane.xlu1 %8203  ;;  %v9085_v43 = vld [vmem:[#allocation4 + $0x38] sm:$0xff] }
0x2549   :  { %12781 = vrcp.f32 %v8204_v2 }
0x254a   :  { %v12774_v8 = vpop.eup %12773 }
0x254b   :  { %v8218_v47 = vmul.f32 %v12774_v8, %v12758_v32  ;;  %v8207_v46 = vpop.xlane.xlu0 %8206  ;;  %v12515_v32 = vpack.c.bf16 %v11148_v30, %v11147_v29  ;;  %v8992_v29 = vld [vmem:[#allocation2 + $0x20] sm:$0xff]  ;;  %v8993_v30 = vld [vmem:[#allocation2 + $0x28] sm:$0xff] }
0x254c   :  { %12783 = vrcp.f32 %v8207_v46  ;;  %v8757_v27 = vpop.permute.xlu1 %8756 }
0x254d   :  { %12163 = vmatmul.mubr.msk.f32.vlgmr.msra.gmra.mrb[92].mxu0 %vm325_vm5, %v8218_v47 }
0x254e   :  { %v12776_v62 = vpop.eup %12775  ;;  %12171 = vmatpush3.msra.mxu0 %v8529_v0  ;;  %12172 = vmatprep.mubr.msk.f32.mxu0 %vm12934_vm4, %v12933_v6 }
0x254f   :  { %v12778_v14 = vpop.eup %12777  ;;  %v8219_v19 = vmul.f32 %v12776_v62, %v12760_v37  ;;  %12180 = vmatprep.subr.mxu0 %v12933_v6  ;;  %v8681_v20 = vpop.permute.xlu0 %8680  ;;  %v9082_v37 = vld [vmem:[#allocation4 + $0x20] sm:$0xff]  ;;  %v12535_v62 = vpack.c.bf16 %v9085_v43, %v9084_v51 }
0x2550   :  { %v8220_v17 = vmul.f32 %v12778_v14, %v12762_v38  ;;  %v9083_v38 = vld [vmem:[#allocation4 + $0x28] sm:$0xff] }
0x2551   :  { %12168 = vmatmul.mubr.msk.f32.vlgmr.msra.gmra.mrb[92].mxu1 %vm325_vm5, %v8219_v19  ;;  %v12531_v42 = vpack.c.bf16 %v9083_v38, %v9082_v37  ;;  %v8865_v19 = vrot.slane %v14314_v58, %v13362_v5 }
0x2552   :  { %v12780_v13 = vpop.eup %12779  ;;  %12173 = vmatmul.mubr.msk.f32.vlgmr.msra.gmra.mrb[94].mxu0 %vm325_vm5, %v8220_v17  ;;  %12176 = vmatpush3.msra.mxu1 %v8605_v21 }
0x2553   :  { %v12782_v12 = vpop.eup %12781  ;;  %v8221_v24 = vmul.f32 %v12780_v13, %v12764_v44  ;;  %12181 = vmatpush3.msra.mxu0 %v8681_v20  ;;  %12177 = vmatprep.mubr.msk.f32.mxu1 %vm12934_vm4, %v12933_v6 }
0x2554   :  { %v8222_v18 = vmul.f32 %v12782_v12, %v12766_v59  ;;  %12182 = vmatprep.mubr.msk.f32.mxu0 %vm12934_vm4, %v12933_v6  ;;  %12185 = vmatprep.subr.mxu1 %v12933_v6 }
0x2555   :  { %12178 = vmatmul.mubr.msk.f32.vlgmr.msra.gmra.mrb[94].mxu1 %vm325_vm5, %v8221_v24  ;;  %12516 = vmatprep.subr.bf16.mxu0 %v12515_v32 }
0x2556   :  { %v12784_v16 = vpop.eup %12783  ;;  %12183 = vmatmul.mubr.msk.f32.vlgmr.msra.gmra.mrb[96].mxu0 %vm325_vm5, %v8222_v18  ;;  %12186 = vmatpush3.msra.mxu1 %v8757_v27 }
0x2557   :  { %v8223_v7 = vmul.f32 %v12784_v16, %v14445_v26  ;;  %12187 = vmatprep.mubr.msk.f32.mxu1 %vm12934_vm4, %v12933_v6  ;;  %12518 = vmatpush3.bf16.msra.mxu0 %v12515_v32  ;;  %v12523_v32 = vpack.c.bf16 %v8993_v30, %v8992_v29 }
0x2558   :  { %12520 = vmatprep.subr.bf16.mxu0 %v12519_v36 }
0x2559   :  { %12188 = vmatmul.mubr.msk.f32.vlgmr.msra.gmra.mrb[96].mxu1 %vm325_vm5, %v8223_v7  ;;  %12524 = vmatprep.subr.bf16.mxu1 %v12523_v32 }
0x255a   :  { %12526 = vmatpush3.bf16.msra.mxu1 %v12523_v32 }
0x255b   :  { %12522 = vmatpush3.bf16.msra.mxu0 %v12519_v36 }
0x255c   :  { %12532 = vmatprep.subr.bf16.mxu0 %v12531_v42 }
0x25c7   :  { %v8372_v25 = vpop.f32.mrb[90].mxu1 }
0x25c8   :  { %v12159_v4 = vpop.f32.mrb[91].mxu1 }
0x25cb   :  { %v8296_v28 = vpop.f32.mrb[90].mxu0 }
0x25cc   :  { %v12154_v11 = vpop.f32.mrb[91].mxu0 }
0x2620   :  { %v8448_v40 = vpop.f32.mrb[92].mxu0 }
0x2621   :  { %8834 = vrot.lane.b32.xlu0 %v8448_v40, %s12929_s25  ;;  %v12164_v44 = vpop.f32.mrb[93].mxu0 }
0x2624   :  { %v8524_v59 = vpop.f32.mrb[92].mxu1 }
0x2625   :  { %v8600_v49 = vpop.f32.mrb[94].mxu0  ;;  %8836 = vrot.lane.b32.xlu1 %v8524_v59, %s12929_s25  ;;  %v12169_v60 = vpop.f32.mrb[93].mxu1 }
0x2626   :  { %8842 = vrot.lane.b32.xlu0 %v8600_v49, %s12940_s12  ;;  %v12174_v26 = vpop.f32.mrb[95].mxu0 }
0x2628   :  { %v8676_v61 = vpop.f32.mrb[94].mxu1 }
0x2629   :  { %v8752_v1 = vpop.f32.mrb[96].mxu0  ;;  %8844 = vrot.lane.b32.xlu1 %v8676_v61, %s12940_s12  ;;  %v12179_v52 = vpop.f32.mrb[95].mxu1 }
0x262a   :  { %8850 = vrot.lane.b32.xlu0 %v8752_v1, %s12941_s26  ;;  %v12184_v0 = vpop.f32.mrb[97].mxu0 }
0x262c   :  { %v8828_v21 = vpop.f32.mrb[96].mxu1 }
0x262d   :  { %8852 = vrot.lane.b32.xlu1 %v8828_v21, %s12941_s26  ;;  %v12189_v10 = vpop.f32.mrb[97].mxu1 }
0x2693   :  { %v8835_v39 = vpop.permute.xlu0 %8834 }
0x2694   :  { %v8856_v23 = vsel %vm325_vm5, %v8296_v28, %v8835_v39 }
0x2697   :  { %v8837_v50 = vpop.permute.xlu1 %8836 }
0x2698   :  { %v8843_v45 = vpop.permute.xlu0 %8842  ;;  %v8857_v8 = vsel %vm325_vm5, %v8372_v25, %v8837_v50  ;;  %v8982_v50 = vrot.slane %v14314_v58, %v13408_v53 }
0x2699   :  { %v8858_v41 = vsel %vm132_vm0, %v8856_v23, %v8843_v45 }
0x269b   :  { %v8845_v3 = vpop.permute.xlu1 %8844 }
0x269c   :  { %v8851_v31 = vpop.permute.xlu0 %8850  ;;  %v8859_v47 = vsel %vm132_vm0, %v8857_v8, %v8845_v3  ;;  %v8988_v3 = vrot.slane %v14314_v58, %v13411_v54 }
0x269d   :  { %v8860_v2 = vsel %vm1664_vm6, %v8858_v41, %v8851_v31 }
0x269e   :  { %12198 = vmatprep.mubr.msk.f32.mxu0 %vm223_vm3, %v8860_v2 }
0x269f   :  { %v8853_v46 = vpop.permute.xlu1 %8852 }
0x26a0   :  { %v8861_v14 = vsel %vm1664_vm6, %v8859_v47, %v8853_v46  ;;  %v8999_v46 = vrot.slane %v14314_v58, %v13428_v35 }
0x26a1   :  { %12199 = vmatmul.mubr.msk.f32.vlgmr.msra.gmra.mrb[98].mxu0 %vm223_vm3, %v8861_v14 }
0x26a2   :  { %12534 = vmatpush3.bf16.msra.mxu0 %v12531_v42  ;;  %12220 = vmatprep.mubr.msk.f32.mxu0 %vm223_vm3, %v14014_v48 }
0x26a3   :  { %12536 = vmatprep.subr.bf16.mxu0 %v12535_v62 }
0x26a6   :  { %12538 = vmatpush3.bf16.msra.mxu0 %v12535_v62 }
0x26a7   :  { %12233 = vmatprep.subr.mxu0 %v12933_v6 }
0x26a9   :  { %12221 = vmatmul.mubr.msk.f32.vlgmr.msra.gmra.mrb[100].mxu0 %vm223_vm3, %v14018_v55 }
0x26aa   :  { %12235 = vmatprep.mubr.msk.f32.mxu0 %vm12934_vm4, %v12933_v6 }
0x2774   :  { %v12200_v17 = vpop.f32.mrb[98].mxu0 }
0x2775   :  { %v8944_v20 = vadd.f32 %v12200_v17, %v8865_v19  ;;  %v8938_v13 = vpop.f32.mrb[99].mxu0 }
0x2776   :  { %v8939_v12 = vadd.f32 %v8938_v13, %v8865_v19 }
0x2777   :  { %v8948_v24 = vadd.f32 %v8944_v20, %v14303_v63  ;;  %v9089_v63 = vrot.slane %v14314_v58, %v13437_v15  ;;  %v8994_v15 = vld [vmem:[#allocation2 + $0x30] sm:$0xff] }
0x2778   :  { %v8947_v48 = vadd.f32 %v8939_v12, %v14301_v9  ;;  %v12527_v34 = vpack.c.bf16 %v8995_v33, %v8994_v15 }
0x2779   :  { %v8952_v18 = vsel %vm223_vm3, %v8948_v24, 0.0  ;;  %v8958_v4 = vmul.f32 %v8948_v24, %v8948_v24 }
0x277a   :  { %8953 = vadd.xlane.f32.xlu1 %v8952_v18  ;;  %v8949_v27 = vsel %vm223_vm3, %v8947_v48, 0.0  ;;  %v8957_v55 = vmul.f32 %v8947_v48, %v8947_v48  ;;  %12528 = vmatprep.subr.bf16.mxu1 %v12527_v34 }
0x277b   :  { %8950 = vadd.xlane.f32.xlu0 %v8949_v27  ;;  %v8962_v28 = vsel %vm223_vm3, %v8958_v4, 0.0  ;;  %12530 = vmatpush3.bf16.msra.mxu1 %v12527_v34 }
0x277c   :  { %v12222_v16 = vpop.f32.mrb[100].mxu0  ;;  %v8959_v25 = vsel %vm223_vm3, %v8957_v55, 0.0  ;;  %12223 = vmatprep.subr.mxu1 %v12933_v6 }
0x277d   :  { %v9156_v7 = vpop.f32.mrb[101].mxu0  ;;  %v14523_v9 = vadd.f32 %v12222_v16, %v9089_v63 }
0x277e   :  { %v14527_v11 = vadd.f32 %v9156_v7, %v9089_v63 }
0x277f   :  { %8960 = vadd.xlane.f32.xlu0 %v8959_v25 }
0x2783   :  { %8963 = vadd.xlane.f32.xlu0 %v8962_v28 }
0x278b   :  { %9192 = vrot.lane.b32.xlu1 %v14523_v9, %s12935_s10 }
0x278f   :  { %9186 = vrot.lane.b32.xlu1 %v14527_v11, %s12936_s30 }
0x2799   :  { %9188 = vrot.lane.b32.xlu0 %v14523_v9, %s12936_s30 }
0x279d   :  { %9190 = vrot.lane.b32.xlu0 %v14527_v11, %s12935_s10 }
0x27a1   :  { %9194 = vrot.lane.b32.xlu0 %v14527_v11, %s12937_s11 }
0x2807   :  { %v8954_v36 = vpop.xlane.xlu1 %8953 }
0x2808   :  { %v8951_v37 = vpop.xlane.xlu0 %8950  ;;  %v8956_v44 = vmul.f32 0.03125, %v8954_v36 }
0x2809   :  { %v8955_v38 = vmul.f32 0.03125, %v8951_v37 }
0x280a   :  { %v8968_v1 = vmul.f32 %v8956_v44, %v8956_v44  ;;  %v8972_v41 = vsub.f32 %v8948_v24, %v8956_v44 }
0x280b   :  { %v14538_v40 = vpop.permute.xlu1 %9192  ;;  %v8967_v59 = vmul.f32 %v8955_v38, %v8955_v38  ;;  %v8971_v39 = vsub.f32 %v8947_v48, %v8955_v38 }
0x280c   :  { %v8961_v42 = vpop.xlane.xlu0 %8960 }
0x280d   :  { %v8965_v49 = vmul.f32 0.03125, %v8961_v42 }
0x280f   :  { %v8969_v60 = vsub.f32 %v8965_v49, %v8967_v59  ;;  %v14540_v26 = vpop.permute.xlu1 %9186 }
0x2810   :  { %12234 = vmatpush3.xpose.msk.msra.mxu0 %vm325_vm5, %v14540_v26  ;;  %v8964_v61 = vpop.xlane.xlu0 %8963 }
0x2811   :  { %v8973_v52 = vadd.f32 1e-05, %v8969_v60  ;;  %v8966_v0 = vmul.f32 0.03125, %v8964_v61  ;;  %12243 = vmatprep.subr.mxu0 %v12933_v6 }
0x2813   :  { %12785 = vrsqrt.f32 %v8973_v52  ;;  %v8970_v21 = vsub.f32 %v8966_v0, %v8968_v1 }
0x2814   :  { %v14573_v58 = vpop.permute.xlu0 %9188 }
0x2815   :  { %v8974_v10 = vadd.f32 1e-05, %v8970_v21 }
0x2817   :  { %12787 = vrsqrt.f32 %v8974_v10 }
0x2818   :  { %v14586_v20 = vpop.permute.xlu0 %9190 }
0x281c   :  { %v14589_v12 = vpop.permute.xlu0 %9194 }
0x281d   :  { %v12786_v45 = vpop.eup %12785 }
0x281e   :  { %v8977_v23 = vmul.f32 %v12786_v45, %v8971_v39 }
0x2820   :  { %v8983_v31 = vmul.f32 %v8982_v50, %v8977_v23 }
0x2821   :  { %v12788_v51 = vpop.eup %12787 }
0x2822   :  { %v8978_v43 = vmul.f32 %v12788_v51, %v8972_v41  ;;  %v14549_v2 = vadd.f32 %v8988_v3, %v8983_v31 }
0x2824   :  { %v8984_v8 = vmul.f32 %v8982_v50, %v8978_v43  ;;  %12209 = vmatprep.mubr.msk.f32.mxu1 %vm223_vm3, %v14549_v2 }
0x2826   :  { %v14553_v47 = vadd.f32 %v8988_v3, %v8984_v8 }
0x2828   :  { %12210 = vmatmul.mubr.msk.f32.vlgmr.msra.gmra.mrb[98].mxu1 %vm223_vm3, %v14553_v47 }
0x2829   :  { %12224 = vmatpush3.xpose.msk.msra.mxu1 %vm325_vm5, %v14527_v11  ;;  %12225 = vmatprep.mubr.msk.f32.mxu1 %vm12934_vm4, %v12933_v6 }
0x282a   :  { %12228 = vmatprep.subr.mxu1 %v12933_v6 }
0x28fb   :  { %v12211_v62 = vpop.f32.mrb[98].mxu1 }
0x28fc   :  { %v9078_v14 = vadd.f32 %v12211_v62, %v8999_v46  ;;  %v9072_v19 = vpop.f32.mrb[99].mxu1 }
0x28fd   :  { %v9073_v17 = vadd.f32 %v9072_v19, %v8999_v46 }
0x28fe   :  { %9174 = vrot.lane.b32.xlu1 %v9078_v14, %s12936_s30 }
0x28ff   :  { %9176 = vrot.lane.b32.xlu0 %v9073_v17, %s12935_s10  ;;  %12226 = vmatmul.mubr.msk.f32.vlgmr.msra.gmra.mrb[100].mxu1 %vm325_vm5, %v9073_v17 }
0x2900   :  { %12229 = vmatpush3.xpose.msk.msra.mxu1 %vm325_vm5, %v14523_v9  ;;  %12230 = vmatprep.mubr.msk.f32.mxu1 %vm12934_vm4, %v12933_v6 }
0x2901   :  { %12238 = vmatprep.subr.mxu1 %v12933_v6 }
0x2902   :  { %9172 = vrot.lane.b32.xlu1 %v9073_v17, %s12936_s30 }
0x2903   :  { %9180 = vrot.lane.b32.xlu0 %v9073_v17, %s12937_s11  ;;  %12231 = vmatmul.mubr.msk.f32.vlgmr.msra.gmra.mrb[102].mxu1 %vm325_vm5, %v9078_v14 }
0x2904   :  { %12239 = vmatpush3.xpose.msk.msra.mxu1 %vm325_vm5, %v14573_v58  ;;  %12240 = vmatprep.mubr.msk.f32.mxu1 %vm12934_vm4, %v12933_v6 }
0x2905   :  { %12248 = vmatprep.subr.mxu1 %v12933_v6 }
0x2906   :  { %9178 = vrot.lane.b32.xlu1 %v9078_v14, %s12935_s10 }
0x290a   :  { %9196 = vrot.lane.b32.xlu1 %v14523_v9, %s12937_s11 }
0x290e   :  { %9182 = vrot.lane.b32.xlu1 %v9078_v14, %s12937_s11 }
0x2970   :  { %v9175_v13 = vpop.permute.xlu1 %9174 }
0x2971   :  { %12241 = vmatmul.mubr.msk.f32.vlgmr.msra.gmra.mrb[104].mxu1 %vm325_vm5, %v9175_v13  ;;  %v9177_v48 = vpop.permute.xlu0 %9176 }
0x2972   :  { %12249 = vmatpush3.xpose.msk.msra.mxu1 %vm325_vm5, %v14538_v40  ;;  %12250 = vmatprep.mubr.msk.f32.mxu1 %vm12934_vm4, %v12933_v6 }
0x2973   :  { %12258 = vmatprep.subr.mxu1 %v12933_v6 }
0x2974   :  { %v9173_v24 = vpop.permute.xlu1 %9172 }
0x2975   :  { %12236 = vmatmul.mubr.msk.f32.vlgmr.msra.gmra.mrb[102].mxu0 %vm325_vm5, %v9173_v24  ;;  %v9181_v27 = vpop.permute.xlu0 %9180 }
0x2976   :  { %12244 = vmatpush3.xpose.msk.msra.mxu0 %vm325_vm5, %v14586_v20  ;;  %12245 = vmatprep.mubr.msk.f32.mxu0 %vm12934_vm4, %v12933_v6 }
0x2977   :  { %12253 = vmatprep.subr.mxu0 %v12933_v6 }
0x2978   :  { %v9179_v18 = vpop.permute.xlu1 %9178 }
0x2979   :  { %12246 = vmatmul.mubr.msk.f32.vlgmr.msra.gmra.mrb[104].mxu0 %vm325_vm5, %v9177_v48  ;;  %12251 = vmatmul.mubr.msk.f32.vlgmr.msra.gmra.mrb[106].mxu1 %vm325_vm5, %v9179_v18 }
0x297a   :  { %12254 = vmatpush3.xpose.msk.msra.mxu0 %vm325_vm5, %v14589_v12  ;;  %12255 = vmatprep.mubr.msk.f32.mxu0 %vm12934_vm4, %v12933_v6 }
0x297b   :  { %12260 = vmatprep.mubr.msk.f32.mxu1 %vm12934_vm4, %v12933_v6  ;;  %12263 = vmatprep.subr.mxu0 %v12933_v6 }
0x297c   :  { %v14611_v55 = vpop.permute.xlu1 %9196 }
0x297d   :  { %12256 = vmatmul.mubr.msk.f32.vlgmr.msra.gmra.mrb[106].mxu0 %vm325_vm5, %v9181_v27  ;;  %12259 = vmatpush3.xpose.msk.msra.mxu1 %vm325_vm5, %v14611_v55 }
0x297e   :  { %12268 = vmatprep.subr.mxu1 %v12933_v6  ;;  %12265 = vmatprep.mubr.msk.f32.mxu0 %vm12934_vm4, %v12933_v6 }
0x2980   :  { %v9183_v16 = vpop.permute.xlu1 %9182 }
0x2981   :  { %12261 = vmatmul.mubr.msk.f32.vlgmr.msra.gmra.mrb[108].mxu1 %vm325_vm5, %v9183_v16 }
0x2982   :  { %12270 = vmatprep.mubr.msk.f32.mxu1 %vm12934_vm4, %v12933_v6 }
0x29d2   :  { %v9268_v7 = vpop.f32.mrb[100].mxu1 }
0x29d3   :  { %v9790_v25 = vmul.f32 0.35355338, %v9268_v7  ;;  %v12227_v4 = vpop.f32.mrb[101].mxu1 }
0x29d5   :  { %v9798_v28 = vsel %vm325_vm5, %v9790_v25, -inf }
0x29d6   :  { %9799 = vmax.xlane.f32.xlu0 %v9798_v28  ;;  %v9342_v63 = vpop.f32.mrb[102].mxu1 }
0x29d7   :  { %v9791_v29 = vmul.f32 0.35355338, %v9342_v63  ;;  %v12232_v30 = vpop.f32.mrb[103].mxu1 }
0x29d9   :  { %v9801_v32 = vsel %vm325_vm5, %v9791_v29, -inf }
0x29da   :  { %9802 = vmax.xlane.f32.xlu1 %v9801_v32 }
0x2a44   :  { %v9490_v15 = vpop.f32.mrb[104].mxu1 }
0x2a45   :  { %v12242_v33 = vpop.f32.mrb[105].mxu1  ;;  %v9793_v38 = vmul.f32 0.35355338, %v9490_v15 }
0x2a47   :  { %v9807_v52 = vsel %vm325_vm5, %v9793_v38, -inf }
0x2a48   :  { %v9416_v34 = vpop.f32.mrb[102].mxu0 }
0x2a49   :  { %v9792_v36 = vmul.f32 0.35355338, %v9416_v34  ;;  %v12237_v37 = vpop.f32.mrb[103].mxu0 }
0x2a4b   :  { %v9804_v42 = vsel %vm325_vm5, %v9792_v36, -inf }
0x2a4c   :  { %9805 = vmax.xlane.f32.xlu0 %v9804_v42  ;;  %v9564_v44 = vpop.f32.mrb[104].mxu0  ;;  %v9638_v59 = vpop.f32.mrb[106].mxu1 }
0x2a4d   :  { %v9794_v49 = vmul.f32 0.35355338, %v9564_v44  ;;  %v12247_v60 = vpop.f32.mrb[105].mxu0  ;;  %v12252_v61 = vpop.f32.mrb[107].mxu1  ;;  %v9795_v1 = vmul.f32 0.35355338, %v9638_v59 }
0x2a4f   :  { %v9810_v0 = vsel %vm325_vm5, %v9794_v49, -inf  ;;  %v9813_v50 = vsel %vm325_vm5, %v9795_v1, -inf }
0x2a50   :  { %9808 = vmax.xlane.f32.xlu0 %v9807_v52  ;;  %9811 = vmax.xlane.f32.xlu1 %v9810_v0  ;;  %v9712_v21 = vpop.f32.mrb[106].mxu0 }
0x2a51   :  { %v9796_v10 = vmul.f32 0.35355338, %v9712_v21  ;;  %v12257_v39 = vpop.f32.mrb[107].mxu0 }
0x2a53   :  { %v9816_v45 = vsel %vm325_vm5, %v9796_v10, -inf }
0x2a54   :  { %9814 = vmax.xlane.f32.xlu0 %v9813_v50  ;;  %v9786_v23 = vpop.f32.mrb[108].mxu1  ;;  %9817 = vmax.xlane.f32.xlu1 %v9816_v45 }
0x2a55   :  { %v9797_v3 = vmul.f32 0.35355338, %v9786_v23  ;;  %v12262_v41 = vpop.f32.mrb[109].mxu1 }
0x2a57   :  { %v9819_v31 = vsel %vm325_vm5, %v9797_v3, -inf }
0x2a58   :  { %9820 = vmax.xlane.f32.xlu0 %v9819_v31 }
0x2a63   :  { %v9800_v8 = vpop.xlane.xlu0 %9799 }
0x2a64   :  { %v9822_v46 = vsub.f32 %v9790_v25, %v9800_v8 }
0x2a65   :  { %9886 = vrot.lane.b32.xlu1 %v14527_v11, %s12938_s23 }
0x2a66   :  { %v9830_v62 = vmul.f32 1.442695, %v9822_v46 }
0x2a67   :  { %v9803_v51 = vpop.xlane.xlu1 %9802 }
0x2a68   :  { %v9823_v43 = vsub.f32 %v9791_v29, %v9803_v51 }
0x2a69   :  { %10038 = vrot.lane.b32.xlu1 %v14540_v26, %s12938_s23 }
0x2a6a   :  { %v9832_v11 = vmul.f32 1.442695, %v9823_v43 }
0x2a6c   :  { %12789 = vpow2.f32 %v9832_v11 }
0x2a6d   :  { %10114 = vrot.lane.b32.xlu1 %v14573_v58, %s12938_s23  ;;  %12791 = vpow2.f32 %v9830_v62 }
0x2a6e   :  { %9962 = vrot.lane.b32.xlu0 %v14523_v9, %s12938_s23 }
0x2a71   :  { %10266 = vrot.lane.b32.xlu1 %v14538_v40, %s12938_s23 }
0x2a72   :  { %10190 = vrot.lane.b32.xlu0 %v14586_v20, %s12938_s23 }
0x2a76   :  { %v14642_v26 = vpop.eup %12789 }
0x2a77   :  { %v9849_v14 = vsel %vm325_vm5, %v14642_v26, 0.0  ;;  %v14646_v9 = vpop.eup %12791 }
0x2a78   :  { %v9846_v40 = vsel %vm325_vm5, %v14646_v9, 0.0 }
0x2a91   :  { %9850 = vadd.xlane.f32.xlu0 %v9849_v14 }
0x2a95   :  { %9847 = vadd.xlane.f32.xlu1 %v9846_v40 }
0x2ad9   :  { %v9806_v19 = vpop.xlane.xlu0 %9805 }
0x2ada   :  { %v9824_v17 = vsub.f32 %v9792_v36, %v9806_v19 }
0x2adc   :  { %v9834_v58 = vmul.f32 1.442695, %v9824_v17 }
0x2add   :  { %v9812_v20 = vpop.xlane.xlu1 %9811  ;;  %v9809_v13 = vpop.xlane.xlu0 %9808 }
0x2ade   :  { %12793 = vpow2.f32 %v9834_v58  ;;  %v9826_v24 = vsub.f32 %v9794_v49, %v9812_v20  ;;  %v9825_v48 = vsub.f32 %v9793_v38, %v9809_v13 }
0x2ae0   :  { %v9838_v18 = vmul.f32 1.442695, %v9826_v24  ;;  %v9836_v27 = vmul.f32 1.442695, %v9825_v48 }
0x2ae1   :  { %v9818_v16 = vpop.xlane.xlu1 %9817  ;;  %v9815_v7 = vpop.xlane.xlu0 %9814 }
0x2ae2   :  { %12795 = vpow2.f32 %v9838_v18  ;;  %v9828_v25 = vsub.f32 %v9796_v10, %v9818_v16  ;;  %v9827_v4 = vsub.f32 %v9795_v1, %v9815_v7 }
0x2ae3   :  { %12797 = vpow2.f32 %v9836_v27 }
0x2ae4   :  { %v9842_v28 = vmul.f32 1.442695, %v9828_v25  ;;  %v9840_v63 = vmul.f32 1.442695, %v9827_v4  ;;  %v9166_v4 = vld [vmem:[#allocation6 + $0x20] sm:$0xff] }
0x2ae5   :  { %v9887_v29 = vpop.permute.xlu1 %9886  ;;  %v9821_v30 = vpop.xlane.xlu0 %9820 }
0x2ae6   :  { %12799 = vpow2.f32 %v9842_v28  ;;  %v9829_v32 = vsub.f32 %v9797_v3, %v9821_v30  ;;  %12264 = vmatpush3.msra.mxu0 %v9887_v29  ;;  %v9167_v28 = vld [vmem:[#allocation6 + $0x28] sm:$0xff]  ;;  %v9168_v29 = vld [vmem:[#allocation6 + $0x30] sm:$0xff]  ;;  %v9169_v30 = vld [vmem:[#allocation6 + $0x38] sm:$0xff] }
0x2ae7   :  { %12801 = vpow2.f32 %v9840_v63  ;;  %12273 = vmatprep.subr.mxu0 %v12933_v6  ;;  %v12539_v63 = vpack.c.bf16 %v9167_v28, %v9166_v4 }
0x2ae8   :  { %v12794_v15 = vpop.eup %12793  ;;  %v9844_v33 = vmul.f32 1.442695, %v9829_v32  ;;  %v12543_v32 = vpack.c.bf16 %v9169_v30, %v9168_v29 }
0x2ae9   :  { %v9963_v34 = vpop.permute.xlu0 %9962  ;;  %v9852_v36 = vsel %vm325_vm5, %v12794_v15, 0.0  ;;  %v10039_v0 = vpop.permute.xlu1 %10038 }
0x2aea   :  { %12803 = vpow2.f32 %v9844_v33  ;;  %9853 = vadd.xlane.f32.xlu1 %v9852_v36  ;;  %12269 = vmatpush3.msra.mxu1 %v9963_v34 }
0x2aeb   :  { %12278 = vmatprep.subr.mxu1 %v12933_v6 }
0x2aec   :  { %v12796_v37 = vpop.eup %12795 }
0x2aed   :  { %v12798_v38 = vpop.eup %12797  ;;  %v9858_v42 = vsel %vm325_vm5, %v12796_v37, 0.0  ;;  %v10115_v21 = vpop.permute.xlu1 %10114 }
0x2aee   :  { %9859 = vadd.xlane.f32.xlu1 %v9858_v42  ;;  %v9855_v44 = vsel %vm325_vm5, %v12798_v38, 0.0  ;;  %v10191_v10 = vpop.permute.xlu0 %10190 }
0x2aef   :  { %9856 = vadd.xlane.f32.xlu0 %v9855_v44 }
0x2af0   :  { %v12800_v59 = vpop.eup %12799 }
0x2af1   :  { %v12802_v49 = vpop.eup %12801  ;;  %v9864_v60 = vsel %vm325_vm5, %v12800_v59, 0.0  ;;  %v10267_v39 = vpop.permute.xlu1 %10266 }
0x2af2   :  { %9865 = vadd.xlane.f32.xlu1 %v9864_v60  ;;  %v9861_v61 = vsel %vm325_vm5, %v12802_v49, 0.0 }
0x2af3   :  { %9862 = vadd.xlane.f32.xlu0 %v9861_v61 }
0x2af4   :  { %v14657_v1 = vpop.eup %12803 }
0x2af5   :  { %v9867_v52 = vsel %vm325_vm5, %v14657_v1, 0.0 }
0x2af7   :  { %9868 = vadd.xlane.f32.xlu0 %v9867_v52 }
0x2b03   :  { %10418 = vrot.lane.b32.xlu1 %v14611_v55, %s12938_s23 }
0x2b0d   :  { %10342 = vrot.lane.b32.xlu0 %v14589_v12, %s12938_s23 }
0x2b1e   :  { %v9851_v50 = vpop.xlane.xlu0 %9850 }
0x2b1f   :  { %12805 = vrcp.f32 %v9851_v50 }
0x2b22   :  { %v9848_v45 = vpop.xlane.xlu1 %9847 }
0x2b23   :  { %12807 = vrcp.f32 %v9848_v45 }
0x2b29   :  { %v12806_v23 = vpop.eup %12805 }
0x2b2a   :  { %v9879_v3 = vmul.f32 %v12806_v23, %v14642_v26 }
0x2b2c   :  { %12271 = vmatmul.mubr.msk.f32.vlgmr.msra.gmra.mrb[110].mxu1 %vm325_vm5, %v9879_v3 }
0x2b2d   :  { %v12808_v41 = vpop.eup %12807  ;;  %12279 = vmatpush3.msra.mxu1 %v10115_v21  ;;  %12280 = vmatprep.mubr.msk.f32.mxu1 %vm12934_vm4, %v12933_v6 }
0x2b2e   :  { %v9878_v12 = vmul.f32 %v12808_v41, %v14646_v9  ;;  %12288 = vmatprep.subr.mxu1 %v12933_v6 }
0x2b30   :  { %12266 = vmatmul.mubr.msk.f32.vlgmr.msra.gmra.mrb[108].mxu0 %vm325_vm5, %v9878_v12  ;;  %v12831_v12 = vld [vmem:[%s14808_s15 + $0x10] sm:$0xff] }
0x2b31   :  { %12274 = vmatpush3.msra.mxu0 %v10039_v0  ;;  %12275 = vmatprep.mubr.msk.f32.mxu0 %vm12934_vm4, %v12933_v6 }
0x2b32   :  { %12283 = vmatprep.subr.mxu0 %v12933_v6 }
0x2b77   :  { %v9854_v55 = vpop.xlane.xlu1 %9853 }
0x2b78   :  { %12809 = vrcp.f32 %v9854_v55  ;;  %v10527_v55 = vrot.slane %v12831_v12, %v13459_v56 }
0x2b7b   :  { %v9860_v31 = vpop.xlane.xlu1 %9859 }
0x2b7c   :  { %12811 = vrcp.f32 %v9860_v31  ;;  %v9857_v51 = vpop.xlane.xlu0 %9856 }
0x2b7d   :  { %12813 = vrcp.f32 %v9857_v51 }
0x2b7f   :  { %v9866_v43 = vpop.xlane.xlu1 %9865 }
0x2b80   :  { %12815 = vrcp.f32 %v9866_v43  ;;  %v9863_v8 = vpop.xlane.xlu0 %9862 }
0x2b81   :  { %12817 = vrcp.f32 %v9863_v8 }
0x2b82   :  { %v12810_v46 = vpop.eup %12809 }
0x2b83   :  { %v9880_v11 = vmul.f32 %v12810_v46, %v12794_v15  ;;  %v10419_v24 = vpop.permute.xlu1 %10418 }
0x2b84   :  { %v9869_v62 = vpop.xlane.xlu0 %9868 }
0x2b85   :  { %12819 = vrcp.f32 %v9869_v62  ;;  %12276 = vmatmul.mubr.msk.f32.vlgmr.msra.gmra.mrb[110].mxu0 %vm325_vm5, %v9880_v11 }
0x2b86   :  { %v12812_v26 = vpop.eup %12811  ;;  %12284 = vmatpush3.msra.mxu0 %v10191_v10  ;;  %12285 = vmatprep.mubr.msk.f32.mxu0 %vm12934_vm4, %v12933_v6 }
0x2b87   :  { %v12814_v14 = vpop.eup %12813  ;;  %v9882_v9 = vmul.f32 %v12812_v26, %v12796_v37  ;;  %12293 = vmatprep.subr.mxu0 %v12933_v6 }
0x2b88   :  { %v9881_v40 = vmul.f32 %v12814_v14, %v12798_v38  ;;  %v10343_v19 = vpop.permute.xlu0 %10342 }
0x2b89   :  { %12286 = vmatmul.mubr.msk.f32.vlgmr.msra.gmra.mrb[112].mxu0 %vm325_vm5, %v9882_v9 }
0x2b8a   :  { %v12816_v17 = vpop.eup %12815  ;;  %12281 = vmatmul.mubr.msk.f32.vlgmr.msra.gmra.mrb[112].mxu1 %vm325_vm5, %v9881_v40  ;;  %12294 = vmatpush3.msra.mxu0 %v10343_v19  ;;  %v10655_v19 = vld [vmem:[#allocation7 + $0x28] sm:$0xff] }
0x2b8b   :  { %v12818_v58 = vpop.eup %12817  ;;  %v9884_v20 = vmul.f32 %v12816_v17, %v12800_v59  ;;  %12289 = vmatpush3.msra.mxu1 %v10267_v39  ;;  %12290 = vmatprep.mubr.msk.f32.mxu1 %vm12934_vm4, %v12933_v6  ;;  %v10656_v17 = vld [vmem:[#allocation7 + $0x30] sm:$0xff] }
0x2b8c   :  { %v9883_v13 = vmul.f32 %v12818_v58, %v12802_v49  ;;  %12295 = vmatprep.mubr.msk.f32.mxu0 %vm12934_vm4, %v12933_v6  ;;  %12298 = vmatprep.subr.mxu1 %v12933_v6  ;;  %v10657_v58 = vld [vmem:[#allocation7 + $0x38] sm:$0xff] }
0x2b8d   :  { %12296 = vmatmul.mubr.msk.f32.vlgmr.msra.gmra.mrb[114].mxu0 %vm325_vm5, %v9884_v20  ;;  %12540 = vmatprep.subr.bf16.mxu0 %v12539_v63  ;;  %v12551_v20 = vpack.c.bf16 %v10657_v58, %v10656_v17  ;;  %v10884_v58 = vld [vmem:[%s14809_s16 + $0x8] sm:$0xff] }
0x2b8e   :  { %12291 = vmatmul.mubr.msk.f32.vlgmr.msra.gmra.mrb[114].mxu1 %vm325_vm5, %v9883_v13  ;;  %12542 = vmatpush3.bf16.msra.mxu0 %v12539_v63  ;;  %v11207_v13 = vld [vmem:[%s14807_s14 + $0x40] sm:$0xff] }
0x2b8f   :  { %v12820_v48 = vpop.eup %12819  ;;  %12299 = vmatpush3.msra.mxu1 %v10419_v24  ;;  %12300 = vmatprep.mubr.msk.f32.mxu1 %vm12934_vm4, %v12933_v6  ;;  %v11208_v24 = vld [vmem:[%s14807_s14 + $0x48] sm:$0xff] }
0x2b90   :  { %v9885_v18 = vmul.f32 %v12820_v48, %v14657_v1  ;;  %12544 = vmatprep.subr.bf16.mxu0 %v12543_v32  ;;  %v11209_v48 = vld [vmem:[%s14807_s14 + $0x50] sm:$0xff] }
0x2b92   :  { %12301 = vmatmul.mubr.msk.f32.vlgmr.msra.gmra.mrb[116].mxu1 %vm325_vm5, %v9885_v18  ;;  %12546 = vmatpush3.bf16.msra.mxu0 %v12543_v32  ;;  %v12555_v18 = vpack.c.bf16 %v11208_v24, %v11207_v13  ;;  %v10885_v13 = vld [vmem:[%s14809_s16 + $0x10] sm:$0xff]  ;;  %v10886_v24 = vld [vmem:[%s14809_s16 + $0x18] sm:$0xff] }
0x2b94   :  { %12556 = vmatprep.subr.bf16.mxu0 %v12555_v18 }
0x2bff   :  { %v10034_v27 = vpop.f32.mrb[110].mxu1 }
0x2c00   :  { %v12272_v16 = vpop.f32.mrb[111].mxu1 }
0x2c03   :  { %v9958_v7 = vpop.f32.mrb[108].mxu0 }
0x2c04   :  { %v12267_v25 = vpop.f32.mrb[109].mxu0 }
0x2c05   :  { %v11212_v25 = vld [vmem:[%s14807_s14 + $0x68] sm:$0xff] }
0x2c58   :  { %v10110_v15 = vpop.f32.mrb[110].mxu0 }
0x2c59   :  { %v12277_v6 = vpop.f32.mrb[111].mxu0  ;;  %10496 = vrot.lane.b32.xlu0 %v10110_v15, %s12929_s25 }
0x2c5c   :  { %v10262_v33 = vpop.f32.mrb[112].mxu0 }
0x2c5d   :  { %v10186_v34 = vpop.f32.mrb[112].mxu1  ;;  %10504 = vrot.lane.b32.xlu0 %v10262_v33, %s12940_s12  ;;  %v12287_v36 = vpop.f32.mrb[113].mxu0 }
0x2c5e   :  { %10498 = vrot.lane.b32.xlu1 %v10186_v34, %s12929_s25  ;;  %v12282_v37 = vpop.f32.mrb[113].mxu1 }
0x2c60   :  { %v10414_v38 = vpop.f32.mrb[114].mxu0 }
0x2c61   :  { %v10338_v42 = vpop.f32.mrb[114].mxu1  ;;  %10512 = vrot.lane.b32.xlu0 %v10414_v38, %s12941_s26  ;;  %v12297_v44 = vpop.f32.mrb[115].mxu0 }
0x2c62   :  { %10506 = vrot.lane.b32.xlu1 %v10338_v42, %s12940_s12  ;;  %v12292_v59 = vpop.f32.mrb[115].mxu1 }
0x2c63   :  { %v14742_v59 = vld [vmem:[%s14808_s15 + $0x18] sm:$0x1f] }
0x2c65   :  { %v10490_v49 = vpop.f32.mrb[116].mxu1 }
0x2c66   :  { %10514 = vrot.lane.b32.xlu1 %v10490_v49, %s12941_s26  ;;  %v12302_v60 = vpop.f32.mrb[117].mxu1 }
0x2c67   :  { %v10644_v60 = vrot.slane %v12831_v12, %v13462_v57  ;;  %v11213_v57 = vld [vmem:[%s14807_s14 + $0x70] sm:$0xff] }
0x2ccb   :  { %v10497_v61 = vpop.permute.xlu0 %10496 }
0x2ccc   :  { %v10518_v0 = vsel %vm325_vm5, %v9958_v7, %v10497_v61  ;;  %v11211_v7 = vld [vmem:[%s14807_s14 + $0x60] sm:$0xff] }
0x2ccd   :  { %v12563_v4 = vpack.c.bf16 %v11212_v25, %v11211_v7 }
0x2ccf   :  { %v10505_v1 = vpop.permute.xlu0 %10504 }
0x2cd0   :  { %v10499_v52 = vpop.permute.xlu1 %10498  ;;  %v10520_v21 = vsel %vm132_vm0, %v10518_v0, %v10505_v1 }
0x2cd1   :  { %v10519_v45 = vsel %vm325_vm5, %v10034_v27, %v10499_v52  ;;  %v11210_v27 = vld [vmem:[%s14807_s14 + $0x58] sm:$0xff]  ;;  %v10650_v52 = vrot.slane %v14742_v59, %v13156_v22 }
0x2cd2   :  { %v12559_v16 = vpack.c.bf16 %v11210_v27, %v11209_v48  ;;  %v11214_v22 = vld [vmem:[%s14807_s14 + $0x78] sm:$0xff]  ;;  %v12575_v48 = vpack.c.bf16 %v10886_v24, %v10885_v13 }
0x2cd3   :  { %v10513_v10 = vpop.permute.xlu0 %10512 }
0x2cd4   :  { %v10507_v39 = vpop.permute.xlu1 %10506  ;;  %v10522_v50 = vsel %vm1664_vm6, %v10520_v21, %v10513_v10 }
0x2cd5   :  { %12311 = vmatprep.mubr.msk.f32.mxu0 %vm223_vm3, %v10522_v50  ;;  %v10521_v23 = vsel %vm132_vm0, %v10519_v45, %v10507_v39 }
0x2cd8   :  { %v10515_v3 = vpop.permute.xlu1 %10514 }
0x2cd9   :  { %v10523_v41 = vsel %vm1664_vm6, %v10521_v23, %v10515_v3  ;;  %v12567_v3 = vpack.c.bf16 %v11214_v22, %v11213_v57 }
0x2cda   :  { %12312 = vmatmul.mubr.msk.f32.vlgmr.msra.gmra.mrb[116].mxu0 %vm223_vm3, %v10523_v41  ;;  %v10670_v41 = vrot.slane %v14742_v59, %v13362_v5 }
0x2cdb   :  { %12558 = vmatpush3.bf16.msra.mxu0 %v12555_v18 }
0x2cdc   :  { %12560 = vmatprep.subr.bf16.mxu0 %v12559_v16 }
0x2cdf   :  { %12562 = vmatpush3.bf16.msra.mxu0 %v12559_v16 }
0x2ce0   :  { %12564 = vmatprep.subr.bf16.mxu0 %v12563_v4 }
0x2ce3   :  { %12566 = vmatpush3.bf16.msra.mxu0 %v12563_v4 }
0x2ce4   :  { %12568 = vmatprep.subr.bf16.mxu0 %v12567_v3 }
0x2ce7   :  { %12570 = vmatpush3.bf16.msra.mxu0 %v12567_v3 }
0x2dad   :  { %v12313_v31 = vpop.f32.mrb[116].mxu0 }
0x2dae   :  { %v10606_v51 = vadd.f32 %v12313_v31, %v10527_v55  ;;  %v10600_v43 = vpop.f32.mrb[117].mxu0 }
0x2daf   :  { %v10601_v8 = vadd.f32 %v10600_v43, %v10527_v55 }
0x2db0   :  { %v14711_v46 = vadd.f32 %v10606_v51, %v14553_v47  ;;  %v10654_v47 = vld [vmem:[#allocation7 + $0x20] sm:$0xff] }
0x2db1   :  { %v10609_v11 = vadd.f32 %v10601_v8, %v14549_v2  ;;  %v12547_v2 = vpack.c.bf16 %v10655_v19, %v10654_v47 }
0x2db2   :  { %v10614_v62 = vsel %vm223_vm3, %v14711_v46, 0.0  ;;  %v10620_v56 = vmul.f32 %v14711_v46, %v14711_v46 }
0x2db3   :  { %10615 = vadd.xlane.f32.xlu1 %v10614_v62  ;;  %v10611_v26 = vsel %vm223_vm3, %v10609_v11, 0.0  ;;  %v10619_v14 = vmul.f32 %v10609_v11, %v10609_v11  ;;  %12548 = vmatprep.subr.bf16.mxu1 %v12547_v2 }
0x2db4   :  { %10612 = vadd.xlane.f32.xlu0 %v10611_v26  ;;  %v10624_v40 = vsel %vm223_vm3, %v10620_v56, 0.0  ;;  %12550 = vmatpush3.bf16.msra.mxu1 %v12547_v2 }
0x2db5   :  { %v10621_v9 = vsel %vm223_vm3, %v10619_v14, 0.0  ;;  %12552 = vmatprep.subr.bf16.mxu1 %v12551_v20 }
0x2db8   :  { %10622 = vadd.xlane.f32.xlu0 %v10621_v9  ;;  %12554 = vmatpush3.bf16.msra.mxu1 %v12551_v20 }
0x2dbc   :  { %10625 = vadd.xlane.f32.xlu0 %v10624_v40 }
0x2e40   :  { %v10616_v29 = vpop.xlane.xlu1 %10615 }
0x2e41   :  { %v10613_v28 = vpop.xlane.xlu0 %10612  ;;  %v10618_v32 = vmul.f32 0.03125, %v10616_v29 }
0x2e42   :  { %v10617_v63 = vmul.f32 0.03125, %v10613_v28 }
0x2e43   :  { %v10630_v36 = vmul.f32 %v10618_v32, %v10618_v32  ;;  %v10634_v0 = vsub.f32 %v14711_v46, %v10618_v32  ;;  %v10757_v46 = vrot.slane %v14742_v59, %v13408_v53  ;;  %v10883_v53 = vld [vmem:[%s14809_s16] sm:$0xff] }
0x2e44   :  { %v10629_v15 = vmul.f32 %v10617_v63, %v10617_v63  ;;  %v10633_v49 = vsub.f32 %v10609_v11, %v10617_v63  ;;  %v12571_v20 = vpack.c.bf16 %v10884_v58, %v10883_v53 }
0x2e45   :  { %v10623_v30 = vpop.xlane.xlu0 %10622 }
0x2e46   :  { %v10627_v6 = vmul.f32 0.03125, %v10623_v30  ;;  %12572 = vmatprep.subr.bf16.mxu1 %v12571_v20 }
0x2e48   :  { %v10631_v33 = vsub.f32 %v10627_v6, %v10629_v15 }
0x2e49   :  { %v10626_v34 = vpop.xlane.xlu0 %10625 }
0x2e4a   :  { %v10635_v37 = vadd.f32 1e-05, %v10631_v33  ;;  %v10628_v38 = vmul.f32 0.03125, %v10626_v34 }
0x2e4c   :  { %12821 = vrsqrt.f32 %v10635_v37  ;;  %v10632_v42 = vsub.f32 %v10628_v38, %v10630_v36  ;;  %v10874_v36 = vrot.slane %v14742_v59, %v13411_v54  ;;  %v11219_v54 = vld [vmem:[%s14810_s17] ss:$0 sm:$0xff] }
0x2e4e   :  { %v10636_v44 = vadd.f32 1e-05, %v10632_v42 }
0x2e50   :  { %12823 = vrsqrt.f32 %v10636_v44 }
0x2e56   :  { %v12822_v61 = vpop.eup %12821 }
0x2e57   :  { %v10639_v1 = vmul.f32 %v12822_v61, %v10633_v49 }
0x2e59   :  { %v10645_v21 = vmul.f32 %v10644_v60, %v10639_v1 }
0x2e5a   :  { %v12824_v10 = vpop.eup %12823 }
0x2e5b   :  { %v10640_v39 = vmul.f32 %v12824_v10, %v10634_v0  ;;  %v10651_v50 = vadd.f32 %v10650_v52, %v10645_v21 }
0x2e5d   :  { %v10646_v45 = vmul.f32 %v10644_v60, %v10640_v39  ;;  %12322 = vmatprep.mubr.msk.f32.mxu1 %vm223_vm3, %v10651_v50  ;;  %v10880_v60 = vrot.slane %v14742_v59, %v13428_v35 }
0x2e5f   :  { %v10652_v23 = vadd.f32 %v10650_v52, %v10646_v45 }
0x2e61   :  { %12323 = vmatmul.mubr.msk.f32.vlgmr.msra.gmra.mrb[118].mxu1 %vm223_vm3, %v10652_v23 }
0x2e62   :  { %12574 = vmatpush3.bf16.msra.mxu1 %v12571_v20 }
0x2e63   :  { %12576 = vmatprep.subr.bf16.mxu1 %v12575_v48 }
0x2e66   :  { %12578 = vmatpush3.bf16.msra.mxu1 %v12575_v48 }
0x2f34   :  { %v12324_v12 = vpop.f32.mrb[118].mxu1 }
0x2f35   :  { %v10749_v55 = vadd.f32 %v12324_v12, %v10670_v41  ;;  %v10743_v31 = vpop.f32.mrb[119].mxu1 }
0x2f36   :  { %v10744_v51 = vadd.f32 %v10743_v31, %v10670_v41 }
0x2f37   :  { %v10753_v8 = vmax.f32 %v10749_v55, 0.0 }
0x2f38   :  { %v10752_v43 = vmax.f32 %v10744_v51, 0.0 }
0x2f3a   :  { %12341 = vmatprep.mubr.msk.f32.mxu0 %vm1900_vm7, %v10752_v43 }
0x2f3b   :  { %12342 = vmatmul.mubr.msk.f32.vlgmr.msra.gmra.mrb[118].mxu0 %vm1900_vm7, %v10753_v8 }
0x300e   :  { %v12343_v11 = vpop.f32.mrb[118].mxu0 }
0x300f   :  { %v10836_v62 = vadd.f32 %v12343_v11, %v10757_v46  ;;  %v10830_v26 = vpop.f32.mrb[119].mxu0 }
0x3010   :  { %v10831_v14 = vadd.f32 %v10830_v26, %v10757_v46 }
0x3011   :  { %v10840_v9 = vadd.f32 %v10836_v62, %v10652_v23 }
0x3012   :  { %v10839_v56 = vadd.f32 %v10831_v14, %v10651_v50 }
0x3013   :  { %v10844_v5 = vsel %vm223_vm3, %v10840_v9, 0.0  ;;  %v10850_v40 = vmul.f32 %v10840_v9, %v10840_v9 }
0x3014   :  { %10845 = vadd.xlane.f32.xlu0 %v10844_v5  ;;  %v10841_v47 = vsel %vm223_vm3, %v10839_v56, 0.0  ;;  %v10849_v19 = vmul.f32 %v10839_v56, %v10839_v56 }
0x3015   :  { %10842 = vadd.xlane.f32.xlu1 %v10841_v47  ;;  %v10854_v2 = vsel %vm223_vm3, %v10850_v40, 0.0 }
0x3016   :  { %v10851_v17 = vsel %vm223_vm3, %v10849_v19, 0.0 }
0x3018   :  { %10855 = vadd.xlane.f32.xlu0 %v10854_v2 }
0x3019   :  { %10852 = vadd.xlane.f32.xlu1 %v10851_v17 }
0x30a1   :  { %v10846_v18 = vpop.xlane.xlu0 %10845 }
0x30a2   :  { %v10848_v27 = vmul.f32 0.03125, %v10846_v18  ;;  %v10843_v16 = vpop.xlane.xlu1 %10842 }
0x30a3   :  { %v10847_v7 = vmul.f32 0.03125, %v10843_v16 }
0x30a4   :  { %v10860_v4 = vmul.f32 %v10848_v27, %v10848_v27  ;;  %v10864_v34 = vsub.f32 %v10840_v9, %v10848_v27 }
0x30a5   :  { %v10856_v25 = vpop.xlane.xlu0 %10855  ;;  %v10859_v29 = vmul.f32 %v10847_v7, %v10847_v7  ;;  %v10863_v38 = vsub.f32 %v10839_v56, %v10847_v7 }
0x30a6   :  { %v10858_v28 = vmul.f32 0.03125, %v10856_v25  ;;  %v10853_v63 = vpop.xlane.xlu1 %10852 }
0x30a7   :  { %v10857_v30 = vmul.f32 0.03125, %v10853_v63 }
0x30a8   :  { %v10862_v32 = vsub.f32 %v10858_v28, %v10860_v4 }
0x30a9   :  { %v10861_v15 = vsub.f32 %v10857_v30, %v10859_v29 }
0x30aa   :  { %v10866_v6 = vadd.f32 1e-05, %v10862_v32 }
0x30ab   :  { %v10865_v33 = vadd.f32 1e-05, %v10861_v15 }
0x30ac   :  { %12825 = vrsqrt.f32 %v10866_v6 }
0x30ad   :  { %12827 = vrsqrt.f32 %v10865_v33 }
0x30b6   :  { %v12826_v37 = vpop.eup %12825 }
0x30b7   :  { %v12828_v42 = vpop.eup %12827  ;;  %v10870_v44 = vmul.f32 %v12826_v37, %v10864_v34 }
0x30b8   :  { %v10869_v49 = vmul.f32 %v12828_v42, %v10863_v38 }
0x30b9   :  { %v10876_v61 = vmul.f32 %v10874_v36, %v10870_v44 }
0x30ba   :  { %v10875_v1 = vmul.f32 %v10874_v36, %v10869_v49 }
0x30bb   :  { %v10882_v0 = vadd.f32 %v10880_v60, %v10876_v61 }
0x30bc   :  { %v10881_v52 = vadd.f32 %v10880_v60, %v10875_v1 }
0x30be   :  { %12352 = vmatprep.mubr.msk.f32.mxu1 %vm223_vm3, %v10881_v52 }
0x30bf   :  { %12353 = vmatmul.mubr.msk.f32.vlgmr.msra.gmra.mrb[120].mxu1 %vm223_vm3, %v10882_v0 }
0x3192   :  { %v12354_v21 = vpop.f32.mrb[120].mxu1 }
0x3193   :  { %v10972_v10 = vadd.f32 %v12354_v21, %v11219_v54  ;;  %v10966_v39 = vpop.f32.mrb[121].mxu1 }
0x3194   :  { %v10967_v50 = vadd.f32 %v11219_v54, %v10966_v39 }
0x3195   :  { %10976 = vst [vmem:[%s14811_s18 + $0x8] sm:$0xff] %v10972_v10 }
0x3196   :  { %10975 = vst [vmem:[%s14811_s18] sm:$0xff] %v10967_v50 }
0x3197   :  { %10981 = vsyncpa [#allocation3], 1 }
0x3198   :  { %10982 = vsyncpa [#allocation5], 1 }
0x3199   :  { %10983 = vsyncpa [#allocation8], 1 }

</bundles_post_ra>
